<compile_context>
chip_gen: v5e
topology: v5e:2x2
jax: 0.10.0
libtpu: 0.0.40
codegen_flags: <defaults>
</compile_context>

<pallas_src>
import jax
import jax.numpy as jnp
from jax import lax
from jax.experimental import pallas as pl
from jax.experimental.pallas import tpu as pltpu


def fc_head_kernel(x_ref, w1_ref, b1_ref, w2_ref, b2_ref, w3_ref, b3_ref,
                   d1_ref, d2_ref, out_ref):
    # Contract over K (dim 1 of both operands): out[b, n] = sum_k act[b, k] * w[n, k]
    dn = (((1,), (1,)), ((), ()))

    x = x_ref[...]                                          # (B, 512) f32

    # dense1 + sigmoid
    z1 = lax.dot_general(x.astype(jnp.bfloat16), w1_ref[...],
                         dimension_numbers=dn,
                         preferred_element_type=jnp.float32)
    z1 = z1 + b1_ref[...]                                   # (B, 1024) f32
    d1 = pl.reciprocal(1.0 + jnp.exp(-z1), approx=True)     # sigmoid: exp + vrcp on EUP
    d1_ref[...] = d1.astype(d1_ref.dtype)

    # dense2 + sigmoid
    z2 = lax.dot_general(d1.astype(jnp.bfloat16), w2_ref[...],
                         dimension_numbers=dn,
                         preferred_element_type=jnp.float32)
    z2 = z2 + b2_ref[...]                                   # (B, 1024) f32
    d2 = pl.reciprocal(1.0 + jnp.exp(-z2), approx=True)
    d2_ref[...] = d2.astype(d2_ref.dtype)

    # classifier (N=10; masked lane store is negligible at this size)
    z3 = lax.dot_general(d2.astype(jnp.bfloat16), w3_ref[...],
                         dimension_numbers=dn,
                         preferred_element_type=jnp.float32)
    out_ref[...] = (z3 + b3_ref[...]).astype(out_ref.dtype)


def vgg13_sig_fc_head(x, w1, b1, w2, b2, w3, b3):
    """FC head of VGG13_sig.

    x : (B, 512)  f32  -- flattened f5
    w1: (1024, 512), b1: (1024,)   -- dense1 (PyTorch layout)
    w2: (1024, 1024), b2: (1024,)  -- dense2
    w3: (10, 1024),  b3: (10,)     -- classifier
    returns (d1, d2, out) matching the module's [f5, d1, d2, out] (f5 is the input).
    """
    B = x.shape[0]
    H1 = w1.shape[0]
    H2 = w2.shape[0]
    N = w3.shape[0]

    # Ship weights as bf16: halves the DMA bytes this kernel is bound on and matches
    # the MXU operand dtype exactly (no in-kernel weight casts).
    w1b = w1.astype(jnp.bfloat16)
    w2b = w2.astype(jnp.bfloat16)
    w3b = w3.astype(jnp.bfloat16)

    vmem = pl.BlockSpec(memory_space=pltpu.MemorySpace.VMEM)

    return pl.pallas_call(
        fc_head_kernel,
        out_shape=(
            jax.ShapeDtypeStruct((B, H1), x.dtype),
            jax.ShapeDtypeStruct((B, H2), x.dtype),
            jax.ShapeDtypeStruct((B, N), x.dtype),
        ),
        in_specs=[vmem, vmem, vmem, vmem, vmem, vmem, vmem],
        out_specs=(vmem, vmem, vmem),
        compiler_params=pltpu.CompilerParams(vmem_limit_bytes=8 * 1024 * 1024),
    )(x,
      w1b, b1.reshape(1, H1).astype(jnp.float32),
      w2b, b2.reshape(1, H2).astype(jnp.float32),
      w3b, b3.reshape(1, N).astype(jnp.float32))


def reference_forward(x, w1, b1, w2, b2, w3, b3):
    d1 = jax.nn.sigmoid(x @ w1.T + b1[None, :])
    d2 = jax.nn.sigmoid(d1 @ w2.T + b2[None, :])
    out = d2 @ w3.T + b3[None, :]
    return d1, d2, out


if __name__ == "__main__":
    key = jax.random.PRNGKey(0)
    kx, kw1, kb1, kw2, kb2, kw3, kb3 = jax.random.split(key, 7)

    B = 8
    K, H, N = 512, 1024, 10   # flatten width, hidden width, classes (fixed by the module)

    x = jax.random.normal(kx, (B, K), dtype=jnp.float32)

    def linear_init(kw, kb, out_f, in_f):
        # Mirrors nn.Linear's Kaiming-uniform-style init bounds.
        bound = 1.0 / (in_f ** 0.5)
        w = jax.random.uniform(kw, (out_f, in_f), minval=-bound, maxval=bound,
                               dtype=jnp.float32)
        b = jax.random.uniform(kb, (out_f,), minval=-bound, maxval=bound,
                               dtype=jnp.float32)
        return w, b

    w1, b1 = linear_init(kw1, kb1, H, K)   # dense1: 512 -> 1024
    w2, b2 = linear_init(kw2, kb2, H, H)   # dense2: 1024 -> 1024
    w3, b3 = linear_init(kw3, kb3, N, H)   # classifier: 1024 -> 10

    d1, d2, out = vgg13_sig_fc_head(x, w1, b1, w2, b2, w3, b3)
    d1, d2, out = jax.block_until_ready((d1, d2, out))

    r1, r2, rout = reference_forward(x, w1, b1, w2, b2, w3, b3)

    assert d1.shape == (B, H) and d2.shape == (B, H) and out.shape == (B, N)
    # bf16 MXU operands (f32 accumulation) + approx EUP reciprocal in the sigmoid
    # => tolerance loosened vs the pure-f32 reference.
    assert jnp.allclose(d1, r1, atol=2e-2, rtol=2e-2), "d1 mismatch vs reference"
    assert jnp.allclose(d2, r2, atol=2e-2, rtol=2e-2), "d2 mismatch vs reference"
    assert jnp.allclose(out, rout, atol=2e-2, rtol=2e-2), "out mismatch vs reference"

    print("KERNEL_OK")
</pallas_src>

<mosaic_0001>
module attributes {stable_mosaic.version = 11 : i64} {
  func.func @fc_head_kernel(%arg0: memref<8x512xf32, #tpu.memory_space<vmem>>, %arg1: memref<1024x512xbf16, #tpu.memory_space<vmem>>, %arg2: memref<1x1024xf32, #tpu.memory_space<vmem>>, %arg3: memref<1024x1024xbf16, #tpu.memory_space<vmem>>, %arg4: memref<1x1024xf32, #tpu.memory_space<vmem>>, %arg5: memref<10x1024xbf16, #tpu.memory_space<vmem>>, %arg6: memref<1x10xf32, #tpu.memory_space<vmem>>, %arg7: memref<8x1024xf32, #tpu.memory_space<vmem>>, %arg8: memref<8x1024xf32, #tpu.memory_space<vmem>>, %arg9: memref<8x10xf32, #tpu.memory_space<vmem>>) attributes {dimension_semantics = [], scalar_prefetch = 0 : i64, scratch_operands = 0 : i64, tpu.core_type = #tpu.core_type<tc>} {
    %c0 = arith.constant 0 : index
    %c0_0 = arith.constant 0 : index
    %0 = vector.load %arg0[%c0, %c0_0] : memref<8x512xf32, #tpu.memory_space<vmem>>, vector<8x512xf32>
    %1 = arith.truncf %0 : vector<8x512xf32> to vector<8x512xbf16>
    %c0_1 = arith.constant 0 : index
    %c0_2 = arith.constant 0 : index
    %2 = vector.load %arg1[%c0_1, %c0_2] : memref<1024x512xbf16, #tpu.memory_space<vmem>>, vector<1024x512xbf16>
    %cst = arith.constant dense<0.000000e+00> : vector<8x1024xf32>
    %3 = tpu.matmul %1, %2, %cst {dimension_numbers = #tpu.dot_dimension_numbers<[1], [1], [0], [0], [0, 0, 1, 0], [], []>} : vector<8x512xbf16>, vector<1024x512xbf16>, vector<8x1024xf32> -> vector<8x1024xf32>
    %c0_3 = arith.constant 0 : index
    %c0_4 = arith.constant 0 : index
    %4 = vector.load %arg2[%c0_3, %c0_4] : memref<1x1024xf32, #tpu.memory_space<vmem>>, vector<1x1024xf32>
    %5 = vector.broadcast %4 : vector<1x1024xf32> to vector<8x1024xf32>
    %6 = arith.addf %3, %5 : vector<8x1024xf32>
    %cst_5 = arith.constant 0.000000e+00 : f32
    %7 = vector.broadcast %cst_5 : f32 to vector<8x1024xf32>
    %8 = arith.subf %7, %6 : vector<8x1024xf32>
    %9 = math.exp %8 : vector<8x1024xf32>
    %cst_6 = arith.constant 1.000000e+00 : f32
    %10 = vector.broadcast %cst_6 : f32 to vector<8x1024xf32>
    %11 = arith.addf %10, %9 : vector<8x1024xf32>
    %12 = tpu.reciprocal %11 {approx = true} : vector<8x1024xf32> -> vector<8x1024xf32>
    %c0_7 = arith.constant 0 : index
    %c0_8 = arith.constant 0 : index
    %13 = vector.load %arg7[%c0_7, %c0_8] : memref<8x1024xf32, #tpu.memory_space<vmem>>, vector<8x1024xf32>
    tpu.vector_store %arg7[%c0_7, %c0_8], %12 {strides = array<i32>} : memref<8x1024xf32, #tpu.memory_space<vmem>>, vector<8x1024xf32>,
    %14 = arith.truncf %12 : vector<8x1024xf32> to vector<8x1024xbf16>
    %c0_9 = arith.constant 0 : index
    %c0_10 = arith.constant 0 : index
    %15 = vector.load %arg3[%c0_9, %c0_10] : memref<1024x1024xbf16, #tpu.memory_space<vmem>>, vector<1024x1024xbf16>
    %cst_11 = arith.constant dense<0.000000e+00> : vector<8x1024xf32>
    %16 = tpu.matmul %14, %15, %cst_11 {dimension_numbers = #tpu.dot_dimension_numbers<[1], [1], [0], [0], [0, 0, 1, 0], [], []>} : vector<8x1024xbf16>, vector<1024x1024xbf16>, vector<8x1024xf32> -> vector<8x1024xf32>
    %c0_12 = arith.constant 0 : index
    %c0_13 = arith.constant 0 : index
    %17 = vector.load %arg4[%c0_12, %c0_13] : memref<1x1024xf32, #tpu.memory_space<vmem>>, vector<1x1024xf32>
    %18 = vector.broadcast %17 : vector<1x1024xf32> to vector<8x1024xf32>
    %19 = arith.addf %16, %18 : vector<8x1024xf32>
    %cst_14 = arith.constant 0.000000e+00 : f32
    %20 = vector.broadcast %cst_14 : f32 to vector<8x1024xf32>
    %21 = arith.subf %20, %19 : vector<8x1024xf32>
    %22 = math.exp %21 : vector<8x1024xf32>
    %cst_15 = arith.constant 1.000000e+00 : f32
    %23 = vector.broadcast %cst_15 : f32 to vector<8x1024xf32>
    %24 = arith.addf %23, %22 : vector<8x1024xf32>
    %25 = tpu.reciprocal %24 {approx = true} : vector<8x1024xf32> -> vector<8x1024xf32>
    %c0_16 = arith.constant 0 : index
    %c0_17 = arith.constant 0 : index
    %26 = vector.load %arg8[%c0_16, %c0_17] : memref<8x1024xf32, #tpu.memory_space<vmem>>, vector<8x1024xf32>
    tpu.vector_store %arg8[%c0_16, %c0_17], %25 {strides = array<i32>} : memref<8x1024xf32, #tpu.memory_space<vmem>>, vector<8x1024xf32>,
    %27 = arith.truncf %25 : vector<8x1024xf32> to vector<8x1024xbf16>
    %c0_18 = arith.constant 0 : index
    %c0_19 = arith.constant 0 : index
    %28 = vector.load %arg5[%c0_18, %c0_19] : memref<10x1024xbf16, #tpu.memory_space<vmem>>, vector<10x1024xbf16>
    %cst_20 = arith.constant dense<0.000000e+00> : vector<8x10xf32>
    %29 = tpu.matmul %27, %28, %cst_20 {dimension_numbers = #tpu.dot_dimension_numbers<[1], [1], [0], [0], [0, 0, 1, 0], [], []>} : vector<8x1024xbf16>, vector<10x1024xbf16>, vector<8x10xf32> -> vector<8x10xf32>
    %c0_21 = arith.constant 0 : index
    %c0_22 = arith.constant 0 : index
    %30 = vector.load %arg6[%c0_21, %c0_22] : memref<1x10xf32, #tpu.memory_space<vmem>>, vector<1x10xf32>
    %31 = vector.broadcast %30 : vector<1x10xf32> to vector<8x10xf32>
    %32 = arith.addf %29, %31 : vector<8x10xf32>
    %c0_23 = arith.constant 0 : index
    %c0_24 = arith.constant 0 : index
    %33 = vector.load %arg9[%c0_23, %c0_24] : memref<8x10xf32, #tpu.memory_space<vmem>>, vector<8x10xf32>
    tpu.vector_store %arg9[%c0_23, %c0_24], %32 {strides = array<i32>} : memref<8x10xf32, #tpu.memory_space<vmem>>, vector<8x10xf32>,
    return
  }
}

</mosaic_0001>

<bundles_post_ra>
// kernel: tpu_custom_call.1
= control target key start
LH: loop header
LB: loop body
LE: loop exit
PB: predicated region body
PF: predicated region fallthrough
CT: control target
= control target key end

     0   :  { %15 = vsyncpa [#allocation3], 0  ;;  %s10927_s0 = inlined_call_operand.hbm [shape: f32[8,512], index: 0, kind: input, shape index: {}]   ;;  %s10928_s1 = inlined_call_operand.hbm [shape: bf16[1024,512], index: 1, kind: input, shape index: {}]   ;;  %s10929_s2 = inlined_call_operand.hbm [shape: f32[1,1024], index: 2, kind: input, shape index: {}]   ;;  %s10930_s3 = inlined_call_operand.hbm [shape: bf16[1024,1024], index: 3, kind: input, shape index: {}]   ;;  %s10931_s4 = inlined_call_operand.hbm [shape: f32[1,1024], index: 4, kind: input, shape index: {}]   ;;  %s10932_s5 = inlined_call_operand.hbm [shape: bf16[10,1024], index: 5, kind: input, shape index: {}]   ;;  %s10933_s6 = inlined_call_operand.hbm [shape: f32[1,10], index: 6, kind: input, shape index: {}]   ;;  %s10934_s7 = inlined_call_operand.hbm [shape: f32[8,1024], index: 7, kind: output, shape index: {0}]   ;;  %s10935_s8 = inlined_call_operand.hbm [shape: f32[8,1024], index: 8, kind: output, shape index: {1}]   ;;  %s10936_s9 = inlined_call_operand.hbm [shape: f32[8,10], index: 9, kind: output, shape index: {2}]  }
   0x1   :  { %16 = vsyncpa [#allocation6], 0 }
   0x2   :  { %17 = vsyncpa [#allocation9], 0 }
   0x3   :  { %18 = vsyncpa [#allocation12], 0 }
   0x4   :  { %19 = vsyncpa [#allocation4], 0  ;;  %s36_s11 = sshll.u32 %s10928_s1, 4  ;;  %s37_s11 = int_to_ptr.hbm [resolvable:$true] %s36_s11 }
   0x5   :  { %20 = vsyncpa [#allocation16], 0  ;;  %s10576_s12 = smov [#allocation5]   ;;  %s60_s16 = sshll.u32 %s10930_s3, 4  ;;  %s61_s16 = int_to_ptr.hbm [resolvable:$true] %s60_s16 }
   0x6   :  { %s38_s13 = sshll.u32 %s10576_s12, 4  ;;  %s10577_s17 = smov 256   ;;  %s39_s13 = int_to_ptr.vmem [resolvable:$true] %s38_s13 }
   0x7   :  { %s10578_s18 = smov 16   ;;  %s10579_s19 = smov [#allocation8]  }
   0x8   :  { %44 = dma.hbm_to_vmem [thread:$0]  %s37_s11, 32768, %s39_s13, [#allocation6], %s10577_s17, %s10577_s17, %s10578_s18  }
   0x9   :  { %s62_s20 = sshll.u32 %s10579_s19, 4  ;;  %s10580_s21 = smov 512   ;;  %s63_s20 = int_to_ptr.vmem [resolvable:$true] %s62_s20 }
   0xa   :  { %s10581_s22 = smov 32   ;;  %s84_s24 = sshll.u32 %s10932_s5, 4  ;;  %s85_s24 = int_to_ptr.hbm [resolvable:$true] %s84_s24 }
   0xb   :  { %68 = dma.hbm_to_vmem [thread:$0]  %s61_s16, 65536, %s63_s20, [#allocation9], %s10580_s21, %s10580_s21, %s10581_s22  }
   0xc   :  { %s10582_s25 = smov [#allocation11]   ;;  %s26_s28 = sshll.u32 %s10927_s0, 4  ;;  %s27_s28 = int_to_ptr.hbm [resolvable:$true] %s26_s28 }
   0xd   :  { %s86_s26 = sshll.u32 %s10582_s25, 4  ;;  %s10583_s29 = smov [#allocation2]   ;;  %s87_s26 = int_to_ptr.vmem [resolvable:$true] %s86_s26 }
   0xe   :  { %92 = dma.hbm_to_vmem [thread:$0]  %s85_s24, 1024, %s87_s26, [#allocation12], %s10580_s21, %s10580_s21, %s10581_s22  }
   0xf   :  { %s28_s30 = sshll.u32 %s10583_s29, 4  ;;  %s50_s12 = sshll.u32 %s10929_s2, 4  ;;  %s29_s30 = int_to_ptr.vmem [resolvable:$true] %s28_s30  ;;  %s51_s12 = int_to_ptr.hbm [resolvable:$true] %s50_s12 }
  0x10   :  { %31 = dma.hbm_to_vmem [thread:$0]  %s27_s28, 512, %s29_s30, [#allocation3]  }
  0x11   :  { %s74_s14 = sshll.u32 %s10931_s4, 4  ;;  %s10584_s15 = smov [#allocation7]   ;;  %s75_s14 = int_to_ptr.hbm [resolvable:$true] %s74_s14 }
  0x12   :  { %s52_s16 = sshll.u32 %s10584_s15, 4  ;;  %s10585_s0 = smov [#allocation10]   ;;  %s53_s16 = int_to_ptr.vmem [resolvable:$true] %s52_s16 }
  0x13   :  { %55 = dma.hbm_to_vmem [thread:$0]  %s51_s12, 128, %s53_s16, [#allocation6]  }
  0x14   :  { %s76_s17 = sshll.u32 %s10585_s0, 4  ;;  %s98_s20 = sshll.u32 %s10933_s6, 4  ;;  %s77_s17 = int_to_ptr.vmem [resolvable:$true] %s76_s17  ;;  %s99_s20 = int_to_ptr.hbm [resolvable:$true] %s98_s20 }
  0x15   :  { %79 = dma.hbm_to_vmem [thread:$0]  %s75_s14, 128, %s77_s17, [#allocation9]  }
  0x16   :  { %s10586_s2 = smov [#allocation13]  }
  0x17   :  { %s100_s21 = sshll.u32 %s10586_s2, 4  ;;  %s101_s21 = int_to_ptr.vmem [resolvable:$true] %s100_s21 }
  0x18   :  { %103 = dma.hbm_to_vmem [thread:$0]  %s99_s20, 16, %s101_s21, [#allocation12]  }
  0x19   :  { %10564 = dma.done.wait [#allocation3], 512  }
  0x1a   :  { %10565 = vsyncadd [#allocation3], 4294966784 }
  0x1b   :  { %10566 = dma.done.wait [#allocation6], 32896  }
  0x1c   :  { %10567 = vsyncadd [#allocation6], 4294934400 }
  0x1d   :  { %10568 = dma.done.wait [#allocation9], 65664  }
  0x1e   :  { %10569 = vsyncadd [#allocation9], 4294901632 }
  0x1f   :  { %10570 = dma.done.wait [#allocation12], 1040  }
  0x20   :  { %10571 = vsyncadd [#allocation12], 4294966256  ;;  %v6468_v0 = vld [vmem:[#allocation5 + $0xe0] sm:$0xf]  ;;  %v9488_v1 = vld [vmem:[#allocation5 + $0xec] sm:$0xf0] }
  0x21   :  { %v9486_v2 = vld [vmem:[#allocation5 + $0xe4] sm:$0xf]  ;;  %v6469_v3 = vor.u32 %v9488_v1, %v6468_v0  ;;  %v6470_v4 = vld [vmem:[#allocation5 + $0xf0] sm:$0xf0]  ;;  %v6476_v5 = vld [vmem:[#allocation5 + $0xe8] sm:$0xf] }
  0x22   :  { %v9489_v6 = vld [vmem:[#allocation5 + $0xf4] sm:$0xf0]  ;;  %v6473_v7 = vor.u32 %v9486_v2, %v6470_v4  ;;  %v9487_v9 = vld [vmem:[#allocation5 + $0xec] sm:$0xf]  ;;  %v6478_v10 = vld [vmem:[#allocation5 + $0xf8] sm:$0xf0] }
  0x23   :  { %v6477_v8 = vor.u32 %v9489_v6, %v6476_v5  ;;  %1695 = vmatpush.bf16.xpose.msra.mxu0 %v6469_v3  ;;  %v6481_v11 = vor.u32 %v9487_v9, %v6478_v10  ;;  %v6452_v12 = vld [vmem:[#allocation5 + $0xc0] sm:$0xf]  ;;  %v9484_v13 = vld [vmem:[#allocation5 + $0xcc] sm:$0xf0]  ;;  %v9482_v14 = vld [vmem:[#allocation5 + $0xc4] sm:$0xf] }
  0x24   :  { %1708 = vmatpush.bf16.xpose.msra.mxu1 %v6473_v7  ;;  %v6454_v15 = vld [vmem:[#allocation5 + $0xd0] sm:$0xf0]  ;;  %v6460_v16 = vld [vmem:[#allocation5 + $0xc8] sm:$0xf]  ;;  %v9485_v17 = vld [vmem:[#allocation5 + $0xd4] sm:$0xf0]  ;;  %v6453_v20 = vor.u32 %v9484_v13, %v6452_v12 }
  0x25   :  { %1721 = vmatpush.bf16.xpose.msra.mxu2 %v6477_v8  ;;  %1734 = vmatpush.bf16.xpose.msra.mxu3 %v6481_v11  ;;  %v9483_v18 = vld [vmem:[#allocation5 + $0xcc] sm:$0xf]  ;;  %v6462_v19 = vld [vmem:[#allocation5 + $0xd8] sm:$0xf0]  ;;  %v6457_v21 = vor.u32 %v9482_v14, %v6454_v15  ;;  %v6461_v22 = vor.u32 %v9485_v17, %v6460_v16  ;;  %v6436_v24 = vld [vmem:[#allocation5 + $0xa0] sm:$0xf] }
  0x26   :  { %v6465_v23 = vor.u32 %v9483_v18, %v6462_v19  ;;  %v9480_v25 = vld [vmem:[#allocation5 + $0xac] sm:$0xf0]  ;;  %v9478_v26 = vld [vmem:[#allocation5 + $0xa4] sm:$0xf]  ;;  %v6438_v27 = vld [vmem:[#allocation5 + $0xb0] sm:$0xf0] }
  0x27   :  { %v6444_v28 = vld [vmem:[#allocation5 + $0xa8] sm:$0xf]  ;;  %v9481_v29 = vld [vmem:[#allocation5 + $0xb4] sm:$0xf0]  ;;  %v9479_v30 = vld [vmem:[#allocation5 + $0xac] sm:$0xf]  ;;  %v6437_v32 = vor.u32 %v9480_v25, %v6436_v24  ;;  %v6441_v33 = vor.u32 %v9478_v26, %v6438_v27 }
  0x28   :  { %v6446_v31 = vld [vmem:[#allocation5 + $0xb8] sm:$0xf0]  ;;  %v6445_v34 = vor.u32 %v9481_v29, %v6444_v28  ;;  %v6420_v36 = vld [vmem:[#allocation5 + $0x80] sm:$0xf]  ;;  %v9476_v37 = vld [vmem:[#allocation5 + $0x8c] sm:$0xf0] }
  0x29   :  { %v6449_v35 = vor.u32 %v9479_v30, %v6446_v31  ;;  %v9474_v38 = vld [vmem:[#allocation5 + $0x84] sm:$0xf]  ;;  %v6422_v39 = vld [vmem:[#allocation5 + $0x90] sm:$0xf0]  ;;  %v6428_v40 = vld [vmem:[#allocation5 + $0x88] sm:$0xf]  ;;  %v6421_v44 = vor.u32 %v9476_v37, %v6420_v36 }
  0x2a   :  { %v9477_v41 = vld [vmem:[#allocation5 + $0x94] sm:$0xf0]  ;;  %v9475_v42 = vld [vmem:[#allocation5 + $0x8c] sm:$0xf]  ;;  %v6430_v43 = vld [vmem:[#allocation5 + $0x98] sm:$0xf0]  ;;  %v6425_v45 = vor.u32 %v9474_v38, %v6422_v39 }
  0x2b   :  { %1696 = vmatpush.bf16.xpose.msra.mxu0 %v6453_v20  ;;  %v6429_v46 = vor.u32 %v9477_v41, %v6428_v40  ;;  %v6433_v47 = vor.u32 %v9475_v42, %v6430_v43  ;;  %v6404_v48 = vld [vmem:[#allocation5 + $0x60] sm:$0xf]  ;;  %v9472_v49 = vld [vmem:[#allocation5 + $0x6c] sm:$0xf0]  ;;  %v9470_v50 = vld [vmem:[#allocation5 + $0x64] sm:$0xf] }
  0x2c   :  { %1709 = vmatpush.bf16.xpose.msra.mxu1 %v6457_v21  ;;  %v6406_v51 = vld [vmem:[#allocation5 + $0x70] sm:$0xf0]  ;;  %v6412_v52 = vld [vmem:[#allocation5 + $0x68] sm:$0xf]  ;;  %v9473_v53 = vld [vmem:[#allocation5 + $0x74] sm:$0xf0]  ;;  %v6405_v56 = vor.u32 %v9472_v49, %v6404_v48 }
  0x2d   :  { %1722 = vmatpush.bf16.xpose.msra.mxu2 %v6461_v22  ;;  %1735 = vmatpush.bf16.xpose.msra.mxu3 %v6465_v23  ;;  %v9471_v54 = vld [vmem:[#allocation5 + $0x6c] sm:$0xf]  ;;  %v6414_v55 = vld [vmem:[#allocation5 + $0x78] sm:$0xf0]  ;;  %v6409_v57 = vor.u32 %v9470_v50, %v6406_v51  ;;  %v6413_v58 = vor.u32 %v9473_v53, %v6412_v52  ;;  %v6388_v60 = vld [vmem:[#allocation5 + $0x40] sm:$0xf] }
  0x2e   :  { %v6417_v59 = vor.u32 %v9471_v54, %v6414_v55  ;;  %v9468_v61 = vld [vmem:[#allocation5 + $0x4c] sm:$0xf0]  ;;  %v9466_v62 = vld [vmem:[#allocation5 + $0x44] sm:$0xf]  ;;  %v6390_v63 = vld [vmem:[#allocation5 + $0x50] sm:$0xf0] }
  0x2f   :  { %v6396_v0 = vld [vmem:[#allocation5 + $0x48] sm:$0xf]  ;;  %v9469_v1 = vld [vmem:[#allocation5 + $0x54] sm:$0xf0]  ;;  %v9467_v2 = vld [vmem:[#allocation5 + $0x4c] sm:$0xf]  ;;  %v6389_v4 = vor.u32 %v9468_v61, %v6388_v60  ;;  %v6393_v5 = vor.u32 %v9466_v62, %v6390_v63 }
  0x30   :  { %v6398_v3 = vld [vmem:[#allocation5 + $0x58] sm:$0xf0]  ;;  %v6397_v6 = vor.u32 %v9469_v1, %v6396_v0  ;;  %v6372_v8 = vld [vmem:[#allocation5 + $0x20] sm:$0xf]  ;;  %v9464_v9 = vld [vmem:[#allocation5 + $0x2c] sm:$0xf0] }
  0x31   :  { %v6401_v7 = vor.u32 %v9467_v2, %v6398_v3  ;;  %v9462_v10 = vld [vmem:[#allocation5 + $0x24] sm:$0xf]  ;;  %v6374_v11 = vld [vmem:[#allocation5 + $0x30] sm:$0xf0]  ;;  %v6380_v12 = vld [vmem:[#allocation5 + $0x28] sm:$0xf]  ;;  %v6373_v16 = vor.u32 %v9464_v9, %v6372_v8 }
  0x32   :  { %v9465_v13 = vld [vmem:[#allocation5 + $0x34] sm:$0xf0]  ;;  %v9463_v14 = vld [vmem:[#allocation5 + $0x2c] sm:$0xf]  ;;  %v6382_v15 = vld [vmem:[#allocation5 + $0x38] sm:$0xf0]  ;;  %v6377_v17 = vor.u32 %v9462_v10, %v6374_v11 }
  0x33   :  { %1697 = vmatpush.bf16.xpose.msra.mxu0 %v6437_v32  ;;  %v6381_v18 = vor.u32 %v9465_v13, %v6380_v12  ;;  %v6385_v19 = vor.u32 %v9463_v14, %v6382_v15  ;;  %v6356_v20 = vld [vmem:[#allocation5] sm:$0xf]  ;;  %v9460_v21 = vld [vmem:[#allocation5 + $0xc] sm:$0xf0]  ;;  %v9458_v22 = vld [vmem:[#allocation5 + $0x4] sm:$0xf] }
  0x34   :  { %1710 = vmatpush.bf16.xpose.msra.mxu1 %v6441_v33  ;;  %v6358_v23 = vld [vmem:[#allocation5 + $0x10] sm:$0xf0]  ;;  %v6364_v24 = vld [vmem:[#allocation5 + $0x8] sm:$0xf]  ;;  %v9461_v25 = vld [vmem:[#allocation5 + $0x14] sm:$0xf0]  ;;  %v6357_v31 = vor.u32 %v9460_v21, %v6356_v20 }
  0x35   :  { %1723 = vmatpush.bf16.xpose.msra.mxu2 %v6445_v34  ;;  %1736 = vmatpush.bf16.xpose.msra.mxu3 %v6449_v35  ;;  %v9459_v26 = vld [vmem:[#allocation5 + $0xc] sm:$0xf]  ;;  %v6366_v27 = vld [vmem:[#allocation5 + $0x18] sm:$0xf0]  ;;  %v6596_v28 = vld [vmem:[#allocation5 + $0x1e0] sm:$0xf]  ;;  %v6361_v35 = vor.u32 %v9458_v22, %v6358_v23  ;;  %v6365_v36 = vor.u32 %v9461_v25, %v6364_v24 }
  0x36   :  { %v9520_v29 = vld [vmem:[#allocation5 + $0x1ec] sm:$0xf0]  ;;  %v9518_v30 = vld [vmem:[#allocation5 + $0x1e4] sm:$0xf]  ;;  %v6598_v32 = vld [vmem:[#allocation5 + $0x1f0] sm:$0xf0]  ;;  %v6369_v39 = vor.u32 %v9459_v26, %v6366_v27 }
  0x37   :  { %v6604_v33 = vld [vmem:[#allocation5 + $0x1e8] sm:$0xf]  ;;  %v9521_v34 = vld [vmem:[#allocation5 + $0x1f4] sm:$0xf0]  ;;  %v9519_v37 = vld [vmem:[#allocation5 + $0x1ec] sm:$0xf]  ;;  %v6597_v40 = vor.u32 %v9520_v29, %v6596_v28  ;;  %v6601_v41 = vor.u32 %v9518_v30, %v6598_v32 }
  0x38   :  { %v6606_v38 = vld [vmem:[#allocation5 + $0x1f8] sm:$0xf0]  ;;  %v6605_v42 = vor.u32 %v9521_v34, %v6604_v33  ;;  %v6588_v48 = vld [vmem:[#allocation5 + $0x1c8] sm:$0xf]  ;;  %v9517_v49 = vld [vmem:[#allocation5 + $0x1d4] sm:$0xf0] }
  0x39   :  { %v6609_v43 = vor.u32 %v9519_v37, %v6606_v38  ;;  %v9515_v50 = vld [vmem:[#allocation5 + $0x1cc] sm:$0xf]  ;;  %v6590_v51 = vld [vmem:[#allocation5 + $0x1d8] sm:$0xf0]  ;;  %v6589_v54 = vor.u32 %v9517_v49, %v6588_v48  ;;  %v6572_v60 = vld [vmem:[#allocation5 + $0x1a8] sm:$0xf] }
  0x3a   :  { %v6593_v55 = vor.u32 %v9515_v50, %v6590_v51  ;;  %v9513_v61 = vld [vmem:[#allocation5 + $0x1b4] sm:$0xf0]  ;;  %v9511_v62 = vld [vmem:[#allocation5 + $0x1ac] sm:$0xf]  ;;  %v6574_v63 = vld [vmem:[#allocation5 + $0x1b8] sm:$0xf0] }
  0x3b   :  { %1698 = vmatpush.bf16.xpose.msra.mxu0 %v6421_v44  ;;  %v6580_v44 = vld [vmem:[#allocation5 + $0x1c0] sm:$0xf]  ;;  %v6573_v2 = vor.u32 %v9513_v61, %v6572_v60  ;;  %v6577_v3 = vor.u32 %v9511_v62, %v6574_v63  ;;  %v6556_v8 = vld [vmem:[#allocation5 + $0x188] sm:$0xf]  ;;  %v9509_v9 = vld [vmem:[#allocation5 + $0x194] sm:$0xf0] }
  0x3c   :  { %1711 = vmatpush.bf16.xpose.msra.mxu1 %v6425_v45  ;;  %v9516_v45 = vld [vmem:[#allocation5 + $0x1cc] sm:$0xf0]  ;;  %v133_v12 = vld [vmem:[#allocation2] sm:$0xff]  ;;  %v136_v13 = vld [vmem:[#allocation2 + $0x18] sm:$0xff]  ;;  %v6557_v22 = vor.u32 %v9509_v9, %v6556_v8  ;;  %s6321_s22 = sshll.u32 %s10935_s8, 4  ;;  %s10587_s1 = smov [#allocation15]   ;;  %s6322_s22 = int_to_ptr.hbm [resolvable:$true] %s6321_s22 }
  0x3d   :  { %1724 = vmatpush.bf16.xpose.msra.mxu2 %v6429_v46  ;;  %1737 = vmatpush.bf16.xpose.msra.mxu3 %v6433_v47  ;;  %v9514_v46 = vld [vmem:[#allocation5 + $0x1c4] sm:$0xf]  ;;  %v6582_v47 = vld [vmem:[#allocation5 + $0x1d0] sm:$0xf0]  ;;  %v6581_v52 = vor.u32 %v9516_v45, %v6580_v44  ;;  %v134_v14 = vld [vmem:[#allocation2 + $0x8] sm:$0xff]  ;;  %s6319_s23 = sshll.u32 %s10587_s1, 4  ;;  %s6320_s23 = int_to_ptr.vmem [resolvable:$true] %s6319_s23 }
  0x3e   :  { %v6585_v53 = vor.u32 %v9514_v46, %v6582_v47  ;;  %v135_v10 = vld [vmem:[#allocation2 + $0x10] sm:$0xff]  ;;  %v9507_v15 = vld [vmem:[#allocation5 + $0x18c] sm:$0xf]  ;;  %v6532_v24 = vld [vmem:[#allocation5 + $0x160] sm:$0xf]  ;;  %s6310_s26 = sshll.u32 %s10934_s7, 4  ;;  %s6311_s26 = int_to_ptr.hbm [resolvable:$true] %s6310_s26 }
  0x3f   :  { %v10661_v11 = vpack.c.bf16 %v135_v10, %v135_v10  ;;  %v9504_v25 = vld [vmem:[#allocation5 + $0x16c] sm:$0xf0]  ;;  %v9502_v26 = vld [vmem:[#allocation5 + $0x164] sm:$0xf]  ;;  %v6534_v27 = vld [vmem:[#allocation5 + $0x170] sm:$0xf0] }
  0x40   :  { %v6540_v28 = vld [vmem:[#allocation5 + $0x168] sm:$0xf]  ;;  %v9505_v29 = vld [vmem:[#allocation5 + $0x174] sm:$0xf0]  ;;  %v9503_v30 = vld [vmem:[#allocation5 + $0x16c] sm:$0xf]  ;;  %v6533_v32 = vor.u32 %v9504_v25, %v6532_v24  ;;  %v6537_v33 = vor.u32 %v9502_v26, %v6534_v27 }
  0x41   :  { %v6541_v34 = vor.u32 %v9505_v29, %v6540_v28  ;;  %v9500_v37 = vld [vmem:[#allocation5 + $0x14c] sm:$0xf0]  ;;  %v9498_v38 = vld [vmem:[#allocation5 + $0x144] sm:$0xf]  ;;  %v6500_v48 = vld [vmem:[#allocation5 + $0x120] sm:$0xf] }
  0x42   :  { %v9496_v49 = vld [vmem:[#allocation5 + $0x12c] sm:$0xf0]  ;;  %v9494_v50 = vld [vmem:[#allocation5 + $0x124] sm:$0xf]  ;;  %v6502_v51 = vld [vmem:[#allocation5 + $0x130] sm:$0xf0] }
  0x43   :  { %1699 = vmatpush.bf16.xpose.msra.mxu0 %v6405_v56  ;;  %v6564_v56 = vld [vmem:[#allocation5 + $0x1a0] sm:$0xf]  ;;  %v9492_v61 = vld [vmem:[#allocation5 + $0x10c] sm:$0xf0]  ;;  %v9490_v62 = vld [vmem:[#allocation5 + $0x104] sm:$0xf] }
  0x44   :  { %1712 = vmatpush.bf16.xpose.msra.mxu1 %v6409_v57  ;;  %v9512_v57 = vld [vmem:[#allocation5 + $0x1ac] sm:$0xf0]  ;;  %v6484_v60 = vld [vmem:[#allocation5 + $0x100] sm:$0xf]  ;;  %v6486_v63 = vld [vmem:[#allocation5 + $0x110] sm:$0xf0] }
  0x45   :  { %1725 = vmatpush.bf16.xpose.msra.mxu2 %v6413_v58  ;;  %1738 = vmatpush.bf16.xpose.msra.mxu3 %v6417_v59  ;;  %v9510_v58 = vld [vmem:[#allocation5 + $0x1a4] sm:$0xf]  ;;  %v6566_v59 = vld [vmem:[#allocation5 + $0x1b0] sm:$0xf0]  ;;  %v6565_v0 = vor.u32 %v9512_v57, %v6564_v56  ;;  %v6501_v56 = vor.u32 %v9496_v49, %v6500_v48  ;;  %v6505_v57 = vor.u32 %v9494_v50, %v6502_v51  ;;  %v6732_v9 = vld [vmem:[#allocation5 + $0x2e8] sm:$0xf] }
  0x46   :  { %v6569_v1 = vor.u32 %v9510_v58, %v6566_v59  ;;  %v6726_v8 = vld [vmem:[#allocation5 + $0x2f0] sm:$0xf0]  ;;  %v9553_v10 = vld [vmem:[#allocation5 + $0x2f4] sm:$0xf0]  ;;  %v6708_v24 = vld [vmem:[#allocation5 + $0x2c0] sm:$0xf] }
  0x47   :  { %v9548_v25 = vld [vmem:[#allocation5 + $0x2cc] sm:$0xf0]  ;;  %v9546_v26 = vld [vmem:[#allocation5 + $0x2c4] sm:$0xf]  ;;  %v6710_v27 = vld [vmem:[#allocation5 + $0x2d0] sm:$0xf0] }
  0x48   :  { %v6716_v28 = vld [vmem:[#allocation5 + $0x2c8] sm:$0xf]  ;;  %v9549_v29 = vld [vmem:[#allocation5 + $0x2d4] sm:$0xf0]  ;;  %v6676_v48 = vld [vmem:[#allocation5 + $0x280] sm:$0xf] }
  0x49   :  { %v9540_v49 = vld [vmem:[#allocation5 + $0x28c] sm:$0xf0]  ;;  %v9538_v50 = vld [vmem:[#allocation5 + $0x284] sm:$0xf]  ;;  %v6678_v51 = vld [vmem:[#allocation5 + $0x290] sm:$0xf0] }
  0x4a   :  { %s10588_s27 = smov [#allocation14]   ;;  %s10589_s28 = smov [#allocation17]   ;;  %vm6301_vm0 = vcmask 80896  }
  0x4b   :  { %1700 = vmatpush.bf16.xpose.msra.mxu0 %v6389_v4  ;;  %v6548_v4 = vld [vmem:[#allocation5 + $0x180] sm:$0xf]  ;;  %s6308_s3 = sshll.u32 %s10588_s27, 4  ;;  %s6330_s8 = sshll.u32 %s10589_s28, 4  ;;  %s6309_s3 = int_to_ptr.vmem [resolvable:$true] %s6308_s3  ;;  %s6331_s8 = int_to_ptr.vmem [resolvable:$true] %s6330_s8 }
  0x4c   :  { %1713 = vmatpush.bf16.xpose.msra.mxu1 %v6393_v5  ;;  %v9508_v5 = vld [vmem:[#allocation5 + $0x18c] sm:$0xf0]  ;;  %s6332_s10 = sshll.u32 %s10936_s9, 4  ;;  %s6333_s10 = int_to_ptr.hbm [resolvable:$true] %s6332_s10 }
  0x4d   :  { %1726 = vmatpush.bf16.xpose.msra.mxu2 %v6397_v6  ;;  %1739 = vmatpush.bf16.xpose.msra.mxu3 %v6401_v7  ;;  %v9506_v6 = vld [vmem:[#allocation5 + $0x184] sm:$0xf]  ;;  %v6550_v7 = vld [vmem:[#allocation5 + $0x190] sm:$0xf0]  ;;  %v6549_v20 = vor.u32 %v9508_v5, %v6548_v4  ;;  %v6724_v4 = vld [vmem:[#allocation5 + $0x2e0] sm:$0xf] }
  0x4e   :  { %v6553_v21 = vor.u32 %v9506_v6, %v6550_v7  ;;  %v9552_v5 = vld [vmem:[#allocation5 + $0x2ec] sm:$0xf0]  ;;  %v9550_v6 = vld [vmem:[#allocation5 + $0x2e4] sm:$0xf]  ;;  %v6485_v7 = vor.u32 %v9492_v61, %v6484_v60  ;;  %v6660_v60 = vld [vmem:[#allocation5 + $0x260] sm:$0xf] }
  0x4f   :  { %v9536_v61 = vld [vmem:[#allocation5 + $0x26c] sm:$0xf0] }
  0x53   :  { %1701 = vmatpush.bf16.xpose.msra.mxu0 %v6373_v16  ;;  %v6558_v16 = vld [vmem:[#allocation5 + $0x198] sm:$0xf0] }
  0x54   :  { %1714 = vmatpush.bf16.xpose.msra.mxu1 %v6377_v17  ;;  %v10663_v17 = vpack.c.bf16 %v133_v12, %v133_v12  ;;  %v6561_v23 = vor.u32 %v9507_v15, %v6558_v16  ;;  %v6489_v12 = vor.u32 %v9490_v62, %v6486_v63  ;;  %v6734_v15 = vld [vmem:[#allocation5 + $0x2f8] sm:$0xf0]  ;;  %v9534_v62 = vld [vmem:[#allocation5 + $0x264] sm:$0xf]  ;;  %v6662_v63 = vld [vmem:[#allocation5 + $0x270] sm:$0xf0] }
  0x55   :  { %1727 = vmatpush.bf16.xpose.msra.mxu2 %v6381_v18  ;;  %1740 = vmatpush.bf16.xpose.msra.mxu3 %v6385_v19  ;;  %v10665_v18 = vpack.c.bf16 %v136_v13, %v136_v13  ;;  %v10667_v19 = vpack.c.bf16 %v134_v14, %v134_v14  ;;  %v9551_v14 = vld [vmem:[#allocation5 + $0x2ec] sm:$0xf] }
  0x5b   :  { %1702 = vmatpush.bf16.xpose.msra.mxu0 %v6357_v31  ;;  %v6542_v31 = vld [vmem:[#allocation5 + $0x178] sm:$0xf0] }
  0x5c   :  { %1715 = vmatpush.bf16.xpose.msra.mxu1 %v6361_v35  ;;  %v6545_v35 = vor.u32 %v9503_v30, %v6542_v31  ;;  %v9547_v30 = vld [vmem:[#allocation5 + $0x2cc] sm:$0xf]  ;;  %v6718_v31 = vld [vmem:[#allocation5 + $0x2d8] sm:$0xf0] }
  0x5d   :  { %1728 = vmatpush.bf16.xpose.msra.mxu2 %v6365_v36  ;;  %1741 = vmatpush.bf16.xpose.msra.mxu3 %v6369_v39  ;;  %v6516_v36 = vld [vmem:[#allocation5 + $0x140] sm:$0xf]  ;;  %v6518_v39 = vld [vmem:[#allocation5 + $0x150] sm:$0xf0] }
  0x5e   :  { %v6517_v44 = vor.u32 %v9500_v37, %v6516_v36  ;;  %v6521_v45 = vor.u32 %v9498_v38, %v6518_v39  ;;  %v6692_v36 = vld [vmem:[#allocation5 + $0x2a0] sm:$0xf]  ;;  %v9544_v37 = vld [vmem:[#allocation5 + $0x2ac] sm:$0xf0]  ;;  %v9542_v38 = vld [vmem:[#allocation5 + $0x2a4] sm:$0xf] }
  0x5f   :  { %v6694_v39 = vld [vmem:[#allocation5 + $0x2b0] sm:$0xf0] }
  0x62   :  { %1703 = vmatmul.bf16.vlgmr.msra.gmra.mxu0 %v10663_v17 }
  0x63   :  { %1747 = vmatpush.bf16.xpose.msrb.mxu0 %v6597_v40  ;;  %1716 = vmatmul.bf16.vlgmr.msra.gmra.mxu1 %v10667_v19  ;;  %v6524_v40 = vld [vmem:[#allocation5 + $0x148] sm:$0xf] }
  0x64   :  { %1760 = vmatpush.bf16.xpose.msrb.mxu1 %v6601_v41  ;;  %1729 = vmatmul.bf16.vlgmr.msra.gmra.mxu2 %v10661_v11  ;;  %v9501_v41 = vld [vmem:[#allocation5 + $0x154] sm:$0xf0] }
  0x65   :  { %1773 = vmatpush.bf16.xpose.msrb.mxu2 %v6605_v42  ;;  %1786 = vmatpush.bf16.xpose.msrb.mxu3 %v6609_v43  ;;  %v9499_v42 = vld [vmem:[#allocation5 + $0x14c] sm:$0xf]  ;;  %v6526_v43 = vld [vmem:[#allocation5 + $0x158] sm:$0xf0]  ;;  %v6525_v46 = vor.u32 %v9501_v41, %v6524_v40  ;;  %v6700_v40 = vld [vmem:[#allocation5 + $0x2a8] sm:$0xf] }
  0x66   :  { %1742 = vmatmul.bf16.vlgmr.msra.gmra.mxu3 %v10665_v18  ;;  %v6529_v47 = vor.u32 %v9499_v42, %v6526_v43  ;;  %v9545_v41 = vld [vmem:[#allocation5 + $0x2b4] sm:$0xf0]  ;;  %v9543_v42 = vld [vmem:[#allocation5 + $0x2ac] sm:$0xf]  ;;  %v6702_v43 = vld [vmem:[#allocation5 + $0x2b8] sm:$0xf0] }
  0x6b   :  { %1748 = vmatpush.bf16.xpose.msrb.mxu0 %v6581_v52  ;;  %v6508_v52 = vld [vmem:[#allocation5 + $0x128] sm:$0xf] }
  0x6c   :  { %1761 = vmatpush.bf16.xpose.msrb.mxu1 %v6585_v53  ;;  %v9497_v53 = vld [vmem:[#allocation5 + $0x134] sm:$0xf0] }
  0x6d   :  { %1774 = vmatpush.bf16.xpose.msrb.mxu2 %v6589_v54  ;;  %1787 = vmatpush.bf16.xpose.msrb.mxu3 %v6593_v55  ;;  %v9495_v54 = vld [vmem:[#allocation5 + $0x12c] sm:$0xf]  ;;  %v6510_v55 = vld [vmem:[#allocation5 + $0x138] sm:$0xf0]  ;;  %v6509_v58 = vor.u32 %v9497_v53, %v6508_v52  ;;  %v6684_v52 = vld [vmem:[#allocation5 + $0x288] sm:$0xf] }
  0x6e   :  { %v6513_v59 = vor.u32 %v9495_v54, %v6510_v55  ;;  %v9541_v53 = vld [vmem:[#allocation5 + $0x294] sm:$0xf0]  ;;  %v9539_v54 = vld [vmem:[#allocation5 + $0x28c] sm:$0xf]  ;;  %v6686_v55 = vld [vmem:[#allocation5 + $0x298] sm:$0xf0] }
  0x73   :  { %1749 = vmatpush.bf16.xpose.msrb.mxu0 %v6565_v0  ;;  %v6492_v0 = vld [vmem:[#allocation5 + $0x108] sm:$0xf] }
  0x74   :  { %1762 = vmatpush.bf16.xpose.msrb.mxu1 %v6569_v1  ;;  %v9493_v1 = vld [vmem:[#allocation5 + $0x114] sm:$0xf0] }
  0x75   :  { %1775 = vmatpush.bf16.xpose.msrb.mxu2 %v6573_v2  ;;  %1788 = vmatpush.bf16.xpose.msrb.mxu3 %v6577_v3  ;;  %v9491_v2 = vld [vmem:[#allocation5 + $0x10c] sm:$0xf]  ;;  %v6494_v3 = vld [vmem:[#allocation5 + $0x118] sm:$0xf0]  ;;  %v6493_v13 = vor.u32 %v9493_v1, %v6492_v0  ;;  %v6668_v0 = vld [vmem:[#allocation5 + $0x268] sm:$0xf] }
  0x76   :  { %v6497_v16 = vor.u32 %v9491_v2, %v6494_v3  ;;  %v9537_v1 = vld [vmem:[#allocation5 + $0x274] sm:$0xf0]  ;;  %v9535_v2 = vld [vmem:[#allocation5 + $0x26c] sm:$0xf]  ;;  %v6670_v3 = vld [vmem:[#allocation5 + $0x278] sm:$0xf0] }
  0x7b   :  { %1750 = vmatpush.bf16.xpose.msrb.mxu0 %v6549_v20  ;;  %v6725_v20 = vor.u32 %v9552_v5, %v6724_v4  ;;  %v6661_v4 = vor.u32 %v9536_v61, %v6660_v60  ;;  %v6665_v5 = vor.u32 %v9534_v62, %v6662_v63  ;;  %v6836_v60 = vld [vmem:[#allocation5 + $0x3c0] sm:$0xf]  ;;  %v9580_v61 = vld [vmem:[#allocation5 + $0x3cc] sm:$0xf0]  ;;  %v9578_v62 = vld [vmem:[#allocation5 + $0x3c4] sm:$0xf] }
  0x7c   :  { %1763 = vmatpush.bf16.xpose.msrb.mxu1 %v6553_v21  ;;  %v6729_v21 = vor.u32 %v9550_v6, %v6726_v8  ;;  %v6669_v6 = vor.u32 %v9537_v1, %v6668_v0  ;;  %v6644_v8 = vld [vmem:[#allocation5 + $0x240] sm:$0xf]  ;;  %v6838_v63 = vld [vmem:[#allocation5 + $0x3d0] sm:$0xf0]  ;;  %v6844_v0 = vld [vmem:[#allocation5 + $0x3c8] sm:$0xf] }
  0x7d   :  { %1776 = vmatpush.bf16.xpose.msrb.mxu2 %v6557_v22  ;;  %1789 = vmatpush.bf16.xpose.msrb.mxu3 %v6561_v23  ;;  %v6733_v22 = vor.u32 %v9553_v10, %v6732_v9  ;;  %v6737_v23 = vor.u32 %v9551_v14, %v6734_v15  ;;  %v9532_v9 = vld [vmem:[#allocation5 + $0x24c] sm:$0xf0]  ;;  %v9530_v10 = vld [vmem:[#allocation5 + $0x244] sm:$0xf]  ;;  %v9533_v14 = vld [vmem:[#allocation5 + $0x254] sm:$0xf0] }
  0x7e   :  { %v9531_v15 = vld [vmem:[#allocation5 + $0x24c] sm:$0xf]  ;;  %v9581_v1 = vld [vmem:[#allocation5 + $0x3d4] sm:$0xf0] }
  0x83   :  { %1751 = vmatpush.bf16.xpose.msrb.mxu0 %v6533_v32  ;;  %v6709_v32 = vor.u32 %v9548_v25, %v6708_v24  ;;  %v6628_v24 = vld [vmem:[#allocation5 + $0x220] sm:$0xf]  ;;  %v9528_v25 = vld [vmem:[#allocation5 + $0x22c] sm:$0xf0] }
  0x84   :  { %1764 = vmatpush.bf16.xpose.msrb.mxu1 %v6537_v33  ;;  %v6713_v33 = vor.u32 %v9546_v26, %v6710_v27  ;;  %v9526_v26 = vld [vmem:[#allocation5 + $0x224] sm:$0xf]  ;;  %v6630_v27 = vld [vmem:[#allocation5 + $0x230] sm:$0xf0] }
  0x85   :  { %1777 = vmatpush.bf16.xpose.msrb.mxu2 %v6541_v34  ;;  %1790 = vmatpush.bf16.xpose.msrb.mxu3 %v6545_v35  ;;  %v6717_v34 = vor.u32 %v9549_v29, %v6716_v28  ;;  %v6721_v35 = vor.u32 %v9547_v30, %v6718_v31  ;;  %v6636_v28 = vld [vmem:[#allocation5 + $0x228] sm:$0xf]  ;;  %v9529_v29 = vld [vmem:[#allocation5 + $0x234] sm:$0xf0]  ;;  %v9527_v30 = vld [vmem:[#allocation5 + $0x22c] sm:$0xf] }
  0x86   :  { %v6638_v31 = vld [vmem:[#allocation5 + $0x238] sm:$0xf0] }
  0x8b   :  { %1752 = vmatpush.bf16.xpose.msrb.mxu0 %v6517_v44  ;;  %v6693_v44 = vor.u32 %v9544_v37, %v6692_v36  ;;  %v6612_v36 = vld [vmem:[#allocation5 + $0x200] sm:$0xf]  ;;  %v9524_v37 = vld [vmem:[#allocation5 + $0x20c] sm:$0xf0] }
  0x8c   :  { %1765 = vmatpush.bf16.xpose.msrb.mxu1 %v6521_v45  ;;  %v6697_v45 = vor.u32 %v9542_v38, %v6694_v39  ;;  %v9522_v38 = vld [vmem:[#allocation5 + $0x204] sm:$0xf]  ;;  %v6614_v39 = vld [vmem:[#allocation5 + $0x210] sm:$0xf0] }
  0x8d   :  { %1778 = vmatpush.bf16.xpose.msrb.mxu2 %v6525_v46  ;;  %1791 = vmatpush.bf16.xpose.msrb.mxu3 %v6529_v47  ;;  %v6701_v46 = vor.u32 %v9545_v41, %v6700_v40  ;;  %v6705_v47 = vor.u32 %v9543_v42, %v6702_v43  ;;  %v6620_v40 = vld [vmem:[#allocation5 + $0x208] sm:$0xf]  ;;  %v9525_v41 = vld [vmem:[#allocation5 + $0x214] sm:$0xf0]  ;;  %v9523_v42 = vld [vmem:[#allocation5 + $0x20c] sm:$0xf] }
  0x8e   :  { %v6622_v43 = vld [vmem:[#allocation5 + $0x218] sm:$0xf0] }
  0x93   :  { %1753 = vmatpush.bf16.xpose.msrb.mxu0 %v6501_v56  ;;  %v6677_v56 = vor.u32 %v9540_v49, %v6676_v48  ;;  %v6854_v48 = vld [vmem:[#allocation5 + $0x3f0] sm:$0xf0]  ;;  %v6860_v49 = vld [vmem:[#allocation5 + $0x3e8] sm:$0xf] }
  0x94   :  { %1766 = vmatpush.bf16.xpose.msrb.mxu1 %v6505_v57  ;;  %v6681_v57 = vor.u32 %v9538_v50, %v6678_v51  ;;  %v9585_v50 = vld [vmem:[#allocation5 + $0x3f4] sm:$0xf0]  ;;  %v6617_v51 = vor.u32 %v9522_v38, %v6614_v39  ;;  %v9566_v38 = vld [vmem:[#allocation5 + $0x364] sm:$0xf]  ;;  %v6790_v39 = vld [vmem:[#allocation5 + $0x370] sm:$0xf0] }
  0x95   :  { %1779 = vmatpush.bf16.xpose.msrb.mxu2 %v6509_v58  ;;  %1792 = vmatpush.bf16.xpose.msrb.mxu3 %v6513_v59  ;;  %v6685_v58 = vor.u32 %v9541_v53, %v6684_v52  ;;  %v6689_v59 = vor.u32 %v9539_v54, %v6686_v55  ;;  %v6621_v52 = vor.u32 %v9525_v41, %v6620_v40  ;;  %v9583_v53 = vld [vmem:[#allocation5 + $0x3ec] sm:$0xf]  ;;  %v6862_v54 = vld [vmem:[#allocation5 + $0x3f8] sm:$0xf0]  ;;  %v6796_v40 = vld [vmem:[#allocation5 + $0x368] sm:$0xf] }
  0x96   :  { %v6625_v55 = vor.u32 %v9523_v42, %v6622_v43  ;;  %v9569_v41 = vld [vmem:[#allocation5 + $0x374] sm:$0xf0]  ;;  %v9567_v42 = vld [vmem:[#allocation5 + $0x36c] sm:$0xf]  ;;  %v6798_v43 = vld [vmem:[#allocation5 + $0x378] sm:$0xf0] }
  0x9b   :  { %1754 = vmatpush.bf16.xpose.msrb.mxu0 %v6485_v7  ;;  %v6673_v7 = vor.u32 %v9535_v2, %v6670_v3  ;;  %v9579_v2 = vld [vmem:[#allocation5 + $0x3cc] sm:$0xf]  ;;  %v6846_v3 = vld [vmem:[#allocation5 + $0x3d8] sm:$0xf0] }
  0x9c   :  { %1767 = vmatpush.bf16.xpose.msrb.mxu1 %v6489_v12  ;;  %v6646_v12 = vld [vmem:[#allocation5 + $0x250] sm:$0xf0] }
  0x9d   :  { %1780 = vmatpush.bf16.xpose.msrb.mxu2 %v6493_v13  ;;  %1793 = vmatpush.bf16.xpose.msrb.mxu3 %v6497_v16  ;;  %v6652_v13 = vld [vmem:[#allocation5 + $0x248] sm:$0xf]  ;;  %v6654_v16 = vld [vmem:[#allocation5 + $0x258] sm:$0xf0] }
  0xa2   :  { %1755 = vmatmul.bf16.vlgmr.msrb.gmra.mxu0 %v10663_v17 }
  0xa3   :  { %1799 = vmatpush.bf16.xpose.msra.mxu0 %v6725_v20  ;;  %1768 = vmatmul.bf16.vlgmr.msrb.gmra.mxu1 %v10667_v19  ;;  %v6645_v20 = vor.u32 %v9532_v9, %v6644_v8  ;;  %v6820_v8 = vld [vmem:[#allocation5 + $0x3a0] sm:$0xf]  ;;  %v9576_v9 = vld [vmem:[#allocation5 + $0x3ac] sm:$0xf0] }
  0xa4   :  { %1812 = vmatpush.bf16.xpose.msra.mxu1 %v6729_v21  ;;  %1781 = vmatmul.bf16.vlgmr.msrb.gmra.mxu2 %v10661_v11  ;;  %v6649_v21 = vor.u32 %v9530_v10, %v6646_v12  ;;  %v9574_v10 = vld [vmem:[#allocation5 + $0x3a4] sm:$0xf]  ;;  %v6822_v12 = vld [vmem:[#allocation5 + $0x3b0] sm:$0xf0] }
  0xa5   :  { %1825 = vmatpush.bf16.xpose.msra.mxu2 %v6733_v22  ;;  %1838 = vmatpush.bf16.xpose.msra.mxu3 %v6737_v23  ;;  %v6653_v22 = vor.u32 %v9533_v14, %v6652_v13  ;;  %v6657_v23 = vor.u32 %v9531_v15, %v6654_v16  ;;  %v6828_v13 = vld [vmem:[#allocation5 + $0x3a8] sm:$0xf]  ;;  %v9577_v14 = vld [vmem:[#allocation5 + $0x3b4] sm:$0xf0]  ;;  %v9575_v15 = vld [vmem:[#allocation5 + $0x3ac] sm:$0xf] }
  0xa6   :  { %1794 = vmatmul.bf16.vlgmr.msrb.gmra.mxu3 %v10665_v18  ;;  %v6830_v16 = vld [vmem:[#allocation5 + $0x3b8] sm:$0xf0] }
  0xab   :  { %1800 = vmatpush.bf16.xpose.msra.mxu0 %v6709_v32  ;;  %v6629_v32 = vor.u32 %v9528_v25, %v6628_v24  ;;  %v6804_v24 = vld [vmem:[#allocation5 + $0x380] sm:$0xf]  ;;  %v9572_v25 = vld [vmem:[#allocation5 + $0x38c] sm:$0xf0] }
  0xac   :  { %1813 = vmatpush.bf16.xpose.msra.mxu1 %v6713_v33  ;;  %v6633_v33 = vor.u32 %v9526_v26, %v6630_v27  ;;  %v9570_v26 = vld [vmem:[#allocation5 + $0x384] sm:$0xf]  ;;  %v6806_v27 = vld [vmem:[#allocation5 + $0x390] sm:$0xf0] }
  0xad   :  { %1826 = vmatpush.bf16.xpose.msra.mxu2 %v6717_v34  ;;  %1839 = vmatpush.bf16.xpose.msra.mxu3 %v6721_v35  ;;  %v6637_v34 = vor.u32 %v9529_v29, %v6636_v28  ;;  %v6641_v35 = vor.u32 %v9527_v30, %v6638_v31  ;;  %v6812_v28 = vld [vmem:[#allocation5 + $0x388] sm:$0xf]  ;;  %v9573_v29 = vld [vmem:[#allocation5 + $0x394] sm:$0xf0]  ;;  %v9571_v30 = vld [vmem:[#allocation5 + $0x38c] sm:$0xf] }
  0xae   :  { %v6814_v31 = vld [vmem:[#allocation5 + $0x398] sm:$0xf0] }
  0xb3   :  { %1801 = vmatpush.bf16.xpose.msra.mxu0 %v6693_v44  ;;  %v6852_v44 = vld [vmem:[#allocation5 + $0x3e0] sm:$0xf] }
  0xb4   :  { %1814 = vmatpush.bf16.xpose.msra.mxu1 %v6697_v45  ;;  %v9584_v45 = vld [vmem:[#allocation5 + $0x3ec] sm:$0xf0] }
  0xb5   :  { %1827 = vmatpush.bf16.xpose.msra.mxu2 %v6701_v46  ;;  %1840 = vmatpush.bf16.xpose.msra.mxu3 %v6705_v47  ;;  %v9582_v46 = vld [vmem:[#allocation5 + $0x3e4] sm:$0xf]  ;;  %v6613_v47 = vor.u32 %v9524_v37, %v6612_v36  ;;  %v6788_v36 = vld [vmem:[#allocation5 + $0x360] sm:$0xf]  ;;  %v9568_v37 = vld [vmem:[#allocation5 + $0x36c] sm:$0xf0] }
  0xbb   :  { %1802 = vmatpush.bf16.xpose.msra.mxu0 %v6677_v56  ;;  %v6853_v56 = vor.u32 %v9584_v45, %v6852_v44  ;;  %v6789_v44 = vor.u32 %v9568_v37, %v6788_v36  ;;  %v10681_v45 = vld [vmem:[#allocation7] sm:$0xff] }
  0xbc   :  { %1815 = vmatpush.bf16.xpose.msra.mxu1 %v6681_v57  ;;  %v6857_v57 = vor.u32 %v9582_v46, %v6854_v48  ;;  %v6793_v46 = vor.u32 %v9566_v38, %v6790_v39  ;;  %v399_v48 = vperm.slane %v10681_v45, 0  ;;  %v6980_v36 = vld [vmem:[#allocation5 + $0x4e0] sm:$0xf]  ;;  %v9616_v38 = vld [vmem:[#allocation5 + $0x4ec] sm:$0xf0] }
  0xbd   :  { %1828 = vmatpush.bf16.xpose.msra.mxu2 %v6685_v58  ;;  %1841 = vmatpush.bf16.xpose.msra.mxu3 %v6689_v59  ;;  %v6861_v58 = vor.u32 %v9585_v50, %v6860_v49  ;;  %v6865_v59 = vor.u32 %v9583_v53, %v6862_v54  ;;  %v6801_v49 = vor.u32 %v9567_v42, %v6798_v43  ;;  %v6772_v53 = vld [vmem:[#allocation5 + $0x340] sm:$0xf]  ;;  %v9564_v54 = vld [vmem:[#allocation5 + $0x34c] sm:$0xf0]  ;;  %v9614_v39 = vld [vmem:[#allocation5 + $0x4e4] sm:$0xf] }
  0xbe   :  { %v6988_v42 = vld [vmem:[#allocation5 + $0x4e8] sm:$0xf]  ;;  %v9617_v43 = vld [vmem:[#allocation5 + $0x4f4] sm:$0xf0] }
  0xc3   :  { %1803 = vmatpush.bf16.xpose.msra.mxu0 %v6661_v4  ;;  %v6837_v4 = vor.u32 %v9580_v61, %v6836_v60  ;;  %v9563_v60 = vld [vmem:[#allocation5 + $0x34c] sm:$0xf]  ;;  %v6782_v61 = vld [vmem:[#allocation5 + $0x358] sm:$0xf0] }
  0xc4   :  { %1816 = vmatpush.bf16.xpose.msra.mxu1 %v6665_v5  ;;  %v6841_v5 = vor.u32 %v9578_v62, %v6838_v63  ;;  %v6773_v62 = vor.u32 %v9564_v54, %v6772_v53  ;;  %v6989_v53 = vor.u32 %v9617_v43, %v6988_v42 }
  0xc5   :  { %1829 = vmatpush.bf16.xpose.msra.mxu2 %v6669_v6  ;;  %1842 = vmatpush.bf16.xpose.msra.mxu3 %v6673_v7  ;;  %v6845_v6 = vor.u32 %v9581_v1, %v6844_v0  ;;  %v6849_v7 = vor.u32 %v9579_v2, %v6846_v3 }
  0xcb   :  { %1804 = vmatpush.bf16.xpose.msra.mxu0 %v6645_v20  ;;  %v6821_v20 = vor.u32 %v9576_v9, %v6820_v8  ;;  %v6756_v8 = vld [vmem:[#allocation5 + $0x320] sm:$0xf]  ;;  %v9560_v9 = vld [vmem:[#allocation5 + $0x32c] sm:$0xf0] }
  0xcc   :  { %1817 = vmatpush.bf16.xpose.msra.mxu1 %v6649_v21  ;;  %v6825_v21 = vor.u32 %v9574_v10, %v6822_v12  ;;  %v9558_v10 = vld [vmem:[#allocation5 + $0x324] sm:$0xf] }
  0xcd   :  { %1830 = vmatpush.bf16.xpose.msra.mxu2 %v6653_v22  ;;  %1843 = vmatpush.bf16.xpose.msra.mxu3 %v6657_v23  ;;  %v6829_v22 = vor.u32 %v9577_v14, %v6828_v13  ;;  %v6833_v23 = vor.u32 %v9575_v15, %v6830_v16  ;;  %v6758_v13 = vld [vmem:[#allocation5 + $0x330] sm:$0xf0]  ;;  %v6764_v14 = vld [vmem:[#allocation5 + $0x328] sm:$0xf]  ;;  %v9561_v15 = vld [vmem:[#allocation5 + $0x334] sm:$0xf0] }
  0xce   :  { %v9559_v16 = vld [vmem:[#allocation5 + $0x32c] sm:$0xf] }
  0xd3   :  { %1805 = vmatpush.bf16.xpose.msra.mxu0 %v6629_v32  ;;  %v6805_v32 = vor.u32 %v9572_v25, %v6804_v24  ;;  %v6761_v25 = vor.u32 %v9558_v10, %v6758_v13  ;;  %v9607_v10 = vld [vmem:[#allocation5 + $0x4ac] sm:$0xf] }
  0xd4   :  { %1818 = vmatpush.bf16.xpose.msra.mxu1 %v6633_v33  ;;  %v6809_v33 = vor.u32 %v9570_v26, %v6806_v27  ;;  %v6765_v26 = vor.u32 %v9561_v15, %v6764_v14 }
  0xd5   :  { %1831 = vmatpush.bf16.xpose.msra.mxu2 %v6637_v34  ;;  %1844 = vmatpush.bf16.xpose.msra.mxu3 %v6641_v35  ;;  %v6813_v34 = vor.u32 %v9573_v29, %v6812_v28  ;;  %v6817_v35 = vor.u32 %v9571_v30, %v6814_v31  ;;  %v6740_v28 = vld [vmem:[#allocation5 + $0x300] sm:$0xf]  ;;  %v9556_v29 = vld [vmem:[#allocation5 + $0x30c] sm:$0xf0]  ;;  %v9554_v30 = vld [vmem:[#allocation5 + $0x304] sm:$0xf] }
  0xd6   :  { %v6742_v31 = vld [vmem:[#allocation5 + $0x310] sm:$0xf0] }
  0xdb   :  { %1806 = vmatpush.bf16.xpose.msra.mxu0 %v6613_v47  ;;  %v6797_v47 = vor.u32 %v9569_v41, %v6796_v40  ;;  %v6982_v40 = vld [vmem:[#allocation5 + $0x4f0] sm:$0xf0]  ;;  %v6741_v41 = vor.u32 %v9556_v29, %v6740_v28 }
  0xdc   :  { %1819 = vmatpush.bf16.xpose.msra.mxu1 %v6617_v51 }
  0xdd   :  { %1832 = vmatpush.bf16.xpose.msra.mxu2 %v6621_v52  ;;  %1845 = vmatpush.bf16.xpose.msra.mxu3 %v6625_v55  ;;  %v9562_v55 = vld [vmem:[#allocation5 + $0x344] sm:$0xf] }
  0xdf   :  { %v1704_v50 = vpop.f32.mrf.mxu0 }
  0xe0   :  { %v1705_v51 = vadd.f32 %v1704_v50, %v399_v48  ;;  %v1717_v52 = vpop.f32.mrf.mxu1  ;;  %v9615_v48 = vld [vmem:[#allocation5 + $0x4ec] sm:$0xf] }
  0xe2   :  { %1807 = vmatmul.bf16.vlgmr.msra.gmra.mxu0 %v10663_v17 }
  0xe3   :  { %1851 = vmatpush.bf16.xpose.msrb.mxu0 %v6853_v56  ;;  %1820 = vmatmul.bf16.vlgmr.msra.gmra.mxu1 %v10667_v19  ;;  %v1718_v56 = vadd.f32 %v1717_v52, %v1705_v51  ;;  %v6981_v51 = vor.u32 %v9616_v38, %v6980_v36  ;;  %v6985_v52 = vor.u32 %v9614_v39, %v6982_v40  ;;  %v6924_v36 = vld [vmem:[#allocation5 + $0x468] sm:$0xf]  ;;  %v9599_v38 = vld [vmem:[#allocation5 + $0x46c] sm:$0xf]  ;;  %v6926_v39 = vld [vmem:[#allocation5 + $0x478] sm:$0xf0] }
  0xe4   :  { %1864 = vmatpush.bf16.xpose.msrb.mxu1 %v6857_v57  ;;  %1833 = vmatmul.bf16.vlgmr.msra.gmra.mxu2 %v10661_v11  ;;  %v6774_v57 = vld [vmem:[#allocation5 + $0x350] sm:$0xf0] }
  0xe5   :  { %1877 = vmatpush.bf16.xpose.msrb.mxu2 %v6861_v58  ;;  %1890 = vmatpush.bf16.xpose.msrb.mxu3 %v6865_v59  ;;  %v6780_v58 = vld [vmem:[#allocation5 + $0x348] sm:$0xf]  ;;  %v9565_v59 = vld [vmem:[#allocation5 + $0x354] sm:$0xf0]  ;;  %v6777_v1 = vor.u32 %v9562_v55, %v6774_v57  ;;  %v6964_v55 = vld [vmem:[#allocation5 + $0x4c0] sm:$0xf] }
  0xe6   :  { %1846 = vmatmul.bf16.vlgmr.msra.gmra.mxu3 %v10665_v18  ;;  %v6781_v2 = vor.u32 %v9565_v59, %v6780_v58  ;;  %v9610_v57 = vld [vmem:[#allocation5 + $0x4c4] sm:$0xf]  ;;  %v6966_v59 = vld [vmem:[#allocation5 + $0x4d0] sm:$0xf0] }
  0xe7   :  { %v1730_v63 = vpop.f32.mrf.mxu2 }
  0xe8   :  { %v1731_v3 = vadd.f32 %v1730_v63, %v1718_v56  ;;  %v9612_v56 = vld [vmem:[#allocation5 + $0x4cc] sm:$0xf0]  ;;  %v6974_v63 = vld [vmem:[#allocation5 + $0x4d8] sm:$0xf0] }
  0xe9   :  { %v1743_v0 = vpop.f32.mrf.mxu3 }
  0xeb   :  { %1852 = vmatpush.bf16.xpose.msrb.mxu0 %v6837_v4  ;;  %v6785_v4 = vor.u32 %v9563_v60, %v6782_v61  ;;  %v6972_v60 = vld [vmem:[#allocation5 + $0x4c8] sm:$0xf]  ;;  %v9613_v61 = vld [vmem:[#allocation5 + $0x4d4] sm:$0xf0] }
  0xec   :  { %1865 = vmatpush.bf16.xpose.msrb.mxu1 %v6841_v5  ;;  %v1706_v5 = vpop.f32.mrf.mxu0 }
  0xed   :  { %1878 = vmatpush.bf16.xpose.msrb.mxu2 %v6845_v6  ;;  %1891 = vmatpush.bf16.xpose.msrb.mxu3 %v6849_v7  ;;  %v1744_v6 = vadd.f32 %v1743_v0, %v1731_v3  ;;  %v1719_v7 = vpop.f32.mrf.mxu1  ;;  %v6965_v0 = vor.u32 %v9612_v56, %v6964_v55  ;;  %v9608_v5 = vld [vmem:[#allocation5 + $0x4ac] sm:$0xf0]  ;;  %v9597_v55 = vld [vmem:[#allocation5 + $0x454] sm:$0xf0]  ;;  %v9595_v56 = vld [vmem:[#allocation5 + $0x44c] sm:$0xf] }
  0xee   :  { %v6950_v7 = vld [vmem:[#allocation5 + $0x4b0] sm:$0xf0] }
  0xef   :  { %v2111_v12 = vsub.f32 0.0, %v1744_v6  ;;  %v9606_v6 = vld [vmem:[#allocation5 + $0x4a4] sm:$0xf] }
  0xf0   :  { %v6953_v14 = vor.u32 %v9606_v6, %v6950_v7  ;;  %v9590_v6 = vld [vmem:[#allocation5 + $0x424] sm:$0xf] }
  0xf1   :  { %v1745_v24 = vpop.f32.mrf.mxu3 }
  0xf2   :  { %v6940_v24 = vld [vmem:[#allocation5 + $0x488] sm:$0xf] }
  0xf3   :  { %1853 = vmatpush.bf16.xpose.msrb.mxu0 %v6821_v20  ;;  %v6766_v20 = vld [vmem:[#allocation5 + $0x338] sm:$0xf0] }
  0xf4   :  { %1866 = vmatpush.bf16.xpose.msrb.mxu1 %v6825_v21  ;;  %v2119_v21 = vmul.f32 1.442695, %v2111_v12  ;;  %v6769_v27 = vor.u32 %v9559_v16, %v6766_v20  ;;  %v6958_v12 = vld [vmem:[#allocation5 + $0x4b8] sm:$0xf0]  ;;  %v6932_v20 = vld [vmem:[#allocation5 + $0x480] sm:$0xf] }
  0xf5   :  { %1879 = vmatpush.bf16.xpose.msrb.mxu2 %v6829_v22  ;;  %1892 = vmatpush.bf16.xpose.msrb.mxu3 %v6833_v23  ;;  %v6757_v22 = vor.u32 %v9560_v9, %v6756_v8  ;;  %v1732_v23 = vpop.f32.mrf.mxu2  ;;  %v6956_v8 = vld [vmem:[#allocation5 + $0x4a8] sm:$0xf]  ;;  %v9609_v9 = vld [vmem:[#allocation5 + $0x4b4] sm:$0xf0]  ;;  %v6961_v16 = vor.u32 %v9607_v10, %v6958_v12  ;;  %v9591_v12 = vld [vmem:[#allocation5 + $0x42c] sm:$0xf] }
  0xf6   :  { %10249 = vpow2.f32 %v2119_v21  ;;  %v6957_v15 = vor.u32 %v9609_v9, %v6956_v8  ;;  %v9604_v21 = vld [vmem:[#allocation5 + $0x48c] sm:$0xf0]  ;;  %v6934_v23 = vld [vmem:[#allocation5 + $0x490] sm:$0xf0]  ;;  %v6892_v9 = vld [vmem:[#allocation5 + $0x428] sm:$0xf] }
  0xf7   :  { %v6933_v28 = vor.u32 %v9604_v21, %v6932_v20  ;;  %v6886_v8 = vld [vmem:[#allocation5 + $0x430] sm:$0xf0]  ;;  %v9593_v10 = vld [vmem:[#allocation5 + $0x434] sm:$0xf0] }
  0xf8   :  { %v6889_v21 = vor.u32 %v9590_v6, %v6886_v8  ;;  %v9639_v6 = vld [vmem:[#allocation5 + $0x5ac] sm:$0xf] }
  0xfb   :  { %1854 = vmatpush.bf16.xpose.msrb.mxu0 %v6805_v32  ;;  %v6748_v32 = vld [vmem:[#allocation5 + $0x308] sm:$0xf] }
  0xfc   :  { %1867 = vmatpush.bf16.xpose.msrb.mxu1 %v6809_v33  ;;  %v9557_v33 = vld [vmem:[#allocation5 + $0x314] sm:$0xf0]  ;;  %v10250_v37 = vpop.eup %10249 }
  0xfd   :  { %1880 = vmatpush.bf16.xpose.msrb.mxu2 %v6813_v34  ;;  %1893 = vmatpush.bf16.xpose.msrb.mxu3 %v6817_v35  ;;  %v9555_v34 = vld [vmem:[#allocation5 + $0x30c] sm:$0xf]  ;;  %v6750_v35 = vld [vmem:[#allocation5 + $0x318] sm:$0xf0] }
  0xfe   :  { %v6753_v50 = vor.u32 %v9555_v34, %v6750_v35  ;;  %v9598_v34 = vld [vmem:[#allocation5 + $0x464] sm:$0xf]  ;;  %v6918_v35 = vld [vmem:[#allocation5 + $0x470] sm:$0xf0] }
 0x103   :  { %1855 = vmatpush.bf16.xpose.msrb.mxu0 %v6789_v44  ;;  %v2135_v44 = vadd.f32 1.0, %v10250_v37  ;;  %v9601_v37 = vld [vmem:[#allocation5 + $0x474] sm:$0xf0] }
 0x104   :  { %1868 = vmatpush.bf16.xpose.msrb.mxu1 %v6793_v46  ;;  %v6745_v46 = vor.u32 %v9554_v30, %v6742_v31 }
 0x105   :  { %1881 = vmatpush.bf16.xpose.msrb.mxu2 %v6797_v47  ;;  %1894 = vmatpush.bf16.xpose.msrb.mxu3 %v6801_v49  ;;  %v6749_v47 = vor.u32 %v9557_v33, %v6748_v32  ;;  %v6990_v49 = vld [vmem:[#allocation5 + $0x4f8] sm:$0xf0]  ;;  %10251 = vrcp.f32 %v2135_v44  ;;  %v6916_v32 = vld [vmem:[#allocation5 + $0x460] sm:$0xf]  ;;  %v9600_v33 = vld [vmem:[#allocation5 + $0x46c] sm:$0xf0]  ;;  %v6921_v44 = vor.u32 %v9598_v34, %v6918_v35 }
 0x106   :  { %v6993_v54 = vor.u32 %v9615_v48, %v6990_v49  ;;  %v6917_v40 = vor.u32 %v9600_v33, %v6916_v32  ;;  %v6900_v49 = vld [vmem:[#allocation5 + $0x440] sm:$0xf]  ;;  %v9648_v34 = vld [vmem:[#allocation5 + $0x5ec] sm:$0xf0]  ;;  %v9646_v35 = vld [vmem:[#allocation5 + $0x5e4] sm:$0xf] }
 0x107   :  { %v7108_v32 = vld [vmem:[#allocation5 + $0x5e0] sm:$0xf] }
 0x10b   :  { %1856 = vmatpush.bf16.xpose.msrb.mxu0 %v6773_v62  ;;  %v10252_v58 = vpop.eup %10251  ;;  %v9611_v62 = vld [vmem:[#allocation5 + $0x4cc] sm:$0xf] }
 0x10c   :  { %1869 = vmatpush.bf16.xpose.msrb.mxu1 %v6777_v1  ;;  %2151 = vst [vmem:[#allocation14] sm:$0xff] %v10252_v58  ;;  %v6969_v1 = vor.u32 %v9610_v57, %v6966_v59  ;;  %v6977_v3 = vor.u32 %v9611_v62, %v6974_v63  ;;  %v6910_v57 = vld [vmem:[#allocation5 + $0x458] sm:$0xf0] }
 0x10d   :  { %1882 = vmatpush.bf16.xpose.msrb.mxu2 %v6781_v2  ;;  %1895 = vmatpush.bf16.xpose.msrb.mxu3 %v6785_v4  ;;  %v6973_v2 = vor.u32 %v9613_v61, %v6972_v60  ;;  %v6948_v4 = vld [vmem:[#allocation5 + $0x4a0] sm:$0xf] }
 0x10e   :  { %v6949_v13 = vor.u32 %v9608_v5, %v6948_v4  ;;  %v6884_v4 = vld [vmem:[#allocation5 + $0x420] sm:$0xf]  ;;  %v9592_v5 = vld [vmem:[#allocation5 + $0x42c] sm:$0xf0] }
 0x113   :  { %1857 = vmatpush.bf16.xpose.msrb.mxu0 %v6757_v22  ;;  %v9602_v22 = vld [vmem:[#allocation5 + $0x484] sm:$0xf] }
 0x114   :  { %1870 = vmatpush.bf16.xpose.msrb.mxu1 %v6761_v25  ;;  %v9605_v25 = vld [vmem:[#allocation5 + $0x494] sm:$0xf0]  ;;  %v6937_v29 = vor.u32 %v9602_v22, %v6934_v23  ;;  %v6893_v22 = vor.u32 %v9593_v10, %v6892_v9 }
 0x115   :  { %1883 = vmatpush.bf16.xpose.msrb.mxu2 %v6765_v26  ;;  %1896 = vmatpush.bf16.xpose.msrb.mxu3 %v6769_v27  ;;  %v9603_v26 = vld [vmem:[#allocation5 + $0x48c] sm:$0xf]  ;;  %v6942_v27 = vld [vmem:[#allocation5 + $0x498] sm:$0xf0]  ;;  %v6941_v30 = vor.u32 %v9605_v25, %v6940_v24  ;;  %v6868_v24 = vld [vmem:[#allocation5 + $0x400] sm:$0xf] }
 0x116   :  { %v6945_v31 = vor.u32 %v9603_v26, %v6942_v27  ;;  %v9588_v25 = vld [vmem:[#allocation5 + $0x40c] sm:$0xf0]  ;;  %v9586_v26 = vld [vmem:[#allocation5 + $0x404] sm:$0xf]  ;;  %v6870_v27 = vld [vmem:[#allocation5 + $0x410] sm:$0xf0] }
 0x11b   :  { %1858 = vmatpush.bf16.xpose.msrb.mxu0 %v6741_v41  ;;  %v400_v41 = vperm.slane %v10681_v45, 1 }
 0x11c   :  { %1871 = vmatpush.bf16.xpose.msrb.mxu1 %v6745_v46  ;;  %v6925_v46 = vor.u32 %v9601_v37, %v6924_v36  ;;  %v7110_v36 = vld [vmem:[#allocation5 + $0x5f0] sm:$0xf0]  ;;  %v6869_v37 = vor.u32 %v9588_v25, %v6868_v24 }
 0x11d   :  { %1884 = vmatpush.bf16.xpose.msrb.mxu2 %v6749_v47  ;;  %1897 = vmatpush.bf16.xpose.msrb.mxu3 %v6753_v50  ;;  %v6929_v47 = vor.u32 %v9599_v38, %v6926_v39  ;;  %v9596_v50 = vld [vmem:[#allocation5 + $0x44c] sm:$0xf0]  ;;  %v7116_v38 = vld [vmem:[#allocation5 + $0x5e8] sm:$0xf]  ;;  %v9649_v39 = vld [vmem:[#allocation5 + $0x5f4] sm:$0xf0] }
 0x11e   :  { %v6901_v58 = vor.u32 %v9596_v50, %v6900_v49  ;;  %v7117_v49 = vor.u32 %v9649_v39, %v7116_v38 }
 0x11f   :  { %v1756_v42 = vpop.f32.mrf.mxu0 }
 0x120   :  { %v1769_v43 = vpop.f32.mrf.mxu1  ;;  %v1757_v48 = vadd.f32 %v1756_v42, %v400_v41  ;;  %v6873_v41 = vor.u32 %v9586_v26, %v6870_v27 }
 0x122   :  { %1859 = vmatmul.bf16.vlgmr.msrb.gmra.mxu0 %v10663_v17 }
 0x123   :  { %1903 = vmatpush.bf16.xpose.msra.mxu0 %v6981_v51  ;;  %1872 = vmatmul.bf16.vlgmr.msrb.gmra.mxu1 %v10667_v19  ;;  %v9594_v51 = vld [vmem:[#allocation5 + $0x444] sm:$0xf] }
 0x124   :  { %1916 = vmatpush.bf16.xpose.msra.mxu1 %v6985_v52  ;;  %1885 = vmatmul.bf16.vlgmr.msrb.gmra.mxu2 %v10661_v11  ;;  %v1770_v52 = vadd.f32 %v1769_v43, %v1757_v48  ;;  %v9647_v43 = vld [vmem:[#allocation5 + $0x5ec] sm:$0xf]  ;;  %v7113_v48 = vor.u32 %v9646_v35, %v7110_v36  ;;  %v7054_v35 = vld [vmem:[#allocation5 + $0x578] sm:$0xf0] }
 0x125   :  { %1929 = vmatpush.bf16.xpose.msra.mxu2 %v6989_v53  ;;  %1942 = vmatpush.bf16.xpose.msra.mxu3 %v6993_v54  ;;  %v6902_v53 = vld [vmem:[#allocation5 + $0x450] sm:$0xf0]  ;;  %v6908_v54 = vld [vmem:[#allocation5 + $0x448] sm:$0xf] }
 0x126   :  { %1898 = vmatmul.bf16.vlgmr.msrb.gmra.mxu3 %v10665_v18  ;;  %v6905_v61 = vor.u32 %v9594_v51, %v6902_v53  ;;  %v6909_v62 = vor.u32 %v9597_v55, %v6908_v54  ;;  %v7092_v51 = vld [vmem:[#allocation5 + $0x5c0] sm:$0xf]  ;;  %v9642_v53 = vld [vmem:[#allocation5 + $0x5c4] sm:$0xf]  ;;  %v7094_v55 = vld [vmem:[#allocation5 + $0x5d0] sm:$0xf0] }
 0x127   :  { %v1782_v59 = vpop.f32.mrf.mxu2 }
 0x128   :  { %v1783_v63 = vadd.f32 %v1782_v59, %v1770_v52  ;;  %v9644_v52 = vld [vmem:[#allocation5 + $0x5cc] sm:$0xf0]  ;;  %v7102_v59 = vld [vmem:[#allocation5 + $0x5d8] sm:$0xf0] }
 0x129   :  { %v1795_v60 = vpop.f32.mrf.mxu3 }
 0x12b   :  { %1904 = vmatpush.bf16.xpose.msra.mxu0 %v6965_v0  ;;  %v1758_v0 = vpop.f32.mrf.mxu0 }
 0x12c   :  { %1917 = vmatpush.bf16.xpose.msra.mxu1 %v6969_v1  ;;  %v1771_v1 = vpop.f32.mrf.mxu1  ;;  %v7076_v0 = vld [vmem:[#allocation5 + $0x5a0] sm:$0xf] }
 0x12d   :  { %1930 = vmatpush.bf16.xpose.msra.mxu2 %v6973_v2  ;;  %1943 = vmatpush.bf16.xpose.msra.mxu3 %v6977_v3  ;;  %v6913_v2 = vor.u32 %v9595_v56, %v6910_v57  ;;  %v1796_v3 = vadd.f32 %v1795_v60, %v1783_v63  ;;  %v7100_v56 = vld [vmem:[#allocation5 + $0x5c8] sm:$0xf]  ;;  %v9645_v57 = vld [vmem:[#allocation5 + $0x5d4] sm:$0xf0]  ;;  %v7093_v60 = vor.u32 %v9644_v52, %v7092_v51  ;;  %v9640_v1 = vld [vmem:[#allocation5 + $0x5ac] sm:$0xf0] }
 0x12e   :  { %v7077_v8 = vor.u32 %v9640_v1, %v7076_v0  ;;  %v9629_v51 = vld [vmem:[#allocation5 + $0x554] sm:$0xf0]  ;;  %v9627_v52 = vld [vmem:[#allocation5 + $0x54c] sm:$0xf]  ;;  %v7012_v0 = vld [vmem:[#allocation5 + $0x520] sm:$0xf] }
 0x12f   :  { %v2112_v7 = vsub.f32 0.0, %v1796_v3  ;;  %v7078_v3 = vld [vmem:[#allocation5 + $0x5b0] sm:$0xf0]  ;;  %v9624_v1 = vld [vmem:[#allocation5 + $0x52c] sm:$0xf0] }
 0x131   :  { %v1797_v20 = vpop.f32.mrf.mxu3 }
 0x132   :  { %v7068_v20 = vld [vmem:[#allocation5 + $0x588] sm:$0xf] }
 0x133   :  { %1905 = vmatpush.bf16.xpose.msra.mxu0 %v6949_v13  ;;  %v6894_v13 = vld [vmem:[#allocation5 + $0x438] sm:$0xf0] }
 0x134   :  { %1918 = vmatpush.bf16.xpose.msra.mxu1 %v6953_v14  ;;  %v2121_v14 = vmul.f32 1.442695, %v2112_v7  ;;  %v6897_v23 = vor.u32 %v9591_v12, %v6894_v13  ;;  %v7086_v7 = vld [vmem:[#allocation5 + $0x5b8] sm:$0xf0]  ;;  %v7060_v13 = vld [vmem:[#allocation5 + $0x580] sm:$0xf] }
 0x135   :  { %1931 = vmatpush.bf16.xpose.msra.mxu2 %v6957_v15  ;;  %1944 = vmatpush.bf16.xpose.msra.mxu3 %v6961_v16  ;;  %v6885_v15 = vor.u32 %v9592_v5, %v6884_v4  ;;  %v1784_v16 = vpop.f32.mrf.mxu2  ;;  %v7084_v4 = vld [vmem:[#allocation5 + $0x5a8] sm:$0xf]  ;;  %v9641_v5 = vld [vmem:[#allocation5 + $0x5b4] sm:$0xf0]  ;;  %v7089_v12 = vor.u32 %v9639_v6, %v7086_v7  ;;  %v9623_v7 = vld [vmem:[#allocation5 + $0x52c] sm:$0xf] }
 0x136   :  { %10253 = vpow2.f32 %v2121_v14  ;;  %v7085_v10 = vor.u32 %v9641_v5, %v7084_v4  ;;  %v9636_v14 = vld [vmem:[#allocation5 + $0x58c] sm:$0xf0]  ;;  %v7062_v16 = vld [vmem:[#allocation5 + $0x590] sm:$0xf0]  ;;  %v7020_v5 = vld [vmem:[#allocation5 + $0x528] sm:$0xf] }
 0x137   :  { %v7061_v24 = vor.u32 %v9636_v14, %v7060_v13  ;;  %v7014_v4 = vld [vmem:[#allocation5 + $0x530] sm:$0xf0]  ;;  %v9625_v6 = vld [vmem:[#allocation5 + $0x534] sm:$0xf0] }
 0x13b   :  { %1906 = vmatpush.bf16.xpose.msra.mxu0 %v6933_v28  ;;  %v6876_v28 = vld [vmem:[#allocation5 + $0x408] sm:$0xf] }
 0x13c   :  { %1919 = vmatpush.bf16.xpose.msra.mxu1 %v6937_v29  ;;  %v9589_v29 = vld [vmem:[#allocation5 + $0x414] sm:$0xf0]  ;;  %v10254_v33 = vpop.eup %10253 }
 0x13d   :  { %1932 = vmatpush.bf16.xpose.msra.mxu2 %v6941_v30  ;;  %1945 = vmatpush.bf16.xpose.msra.mxu3 %v6945_v31  ;;  %v9587_v30 = vld [vmem:[#allocation5 + $0x40c] sm:$0xf]  ;;  %v6878_v31 = vld [vmem:[#allocation5 + $0x418] sm:$0xf0]  ;;  %v6877_v42 = vor.u32 %v9589_v29, %v6876_v28  ;;  %v7044_v28 = vld [vmem:[#allocation5 + $0x560] sm:$0xf] }
 0x13e   :  { %v9632_v29 = vld [vmem:[#allocation5 + $0x56c] sm:$0xf0] }
 0x13f   :  { %v7045_v36 = vor.u32 %v9632_v29, %v7044_v28  ;;  %v7236_v28 = vld [vmem:[#allocation5 + $0x6e0] sm:$0xf] }
 0x143   :  { %1907 = vmatpush.bf16.xpose.msra.mxu0 %v6917_v40  ;;  %v2136_v40 = vadd.f32 1.0, %v10254_v33  ;;  %v9633_v33 = vld [vmem:[#allocation5 + $0x574] sm:$0xf0] }
 0x144   :  { %1920 = vmatpush.bf16.xpose.msra.mxu1 %v6921_v44  ;;  %v7118_v44 = vld [vmem:[#allocation5 + $0x5f8] sm:$0xf0] }
 0x145   :  { %1933 = vmatpush.bf16.xpose.msra.mxu2 %v6925_v46  ;;  %1946 = vmatpush.bf16.xpose.msra.mxu3 %v6929_v47  ;;  %v6881_v46 = vor.u32 %v9587_v30, %v6878_v31  ;;  %v7109_v47 = vor.u32 %v9648_v34, %v7108_v32  ;;  %10255 = vrcp.f32 %v2136_v40  ;;  %v7121_v50 = vor.u32 %v9647_v43, %v7118_v44  ;;  %v9630_v30 = vld [vmem:[#allocation5 + $0x564] sm:$0xf]  ;;  %v7046_v31 = vld [vmem:[#allocation5 + $0x570] sm:$0xf0]  ;;  %v7052_v32 = vld [vmem:[#allocation5 + $0x568] sm:$0xf] }
 0x146   :  { %v9631_v34 = vld [vmem:[#allocation5 + $0x56c] sm:$0xf]  ;;  %v7049_v40 = vor.u32 %v9630_v30, %v7046_v31  ;;  %v7028_v44 = vld [vmem:[#allocation5 + $0x540] sm:$0xf]  ;;  %v9680_v30 = vld [vmem:[#allocation5 + $0x6ec] sm:$0xf0] }
 0x147   :  { %v9678_v31 = vld [vmem:[#allocation5 + $0x6e4] sm:$0xf] }
 0x14b   :  { %1908 = vmatpush.bf16.xpose.msra.mxu0 %v6901_v58  ;;  %v10256_v54 = vpop.eup %10255  ;;  %v9643_v58 = vld [vmem:[#allocation5 + $0x5cc] sm:$0xf] }
 0x14c   :  { %1921 = vmatpush.bf16.xpose.msra.mxu1 %v6905_v61  ;;  %2152 = vst [vmem:[#allocation14 + $0x8] sm:$0xff] %v10256_v54  ;;  %v7097_v61 = vor.u32 %v9642_v53, %v7094_v55  ;;  %v7105_v63 = vor.u32 %v9643_v58, %v7102_v59  ;;  %v7038_v53 = vld [vmem:[#allocation5 + $0x558] sm:$0xf0] }
 0x14d   :  { %1934 = vmatpush.bf16.xpose.msra.mxu2 %v6909_v62  ;;  %1947 = vmatpush.bf16.xpose.msra.mxu3 %v6913_v2  ;;  %v7101_v62 = vor.u32 %v9645_v57, %v7100_v56  ;;  %v9638_v2 = vld [vmem:[#allocation5 + $0x5a4] sm:$0xf] }
 0x14e   :  { %v7081_v9 = vor.u32 %v9638_v2, %v7078_v3  ;;  %v9622_v2 = vld [vmem:[#allocation5 + $0x524] sm:$0xf] }
 0x14f   :  { %v7017_v14 = vor.u32 %v9622_v2, %v7014_v4  ;;  %v9671_v2 = vld [vmem:[#allocation5 + $0x6ac] sm:$0xf] }
 0x153   :  { %1909 = vmatpush.bf16.xpose.msra.mxu0 %v6885_v15  ;;  %v9634_v15 = vld [vmem:[#allocation5 + $0x584] sm:$0xf] }
 0x154   :  { %1922 = vmatpush.bf16.xpose.msra.mxu1 %v6889_v21  ;;  %v9637_v21 = vld [vmem:[#allocation5 + $0x594] sm:$0xf0]  ;;  %v7065_v25 = vor.u32 %v9634_v15, %v7062_v16  ;;  %v7021_v15 = vor.u32 %v9625_v6, %v7020_v5 }
 0x155   :  { %1935 = vmatpush.bf16.xpose.msra.mxu2 %v6893_v22  ;;  %1948 = vmatpush.bf16.xpose.msra.mxu3 %v6897_v23  ;;  %v9635_v22 = vld [vmem:[#allocation5 + $0x58c] sm:$0xf]  ;;  %v7070_v23 = vld [vmem:[#allocation5 + $0x598] sm:$0xf0]  ;;  %v7069_v26 = vor.u32 %v9637_v21, %v7068_v20  ;;  %v6996_v20 = vld [vmem:[#allocation5 + $0x500] sm:$0xf] }
 0x156   :  { %v7073_v27 = vor.u32 %v9635_v22, %v7070_v23  ;;  %v9620_v21 = vld [vmem:[#allocation5 + $0x50c] sm:$0xf0]  ;;  %v9618_v22 = vld [vmem:[#allocation5 + $0x504] sm:$0xf]  ;;  %v6998_v23 = vld [vmem:[#allocation5 + $0x510] sm:$0xf0] }
 0x15b   :  { %1910 = vmatpush.bf16.xpose.msra.mxu0 %v6869_v37  ;;  %v401_v37 = vperm.slane %v10681_v45, 2 }
 0x15c   :  { %1923 = vmatpush.bf16.xpose.msra.mxu1 %v6873_v41  ;;  %v7053_v41 = vor.u32 %v9633_v33, %v7052_v32  ;;  %v7238_v32 = vld [vmem:[#allocation5 + $0x6f0] sm:$0xf0]  ;;  %v6997_v33 = vor.u32 %v9620_v21, %v6996_v20 }
 0x15d   :  { %1936 = vmatpush.bf16.xpose.msra.mxu2 %v6877_v42  ;;  %1949 = vmatpush.bf16.xpose.msra.mxu3 %v6881_v46  ;;  %v7057_v42 = vor.u32 %v9631_v34, %v7054_v35  ;;  %v9628_v46 = vld [vmem:[#allocation5 + $0x54c] sm:$0xf0]  ;;  %v7244_v34 = vld [vmem:[#allocation5 + $0x6e8] sm:$0xf]  ;;  %v9681_v35 = vld [vmem:[#allocation5 + $0x6f4] sm:$0xf0] }
 0x15e   :  { %v7029_v54 = vor.u32 %v9628_v46, %v7028_v44  ;;  %v7245_v44 = vor.u32 %v9681_v35, %v7244_v34 }
 0x15f   :  { %v1808_v38 = vpop.f32.mrf.mxu0 }
 0x160   :  { %v1821_v39 = vpop.f32.mrf.mxu1  ;;  %v1809_v43 = vadd.f32 %v1808_v38, %v401_v37  ;;  %v7001_v37 = vor.u32 %v9618_v22, %v6998_v23 }
 0x162   :  { %1911 = vmatmul.bf16.vlgmr.msra.gmra.mxu0 %v10663_v17 }
 0x163   :  { %1955 = vmatpush.bf16.xpose.msrb.mxu0 %v7109_v47  ;;  %1924 = vmatmul.bf16.vlgmr.msra.gmra.mxu1 %v10667_v19  ;;  %v9626_v47 = vld [vmem:[#allocation5 + $0x544] sm:$0xf] }
 0x164   :  { %1968 = vmatpush.bf16.xpose.msrb.mxu1 %v7113_v48  ;;  %1937 = vmatmul.bf16.vlgmr.msra.gmra.mxu2 %v10661_v11  ;;  %v1822_v48 = vadd.f32 %v1821_v39, %v1809_v43  ;;  %v9679_v39 = vld [vmem:[#allocation5 + $0x6ec] sm:$0xf]  ;;  %v7241_v43 = vor.u32 %v9678_v31, %v7238_v32  ;;  %v7182_v31 = vld [vmem:[#allocation5 + $0x678] sm:$0xf0] }
 0x165   :  { %1981 = vmatpush.bf16.xpose.msrb.mxu2 %v7117_v49  ;;  %1994 = vmatpush.bf16.xpose.msrb.mxu3 %v7121_v50  ;;  %v7030_v49 = vld [vmem:[#allocation5 + $0x550] sm:$0xf0]  ;;  %v7036_v50 = vld [vmem:[#allocation5 + $0x548] sm:$0xf] }
 0x166   :  { %1950 = vmatmul.bf16.vlgmr.msra.gmra.mxu3 %v10665_v18  ;;  %v7033_v57 = vor.u32 %v9626_v47, %v7030_v49  ;;  %v7037_v58 = vor.u32 %v9629_v51, %v7036_v50  ;;  %v7220_v47 = vld [vmem:[#allocation5 + $0x6c0] sm:$0xf]  ;;  %v9674_v49 = vld [vmem:[#allocation5 + $0x6c4] sm:$0xf]  ;;  %v7222_v51 = vld [vmem:[#allocation5 + $0x6d0] sm:$0xf0] }
 0x167   :  { %v1834_v55 = vpop.f32.mrf.mxu2 }
 0x168   :  { %v1835_v59 = vadd.f32 %v1834_v55, %v1822_v48  ;;  %v9676_v48 = vld [vmem:[#allocation5 + $0x6cc] sm:$0xf0]  ;;  %v7230_v55 = vld [vmem:[#allocation5 + $0x6d8] sm:$0xf0] }
 0x169   :  { %v1847_v56 = vpop.f32.mrf.mxu3 }
 0x16b   :  { %1956 = vmatpush.bf16.xpose.msrb.mxu0 %v7093_v60  ;;  %v1810_v60 = vpop.f32.mrf.mxu0 }
 0x16c   :  { %1969 = vmatpush.bf16.xpose.msrb.mxu1 %v7097_v61  ;;  %v1823_v61 = vpop.f32.mrf.mxu1  ;;  %v7204_v60 = vld [vmem:[#allocation5 + $0x6a0] sm:$0xf] }
 0x16d   :  { %1982 = vmatpush.bf16.xpose.msrb.mxu2 %v7101_v62  ;;  %1995 = vmatpush.bf16.xpose.msrb.mxu3 %v7105_v63  ;;  %v7041_v62 = vor.u32 %v9627_v52, %v7038_v53  ;;  %v1848_v63 = vadd.f32 %v1847_v56, %v1835_v59  ;;  %v7228_v52 = vld [vmem:[#allocation5 + $0x6c8] sm:$0xf]  ;;  %v9677_v53 = vld [vmem:[#allocation5 + $0x6d4] sm:$0xf0]  ;;  %v7221_v56 = vor.u32 %v9676_v48, %v7220_v47  ;;  %v9672_v61 = vld [vmem:[#allocation5 + $0x6ac] sm:$0xf0] }
 0x16e   :  { %v7205_v4 = vor.u32 %v9672_v61, %v7204_v60  ;;  %v9661_v47 = vld [vmem:[#allocation5 + $0x654] sm:$0xf0]  ;;  %v9659_v48 = vld [vmem:[#allocation5 + $0x64c] sm:$0xf]  ;;  %v7140_v60 = vld [vmem:[#allocation5 + $0x620] sm:$0xf] }
 0x16f   :  { %v2113_v3 = vsub.f32 0.0, %v1848_v63  ;;  %v7206_v63 = vld [vmem:[#allocation5 + $0x6b0] sm:$0xf0]  ;;  %v9656_v61 = vld [vmem:[#allocation5 + $0x62c] sm:$0xf0] }
 0x171   :  { %v1849_v13 = vpop.f32.mrf.mxu3 }
 0x172   :  { %v7196_v13 = vld [vmem:[#allocation5 + $0x688] sm:$0xf] }
 0x173   :  { %1957 = vmatpush.bf16.xpose.msrb.mxu0 %v7077_v8  ;;  %v7022_v8 = vld [vmem:[#allocation5 + $0x538] sm:$0xf0] }
 0x174   :  { %1970 = vmatpush.bf16.xpose.msrb.mxu1 %v7081_v9  ;;  %v2123_v9 = vmul.f32 1.442695, %v2113_v3  ;;  %v7025_v16 = vor.u32 %v9623_v7, %v7022_v8  ;;  %v7214_v3 = vld [vmem:[#allocation5 + $0x6b8] sm:$0xf0]  ;;  %v7188_v8 = vld [vmem:[#allocation5 + $0x680] sm:$0xf] }
 0x175   :  { %1983 = vmatpush.bf16.xpose.msrb.mxu2 %v7085_v10  ;;  %1996 = vmatpush.bf16.xpose.msrb.mxu3 %v7089_v12  ;;  %v7013_v10 = vor.u32 %v9624_v1, %v7012_v0  ;;  %v1836_v12 = vpop.f32.mrf.mxu2  ;;  %v7212_v0 = vld [vmem:[#allocation5 + $0x6a8] sm:$0xf]  ;;  %v9673_v1 = vld [vmem:[#allocation5 + $0x6b4] sm:$0xf0]  ;;  %v7217_v7 = vor.u32 %v9671_v2, %v7214_v3  ;;  %v9655_v3 = vld [vmem:[#allocation5 + $0x62c] sm:$0xf] }
 0x176   :  { %10257 = vpow2.f32 %v2123_v9  ;;  %v7213_v6 = vor.u32 %v9673_v1, %v7212_v0  ;;  %v9668_v9 = vld [vmem:[#allocation5 + $0x68c] sm:$0xf0]  ;;  %v7190_v12 = vld [vmem:[#allocation5 + $0x690] sm:$0xf0]  ;;  %v7148_v1 = vld [vmem:[#allocation5 + $0x628] sm:$0xf] }
 0x177   :  { %v7189_v20 = vor.u32 %v9668_v9, %v7188_v8  ;;  %v7142_v0 = vld [vmem:[#allocation5 + $0x630] sm:$0xf0]  ;;  %v9657_v2 = vld [vmem:[#allocation5 + $0x634] sm:$0xf0] }
 0x17b   :  { %1958 = vmatpush.bf16.xpose.msrb.mxu0 %v7061_v24  ;;  %v7004_v24 = vld [vmem:[#allocation5 + $0x508] sm:$0xf] }
 0x17c   :  { %1971 = vmatpush.bf16.xpose.msrb.mxu1 %v7065_v25  ;;  %v9621_v25 = vld [vmem:[#allocation5 + $0x514] sm:$0xf0]  ;;  %v10258_v29 = vpop.eup %10257 }
 0x17d   :  { %1984 = vmatpush.bf16.xpose.msrb.mxu2 %v7069_v26  ;;  %1997 = vmatpush.bf16.xpose.msrb.mxu3 %v7073_v27  ;;  %v9619_v26 = vld [vmem:[#allocation5 + $0x50c] sm:$0xf]  ;;  %v7006_v27 = vld [vmem:[#allocation5 + $0x518] sm:$0xf0]  ;;  %v7005_v38 = vor.u32 %v9621_v25, %v7004_v24  ;;  %v7172_v24 = vld [vmem:[#allocation5 + $0x660] sm:$0xf] }
 0x17e   :  { %v9664_v25 = vld [vmem:[#allocation5 + $0x66c] sm:$0xf0] }
 0x17f   :  { %v7173_v32 = vor.u32 %v9664_v25, %v7172_v24  ;;  %v7364_v24 = vld [vmem:[#allocation5 + $0x7e0] sm:$0xf] }
 0x183   :  { %1959 = vmatpush.bf16.xpose.msrb.mxu0 %v7045_v36  ;;  %v2137_v36 = vadd.f32 1.0, %v10258_v29  ;;  %v9665_v29 = vld [vmem:[#allocation5 + $0x674] sm:$0xf0] }
 0x184   :  { %1972 = vmatpush.bf16.xpose.msrb.mxu1 %v7049_v40  ;;  %v7246_v40 = vld [vmem:[#allocation5 + $0x6f8] sm:$0xf0] }
 0x185   :  { %1985 = vmatpush.bf16.xpose.msrb.mxu2 %v7053_v41  ;;  %1998 = vmatpush.bf16.xpose.msrb.mxu3 %v7057_v42  ;;  %v7009_v41 = vor.u32 %v9619_v26, %v7006_v27  ;;  %v7237_v42 = vor.u32 %v9680_v30, %v7236_v28  ;;  %10259 = vrcp.f32 %v2137_v36  ;;  %v7249_v46 = vor.u32 %v9679_v39, %v7246_v40  ;;  %v9662_v26 = vld [vmem:[#allocation5 + $0x664] sm:$0xf]  ;;  %v7174_v27 = vld [vmem:[#allocation5 + $0x670] sm:$0xf0]  ;;  %v7180_v28 = vld [vmem:[#allocation5 + $0x668] sm:$0xf] }
 0x186   :  { %v9663_v30 = vld [vmem:[#allocation5 + $0x66c] sm:$0xf]  ;;  %v7177_v36 = vor.u32 %v9662_v26, %v7174_v27  ;;  %v7156_v40 = vld [vmem:[#allocation5 + $0x640] sm:$0xf]  ;;  %v9712_v26 = vld [vmem:[#allocation5 + $0x7ec] sm:$0xf0] }
 0x187   :  { %v9710_v27 = vld [vmem:[#allocation5 + $0x7e4] sm:$0xf] }
 0x18b   :  { %1960 = vmatpush.bf16.xpose.msrb.mxu0 %v7029_v54  ;;  %v10694_v50 = vpop.eup %10259  ;;  %v9675_v54 = vld [vmem:[#allocation5 + $0x6cc] sm:$0xf] }
 0x18c   :  { %1973 = vmatpush.bf16.xpose.msrb.mxu1 %v7033_v57  ;;  %2153 = vst [vmem:[#allocation14 + $0x10] sm:$0xff] %v10694_v50  ;;  %v7225_v57 = vor.u32 %v9674_v49, %v7222_v51  ;;  %v7233_v59 = vor.u32 %v9675_v54, %v7230_v55  ;;  %v7166_v49 = vld [vmem:[#allocation5 + $0x658] sm:$0xf0] }
 0x18d   :  { %1986 = vmatpush.bf16.xpose.msrb.mxu2 %v7037_v58  ;;  %1999 = vmatpush.bf16.xpose.msrb.mxu3 %v7041_v62  ;;  %v7229_v58 = vor.u32 %v9677_v53, %v7228_v52  ;;  %v9670_v62 = vld [vmem:[#allocation5 + $0x6a4] sm:$0xf] }
 0x18e   :  { %v7209_v5 = vor.u32 %v9670_v62, %v7206_v63  ;;  %v9654_v62 = vld [vmem:[#allocation5 + $0x624] sm:$0xf] }
 0x18f   :  { %v7145_v9 = vor.u32 %v9654_v62, %v7142_v0  ;;  %v9703_v62 = vld [vmem:[#allocation5 + $0x7ac] sm:$0xf] }
 0x193   :  { %1961 = vmatpush.bf16.xpose.msrb.mxu0 %v7013_v10  ;;  %v9666_v10 = vld [vmem:[#allocation5 + $0x684] sm:$0xf] }
 0x194   :  { %1974 = vmatpush.bf16.xpose.msrb.mxu1 %v7017_v14  ;;  %v9669_v14 = vld [vmem:[#allocation5 + $0x694] sm:$0xf0]  ;;  %v7193_v21 = vor.u32 %v9666_v10, %v7190_v12  ;;  %v7149_v10 = vor.u32 %v9657_v2, %v7148_v1 }
 0x195   :  { %1987 = vmatpush.bf16.xpose.msrb.mxu2 %v7021_v15  ;;  %2000 = vmatpush.bf16.xpose.msrb.mxu3 %v7025_v16  ;;  %v9667_v15 = vld [vmem:[#allocation5 + $0x68c] sm:$0xf]  ;;  %v7198_v16 = vld [vmem:[#allocation5 + $0x698] sm:$0xf0]  ;;  %v7197_v22 = vor.u32 %v9669_v14, %v7196_v13  ;;  %v7124_v13 = vld [vmem:[#allocation5 + $0x600] sm:$0xf] }
 0x196   :  { %v7201_v23 = vor.u32 %v9667_v15, %v7198_v16  ;;  %v9652_v14 = vld [vmem:[#allocation5 + $0x60c] sm:$0xf0]  ;;  %v9650_v15 = vld [vmem:[#allocation5 + $0x604] sm:$0xf]  ;;  %v7126_v16 = vld [vmem:[#allocation5 + $0x610] sm:$0xf0] }
 0x19b   :  { %1962 = vmatpush.bf16.xpose.msrb.mxu0 %v6997_v33  ;;  %v402_v33 = vperm.slane %v10681_v45, 3 }
 0x19c   :  { %1975 = vmatpush.bf16.xpose.msrb.mxu1 %v7001_v37  ;;  %v7181_v37 = vor.u32 %v9665_v29, %v7180_v28  ;;  %v7366_v28 = vld [vmem:[#allocation5 + $0x7f0] sm:$0xf0]  ;;  %v7125_v29 = vor.u32 %v9652_v14, %v7124_v13 }
 0x19d   :  { %1988 = vmatpush.bf16.xpose.msrb.mxu2 %v7005_v38  ;;  %2001 = vmatpush.bf16.xpose.msrb.mxu3 %v7009_v41  ;;  %v7185_v38 = vor.u32 %v9663_v30, %v7182_v31  ;;  %v9660_v41 = vld [vmem:[#allocation5 + $0x64c] sm:$0xf0]  ;;  %v7372_v30 = vld [vmem:[#allocation5 + $0x7e8] sm:$0xf]  ;;  %v9713_v31 = vld [vmem:[#allocation5 + $0x7f4] sm:$0xf0] }
 0x19e   :  { %v7157_v45 = vor.u32 %v9660_v41, %v7156_v40  ;;  %v7373_v40 = vor.u32 %v9713_v31, %v7372_v30 }
 0x19f   :  { %v1860_v34 = vpop.f32.mrf.mxu0 }
 0x1a0   :  { %v1873_v35 = vpop.f32.mrf.mxu1  ;;  %v1861_v39 = vadd.f32 %v1860_v34, %v402_v33  ;;  %v7129_v33 = vor.u32 %v9650_v15, %v7126_v16 }
 0x1a2   :  { %1963 = vmatmul.bf16.vlgmr.msrb.gmra.mxu0 %v10663_v17 }
 0x1a3   :  { %2007 = vmatpush.bf16.xpose.msra.mxu0 %v7237_v42  ;;  %1976 = vmatmul.bf16.vlgmr.msrb.gmra.mxu1 %v10667_v19  ;;  %v9658_v42 = vld [vmem:[#allocation5 + $0x644] sm:$0xf] }
 0x1a4   :  { %2020 = vmatpush.bf16.xpose.msra.mxu1 %v7241_v43  ;;  %1989 = vmatmul.bf16.vlgmr.msrb.gmra.mxu2 %v10661_v11  ;;  %v1874_v43 = vadd.f32 %v1873_v35, %v1861_v39  ;;  %v9711_v35 = vld [vmem:[#allocation5 + $0x7ec] sm:$0xf]  ;;  %v7369_v39 = vor.u32 %v9710_v27, %v7366_v28  ;;  %v7310_v27 = vld [vmem:[#allocation5 + $0x778] sm:$0xf0] }
 0x1a5   :  { %2033 = vmatpush.bf16.xpose.msra.mxu2 %v7245_v44  ;;  %2046 = vmatpush.bf16.xpose.msra.mxu3 %v7249_v46  ;;  %v7158_v44 = vld [vmem:[#allocation5 + $0x650] sm:$0xf0]  ;;  %v7164_v46 = vld [vmem:[#allocation5 + $0x648] sm:$0xf] }
 0x1a6   :  { %2002 = vmatmul.bf16.vlgmr.msrb.gmra.mxu3 %v10665_v18  ;;  %v7161_v53 = vor.u32 %v9658_v42, %v7158_v44  ;;  %v7165_v54 = vor.u32 %v9661_v47, %v7164_v46  ;;  %v7348_v42 = vld [vmem:[#allocation5 + $0x7c0] sm:$0xf]  ;;  %v9706_v44 = vld [vmem:[#allocation5 + $0x7c4] sm:$0xf]  ;;  %v7350_v47 = vld [vmem:[#allocation5 + $0x7d0] sm:$0xf0] }
 0x1a7   :  { %v1886_v51 = vpop.f32.mrf.mxu2 }
 0x1a8   :  { %v1887_v55 = vadd.f32 %v1886_v51, %v1874_v43  ;;  %v9708_v43 = vld [vmem:[#allocation5 + $0x7cc] sm:$0xf0]  ;;  %v7358_v51 = vld [vmem:[#allocation5 + $0x7d8] sm:$0xf0] }
 0x1a9   :  { %v1899_v52 = vpop.f32.mrf.mxu3 }
 0x1ab   :  { %2008 = vmatpush.bf16.xpose.msra.mxu0 %v7221_v56  ;;  %v1862_v56 = vpop.f32.mrf.mxu0 }
 0x1ac   :  { %2021 = vmatpush.bf16.xpose.msra.mxu1 %v7225_v57  ;;  %v1875_v57 = vpop.f32.mrf.mxu1  ;;  %v7332_v56 = vld [vmem:[#allocation5 + $0x7a0] sm:$0xf] }
 0x1ad   :  { %2034 = vmatpush.bf16.xpose.msra.mxu2 %v7229_v58  ;;  %2047 = vmatpush.bf16.xpose.msra.mxu3 %v7233_v59  ;;  %v7169_v58 = vor.u32 %v9659_v48, %v7166_v49  ;;  %v1900_v59 = vadd.f32 %v1899_v52, %v1887_v55  ;;  %v7356_v48 = vld [vmem:[#allocation5 + $0x7c8] sm:$0xf]  ;;  %v9709_v49 = vld [vmem:[#allocation5 + $0x7d4] sm:$0xf0]  ;;  %v7349_v52 = vor.u32 %v9708_v43, %v7348_v42  ;;  %v9704_v57 = vld [vmem:[#allocation5 + $0x7ac] sm:$0xf0] }
 0x1ae   :  { %v7333_v0 = vor.u32 %v9704_v57, %v7332_v56  ;;  %v7292_v42 = vld [vmem:[#allocation5 + $0x748] sm:$0xf]  ;;  %v9693_v43 = vld [vmem:[#allocation5 + $0x754] sm:$0xf0]  ;;  %v7268_v57 = vld [vmem:[#allocation5 + $0x720] sm:$0xf] }
 0x1af   :  { %v2114_v63 = vsub.f32 0.0, %v1900_v59  ;;  %v7334_v59 = vld [vmem:[#allocation5 + $0x7b0] sm:$0xf0] }
 0x1b1   :  { %v1901_v8 = vpop.f32.mrf.mxu3 }
 0x1b2   :  { %v7324_v8 = vld [vmem:[#allocation5 + $0x788] sm:$0xf] }
 0x1b3   :  { %2009 = vmatpush.bf16.xpose.msra.mxu0 %v7205_v4  ;;  %v7150_v4 = vld [vmem:[#allocation5 + $0x638] sm:$0xf0] }
 0x1b4   :  { %2022 = vmatpush.bf16.xpose.msra.mxu1 %v7209_v5  ;;  %v2125_v5 = vmul.f32 1.442695, %v2114_v63  ;;  %v7153_v12 = vor.u32 %v9655_v3, %v7150_v4  ;;  %v7342_v63 = vld [vmem:[#allocation5 + $0x7b8] sm:$0xf0]  ;;  %v7316_v4 = vld [vmem:[#allocation5 + $0x780] sm:$0xf] }
 0x1b5   :  { %2035 = vmatpush.bf16.xpose.msra.mxu2 %v7213_v6  ;;  %2048 = vmatpush.bf16.xpose.msra.mxu3 %v7217_v7  ;;  %v7141_v6 = vor.u32 %v9656_v61, %v7140_v60  ;;  %v1888_v7 = vpop.f32.mrf.mxu2  ;;  %v7340_v60 = vld [vmem:[#allocation5 + $0x7a8] sm:$0xf]  ;;  %v9705_v61 = vld [vmem:[#allocation5 + $0x7b4] sm:$0xf0]  ;;  %v7345_v3 = vor.u32 %v9703_v62, %v7342_v63  ;;  %v7270_v62 = vld [vmem:[#allocation5 + $0x730] sm:$0xf0] }
 0x1b6   :  { %10261 = vpow2.f32 %v2125_v5  ;;  %v7341_v2 = vor.u32 %v9705_v61, %v7340_v60  ;;  %v9700_v5 = vld [vmem:[#allocation5 + $0x78c] sm:$0xf0]  ;;  %v7318_v7 = vld [vmem:[#allocation5 + $0x790] sm:$0xf0]  ;;  %v9686_v60 = vld [vmem:[#allocation5 + $0x724] sm:$0xf] }
 0x1b7   :  { %v7317_v13 = vor.u32 %v9700_v5, %v7316_v4  ;;  %v7276_v63 = vld [vmem:[#allocation5 + $0x728] sm:$0xf] }
 0x1bb   :  { %2010 = vmatpush.bf16.xpose.msra.mxu0 %v7189_v20  ;;  %v7132_v20 = vld [vmem:[#allocation5 + $0x608] sm:$0xf] }
 0x1bc   :  { %2023 = vmatpush.bf16.xpose.msra.mxu1 %v7193_v21  ;;  %v9653_v21 = vld [vmem:[#allocation5 + $0x614] sm:$0xf0]  ;;  %v10262_v25 = vpop.eup %10261 }
 0x1bd   :  { %2036 = vmatpush.bf16.xpose.msra.mxu2 %v7197_v22  ;;  %2049 = vmatpush.bf16.xpose.msra.mxu3 %v7201_v23  ;;  %v9651_v22 = vld [vmem:[#allocation5 + $0x60c] sm:$0xf]  ;;  %v7134_v23 = vld [vmem:[#allocation5 + $0x618] sm:$0xf0]  ;;  %v7133_v34 = vor.u32 %v9653_v21, %v7132_v20  ;;  %v7300_v20 = vld [vmem:[#allocation5 + $0x760] sm:$0xf] }
 0x1be   :  { %v9696_v21 = vld [vmem:[#allocation5 + $0x76c] sm:$0xf0] }
 0x1bf   :  { %v7301_v28 = vor.u32 %v9696_v21, %v7300_v20  ;;  %v9683_v20 = vld [vmem:[#allocation5 + $0x70c] sm:$0xf]  ;;  %v7262_v21 = vld [vmem:[#allocation5 + $0x718] sm:$0xf0] }
 0x1c3   :  { %2011 = vmatpush.bf16.xpose.msra.mxu0 %v7173_v32  ;;  %v2138_v32 = vadd.f32 1.0, %v10262_v25  ;;  %v9697_v25 = vld [vmem:[#allocation5 + $0x774] sm:$0xf0] }
 0x1c4   :  { %2024 = vmatpush.bf16.xpose.msra.mxu1 %v7177_v36  ;;  %v7374_v36 = vld [vmem:[#allocation5 + $0x7f8] sm:$0xf0] }
 0x1c5   :  { %2037 = vmatpush.bf16.xpose.msra.mxu2 %v7181_v37  ;;  %2050 = vmatpush.bf16.xpose.msra.mxu3 %v7185_v38  ;;  %v7137_v37 = vor.u32 %v9651_v22, %v7134_v23  ;;  %v7365_v38 = vor.u32 %v9712_v26, %v7364_v24  ;;  %10263 = vrcp.f32 %v2138_v32  ;;  %v7377_v41 = vor.u32 %v9711_v35, %v7374_v36  ;;  %v9694_v22 = vld [vmem:[#allocation5 + $0x764] sm:$0xf]  ;;  %v7302_v23 = vld [vmem:[#allocation5 + $0x770] sm:$0xf0]  ;;  %v7308_v24 = vld [vmem:[#allocation5 + $0x768] sm:$0xf] }
 0x1c6   :  { %v9695_v26 = vld [vmem:[#allocation5 + $0x76c] sm:$0xf]  ;;  %v7305_v32 = vor.u32 %v9694_v22, %v7302_v23  ;;  %v7604_v22 = vld [vmem:[#allocation8 + $0x1c0] sm:$0xf] }
 0x1cb   :  { %2012 = vmatpush.bf16.xpose.msra.mxu0 %v7157_v45  ;;  %v10702_v46 = vpop.eup %10263  ;;  %v9707_v45 = vld [vmem:[#allocation5 + $0x7cc] sm:$0xf] }
 0x1cc   :  { %2025 = vmatpush.bf16.xpose.msra.mxu1 %v7161_v53  ;;  %2154 = vst [vmem:[#allocation14 + $0x18] sm:$0xff] %v10702_v46  ;;  %v7353_v53 = vor.u32 %v9706_v44, %v7350_v47  ;;  %v7361_v55 = vor.u32 %v9707_v45, %v7358_v51  ;;  %v9691_v44 = vld [vmem:[#allocation5 + $0x74c] sm:$0xf]  ;;  %v7294_v47 = vld [vmem:[#allocation5 + $0x758] sm:$0xf0] }
 0x1cd   :  { %2038 = vmatpush.bf16.xpose.msra.mxu2 %v7165_v54  ;;  %2051 = vmatpush.bf16.xpose.msra.mxu3 %v7169_v58  ;;  %v7357_v54 = vor.u32 %v9709_v49, %v7356_v48  ;;  %v9702_v58 = vld [vmem:[#allocation5 + $0x7a4] sm:$0xf] }
 0x1ce   :  { %v7337_v1 = vor.u32 %v9702_v58, %v7334_v59  ;;  %v9688_v59 = vld [vmem:[#allocation5 + $0x72c] sm:$0xf0] }
 0x1cf   :  { %v7269_v4 = vor.u32 %v9688_v59, %v7268_v57  ;;  %v9758_v57 = vld [vmem:[#allocation8 + $0x15c] sm:$0xf0]  ;;  %v7542_v59 = vld [vmem:[#allocation8 + $0x160] sm:$0xf0] }
 0x1d3   :  { %2013 = vmatpush.bf16.xpose.msra.mxu0 %v7141_v6  ;;  %v9698_v6 = vld [vmem:[#allocation5 + $0x784] sm:$0xf] }
 0x1d4   :  { %2026 = vmatpush.bf16.xpose.msra.mxu1 %v7145_v9  ;;  %v9701_v9 = vld [vmem:[#allocation5 + $0x794] sm:$0xf0]  ;;  %v7321_v14 = vor.u32 %v9698_v6, %v7318_v7  ;;  %v7273_v7 = vor.u32 %v9686_v60, %v7270_v62  ;;  %v7548_v60 = vld [vmem:[#allocation8 + $0x148] sm:$0xf]  ;;  %v7550_v62 = vld [vmem:[#allocation8 + $0x168] sm:$0xf0] }
 0x1d5   :  { %2039 = vmatpush.bf16.xpose.msra.mxu2 %v7149_v10  ;;  %2052 = vmatpush.bf16.xpose.msra.mxu3 %v7153_v12  ;;  %v9699_v10 = vld [vmem:[#allocation5 + $0x78c] sm:$0xf]  ;;  %v7326_v12 = vld [vmem:[#allocation5 + $0x798] sm:$0xf0]  ;;  %v7325_v15 = vor.u32 %v9701_v9, %v7324_v8 }
 0x1d6   :  { %v7329_v16 = vor.u32 %v9699_v10, %v7326_v12  ;;  %v7252_v10 = vld [vmem:[#allocation5 + $0x700] sm:$0xf]  ;;  %v9684_v12 = vld [vmem:[#allocation5 + $0x70c] sm:$0xf0] }
 0x1db   :  { %2014 = vmatpush.bf16.xpose.msra.mxu0 %v7125_v29  ;;  %v10709_v29 = vld [vmem:[#allocation7] sm:$0xff] }
 0x1dc   :  { %2027 = vmatpush.bf16.xpose.msra.mxu1 %v7129_v33  ;;  %v403_v30 = vperm.slane %v10709_v29, 4  ;;  %v7309_v33 = vor.u32 %v9697_v25, %v7308_v24  ;;  %v9774_v24 = vld [vmem:[#allocation8 + $0x1dc] sm:$0xf0]  ;;  %v9770_v25 = vld [vmem:[#allocation8 + $0x1c4] sm:$0xf] }
 0x1dd   :  { %2040 = vmatpush.bf16.xpose.msra.mxu2 %v7133_v34  ;;  %2053 = vmatpush.bf16.xpose.msra.mxu3 %v7137_v37  ;;  %v7313_v34 = vor.u32 %v9695_v26, %v7310_v27  ;;  %v7284_v37 = vld [vmem:[#allocation5 + $0x740] sm:$0xf]  ;;  %v7606_v26 = vld [vmem:[#allocation8 + $0x1e0] sm:$0xf0]  ;;  %v7253_v27 = vor.u32 %v9684_v12, %v7252_v10 }
 0x1df   :  { %v1912_v31 = vpop.f32.mrf.mxu0 }
 0x1e0   :  { %v1913_v35 = vadd.f32 %v1912_v31, %v403_v30  ;;  %v1925_v36 = vpop.f32.mrf.mxu1  ;;  %v9775_v30 = vld [vmem:[#allocation8 + $0x1e4] sm:$0xf0] }
 0x1e2   :  { %2015 = vmatmul.bf16.vlgmr.msra.gmra.mxu0 %v10663_v17 }
 0x1e3   :  { %2059 = vmatpush.bf16.xpose.msrb.mxu0 %v7365_v38  ;;  %2028 = vmatmul.bf16.vlgmr.msra.gmra.mxu1 %v10667_v19  ;;  %v9692_v38 = vld [vmem:[#allocation5 + $0x74c] sm:$0xf0] }
 0x1e4   :  { %2072 = vmatpush.bf16.xpose.msrb.mxu1 %v7369_v39  ;;  %2041 = vmatmul.bf16.vlgmr.msra.gmra.mxu2 %v10661_v11  ;;  %v9690_v39 = vld [vmem:[#allocation5 + $0x744] sm:$0xf]  ;;  %v7285_v48 = vor.u32 %v9692_v38, %v7284_v37  ;;  %v7605_v37 = vor.u32 %v9774_v24, %v7604_v22  ;;  %v7609_v38 = vor.u32 %v9770_v25, %v7606_v26  ;;  %v9739_v22 = vld [vmem:[#allocation8 + $0xcc] sm:$0xf]  ;;  %v404_v25 = vperm.slane %v10709_v29, 5 }
 0x1e5   :  { %2085 = vmatpush.bf16.xpose.msrb.mxu2 %v7373_v40  ;;  %2098 = vmatpush.bf16.xpose.msrb.mxu3 %v7377_v41  ;;  %v1926_v40 = vadd.f32 %v1925_v36, %v1913_v35  ;;  %v7286_v41 = vld [vmem:[#allocation5 + $0x750] sm:$0xf0]  ;;  %v7265_v36 = vor.u32 %v9683_v20, %v7262_v21  ;;  %v7484_v20 = vld [vmem:[#allocation8 + $0xc8] sm:$0xf] }
 0x1e6   :  { %2054 = vmatmul.bf16.vlgmr.msra.gmra.mxu3 %v10665_v18  ;;  %v7289_v51 = vor.u32 %v9690_v39, %v7286_v41  ;;  %v7614_v35 = vld [vmem:[#allocation8 + $0x1e8] sm:$0xf0]  ;;  %v7572_v41 = vld [vmem:[#allocation8 + $0x180] sm:$0xf]  ;;  %v9743_v21 = vld [vmem:[#allocation8 + $0xe4] sm:$0xf0] }
 0x1e7   :  { %v1938_v49 = vpop.f32.mrf.mxu2 }
 0x1e8   :  { %v1927_v58 = vpop.f32.mrf.mxu1 }
 0x1e9   :  { %v1951_v45 = vpop.f32.mrf.mxu3  ;;  %v9754_v58 = vld [vmem:[#allocation8 + $0x144] sm:$0xf] }
 0x1eb   :  { %2060 = vmatpush.bf16.xpose.msrb.mxu0 %v7349_v52  ;;  %v7293_v52 = vor.u32 %v9693_v43, %v7292_v42  ;;  %v9766_v42 = vld [vmem:[#allocation8 + $0x19c] sm:$0xf0]  ;;  %v9762_v43 = vld [vmem:[#allocation8 + $0x184] sm:$0xf] }
 0x1ec   :  { %2073 = vmatpush.bf16.xpose.msrb.mxu1 %v7353_v53  ;;  %v1939_v53 = vadd.f32 %v1938_v49, %v1926_v40  ;;  %v9767_v49 = vld [vmem:[#allocation8 + $0x1a4] sm:$0xf0] }
 0x1ed   :  { %2086 = vmatpush.bf16.xpose.msrb.mxu2 %v7357_v54  ;;  %2099 = vmatpush.bf16.xpose.msrb.mxu3 %v7361_v55  ;;  %v1914_v54 = vpop.f32.mrf.mxu0  ;;  %v7297_v55 = vor.u32 %v9691_v44, %v7294_v47  ;;  %v7574_v47 = vld [vmem:[#allocation8 + $0x1a0] sm:$0xf0] }
 0x1ee   :  { %v1952_v56 = vadd.f32 %v1951_v45, %v1939_v53  ;;  %v9763_v45 = vld [vmem:[#allocation8 + $0x18c] sm:$0xf]  ;;  %v7577_v53 = vor.u32 %v9762_v43, %v7574_v47 }
 0x1ef   :  { %v1940_v5 = vpop.f32.mrf.mxu2 }
 0x1f0   :  { %v2115_v61 = vsub.f32 0.0, %v1952_v56  ;;  %v7540_v56 = vld [vmem:[#allocation8 + $0x140] sm:$0xf]  ;;  %v9751_v5 = vld [vmem:[#allocation8 + $0x124] sm:$0xf0] }
 0x1f1   :  { %v1953_v6 = vpop.f32.mrf.mxu3 }
 0x1f2   :  { %v9747_v6 = vld [vmem:[#allocation8 + $0x10c] sm:$0xf] }
 0x1f3   :  { %2061 = vmatpush.bf16.xpose.msrb.mxu0 %v7333_v0  ;;  %v9689_v0 = vld [vmem:[#allocation5 + $0x734] sm:$0xf0] }
 0x1f4   :  { %2074 = vmatpush.bf16.xpose.msrb.mxu1 %v7337_v1  ;;  %v9687_v1 = vld [vmem:[#allocation5 + $0x72c] sm:$0xf]  ;;  %v7277_v8 = vor.u32 %v9689_v0, %v7276_v63  ;;  %v7541_v63 = vor.u32 %v9758_v57, %v7540_v56  ;;  %v7545_v0 = vor.u32 %v9754_v58, %v7542_v59 }
 0x1f5   :  { %2087 = vmatpush.bf16.xpose.msrb.mxu2 %v7341_v2  ;;  %2100 = vmatpush.bf16.xpose.msrb.mxu3 %v7345_v3  ;;  %v7278_v2 = vld [vmem:[#allocation5 + $0x738] sm:$0xf0]  ;;  %v2127_v3 = vmul.f32 1.442695, %v2115_v61  ;;  %v9759_v61 = vld [vmem:[#allocation8 + $0x164] sm:$0xf0] }
 0x1f6   :  { %v7281_v9 = vor.u32 %v9687_v1, %v7278_v2  ;;  %v9746_v2 = vld [vmem:[#allocation8 + $0x104] sm:$0xf] }
 0x1f7   :  { %10265 = vpow2.f32 %v2127_v3  ;;  %v7510_v3 = vld [vmem:[#allocation8 + $0x120] sm:$0xf0] }
 0x1f8   :  { %v9722_v56 = vld [vmem:[#allocation8 + $0x44] sm:$0xf] }
 0x1f9   :  { %v7414_v59 = vld [vmem:[#allocation8 + $0x60] sm:$0xf0] }
 0x1fb   :  { %2062 = vmatpush.bf16.xpose.msrb.mxu0 %v7317_v13  ;;  %v9682_v13 = vld [vmem:[#allocation5 + $0x704] sm:$0xf] }
 0x1fc   :  { %2075 = vmatpush.bf16.xpose.msrb.mxu1 %v7321_v14  ;;  %v7254_v14 = vld [vmem:[#allocation5 + $0x710] sm:$0xf0] }
 0x1fd   :  { %2088 = vmatpush.bf16.xpose.msrb.mxu2 %v7325_v15  ;;  %2101 = vmatpush.bf16.xpose.msrb.mxu3 %v7329_v16  ;;  %v7260_v15 = vld [vmem:[#allocation5 + $0x708] sm:$0xf]  ;;  %v9685_v16 = vld [vmem:[#allocation5 + $0x714] sm:$0xf0]  ;;  %v10266_v23 = vpop.eup %10265 }
 0x1fe   :  { %v2139_v31 = vadd.f32 1.0, %v10266_v23  ;;  %v7486_v23 = vld [vmem:[#allocation8 + $0xe8] sm:$0xf0] }
 0x200   :  { %10267 = vrcp.f32 %v2139_v31 }
 0x203   :  { %2063 = vmatpush.bf16.xpose.msrb.mxu0 %v7301_v28  ;;  %v7612_v28 = vld [vmem:[#allocation8 + $0x1c8] sm:$0xf] }
 0x204   :  { %2076 = vmatpush.bf16.xpose.msrb.mxu1 %v7305_v32  ;;  %v7257_v32 = vor.u32 %v9682_v13, %v7254_v14  ;;  %v7613_v39 = vor.u32 %v9775_v30, %v7612_v28  ;;  %v7476_v13 = vld [vmem:[#allocation8 + $0xc0] sm:$0xf]  ;;  %v7485_v28 = vor.u32 %v9743_v21, %v7484_v20  ;;  %v7489_v30 = vor.u32 %v9739_v22, %v7486_v23  ;;  %v7628_v21 = vld [vmem:[#allocation8 + $0x1d8] sm:$0xf] }
 0x205   :  { %2089 = vmatpush.bf16.xpose.msrb.mxu2 %v7309_v33  ;;  %2102 = vmatpush.bf16.xpose.msrb.mxu3 %v7313_v34  ;;  %v7261_v33 = vor.u32 %v9685_v16, %v7260_v15  ;;  %v9771_v34 = vld [vmem:[#allocation8 + $0x1cc] sm:$0xf]  ;;  %v9742_v14 = vld [vmem:[#allocation8 + $0xdc] sm:$0xf0]  ;;  %v9738_v15 = vld [vmem:[#allocation8 + $0xc4] sm:$0xf] }
 0x206   :  { %v7617_v40 = vor.u32 %v9771_v34, %v7614_v35  ;;  %v10712_v44 = vpop.eup %10267  ;;  %v7478_v16 = vld [vmem:[#allocation8 + $0xe0] sm:$0xf0]  ;;  %v7477_v24 = vor.u32 %v9742_v14, %v7476_v13  ;;  %v9776_v14 = vld [vmem:[#allocation8 + $0x1ec] sm:$0xf0]  ;;  %v9777_v22 = vld [vmem:[#allocation8 + $0x1f4] sm:$0xf0] }
 0x207   :  { %2155 = vst [vmem:[#allocation14 + $0x20] sm:$0xff] %v10712_v44  ;;  %v9730_v34 = vld [vmem:[#allocation8 + $0x84] sm:$0xf] }
 0x20b   :  { %2064 = vmatpush.bf16.xpose.msrb.mxu0 %v7285_v48  ;;  %v7580_v48 = vld [vmem:[#allocation8 + $0x188] sm:$0xf] }
 0x20c   :  { %2077 = vmatpush.bf16.xpose.msrb.mxu1 %v7289_v51  ;;  %v7582_v51 = vld [vmem:[#allocation8 + $0x1a8] sm:$0xf0]  ;;  %v7581_v54 = vor.u32 %v9767_v49, %v7580_v48 }
 0x20d   :  { %2090 = vmatpush.bf16.xpose.msrb.mxu2 %v7293_v52  ;;  %2103 = vmatpush.bf16.xpose.msrb.mxu3 %v7297_v55  ;;  %v7573_v52 = vor.u32 %v9766_v42, %v7572_v41  ;;  %v7585_v55 = vor.u32 %v9763_v45, %v7582_v51  ;;  %v7454_v41 = vld [vmem:[#allocation8 + $0xa8] sm:$0xf0] }
 0x213   :  { %2065 = vmatpush.bf16.xpose.msrb.mxu0 %v7269_v4  ;;  %v7516_v4 = vld [vmem:[#allocation8 + $0x108] sm:$0xf] }
 0x214   :  { %2078 = vmatpush.bf16.xpose.msrb.mxu1 %v7273_v7  ;;  %v7518_v7 = vld [vmem:[#allocation8 + $0x128] sm:$0xf0]  ;;  %v7517_v10 = vor.u32 %v9751_v5, %v7516_v4  ;;  %v9718_v4 = vld [vmem:[#allocation8 + $0x1c] sm:$0xf0]  ;;  %v9714_v5 = vld [vmem:[#allocation8 + $0x4] sm:$0xf] }
 0x215   :  { %2091 = vmatpush.bf16.xpose.msrb.mxu2 %v7277_v8  ;;  %2104 = vmatpush.bf16.xpose.msrb.mxu3 %v7281_v9  ;;  %v7513_v9 = vor.u32 %v9746_v2, %v7510_v3  ;;  %v7521_v12 = vor.u32 %v9747_v6, %v7518_v7  ;;  %v7380_v3 = vld [vmem:[#allocation8] sm:$0xf]  ;;  %v7382_v6 = vld [vmem:[#allocation8 + $0x20] sm:$0xf0]  ;;  %v7388_v7 = vld [vmem:[#allocation8 + $0x8] sm:$0xf] }
 0x216   :  { %v7381_v20 = vor.u32 %v9718_v4, %v7380_v3  ;;  %v9752_v3 = vld [vmem:[#allocation8 + $0x12c] sm:$0xf0]  ;;  %v9748_v4 = vld [vmem:[#allocation8 + $0x114] sm:$0xf] }
 0x21b   :  { %2066 = vmatpush.bf16.xpose.msrb.mxu0 %v7253_v27  ;;  %v7481_v27 = vor.u32 %v9738_v15, %v7478_v16  ;;  %v9772_v15 = vld [vmem:[#allocation8 + $0x1d4] sm:$0xf] }
 0x21c   :  { %2079 = vmatpush.bf16.xpose.msrb.mxu1 %v7257_v32  ;;  %v7444_v32 = vld [vmem:[#allocation8 + $0x80] sm:$0xf]  ;;  %v7622_v16 = vld [vmem:[#allocation8 + $0x1f0] sm:$0xf0] }
 0x21d   :  { %2092 = vmatpush.bf16.xpose.msrb.mxu2 %v7261_v33  ;;  %2105 = vmatpush.bf16.xpose.msrb.mxu3 %v7265_v36  ;;  %v9734_v33 = vld [vmem:[#allocation8 + $0x9c] sm:$0xf0]  ;;  %v7446_v36 = vld [vmem:[#allocation8 + $0xa0] sm:$0xf0] }
 0x21e   :  { %v7445_v42 = vor.u32 %v9734_v33, %v7444_v32  ;;  %v7449_v48 = vor.u32 %v9730_v34, %v7446_v36  ;;  %v7629_v32 = vor.u32 %v9777_v22, %v7628_v21  ;;  %v7588_v34 = vld [vmem:[#allocation8 + $0x190] sm:$0xf]  ;;  %v9764_v36 = vld [vmem:[#allocation8 + $0x194] sm:$0xf] }
 0x21f   :  { %v1964_v26 = vpop.f32.mrf.mxu0 }
 0x220   :  { %v1965_v31 = vadd.f32 %v1964_v26, %v404_v25  ;;  %v1977_v35 = vpop.f32.mrf.mxu1  ;;  %v9773_v26 = vld [vmem:[#allocation8 + $0x1dc] sm:$0xf] }
 0x222   :  { %2067 = vmatmul.bf16.vlgmr.msrb.gmra.mxu0 %v10663_v17  ;;  %v9755_v17 = vld [vmem:[#allocation8 + $0x14c] sm:$0xf] }
 0x223   :  { %5257 = vmatpush.bf16.xpose.msra.mxu0 %v7605_v37  ;;  %2080 = vmatmul.bf16.vlgmr.msrb.gmra.mxu1 %v10667_v19  ;;  %v7553_v1 = vor.u32 %v9755_v17, %v7550_v62  ;;  %v9750_v19 = vld [vmem:[#allocation8 + $0x11c] sm:$0xf0]  ;;  %v7452_v37 = vld [vmem:[#allocation8 + $0x88] sm:$0xf]  ;;  %v9723_v17 = vld [vmem:[#allocation8 + $0x4c] sm:$0xf] }
 0x224   :  { %5270 = vmatpush.bf16.xpose.msra.mxu1 %v7609_v38  ;;  %2093 = vmatmul.bf16.vlgmr.msrb.gmra.mxu2 %v10661_v11  ;;  %v7549_v11 = vor.u32 %v9759_v61, %v7548_v60  ;;  %v9735_v38 = vld [vmem:[#allocation8 + $0xa4] sm:$0xf0]  ;;  %v7422_v62 = vld [vmem:[#allocation8 + $0x68] sm:$0xf0] }
 0x225   :  { %5283 = vmatpush.bf16.xpose.msra.mxu2 %v7613_v39  ;;  %5296 = vmatpush.bf16.xpose.msra.mxu3 %v7617_v40  ;;  %v1978_v39 = vadd.f32 %v1977_v35, %v1965_v31  ;;  %v9731_v40 = vld [vmem:[#allocation8 + $0x8c] sm:$0xf]  ;;  %v7453_v49 = vor.u32 %v9735_v38, %v7452_v37  ;;  %v7420_v60 = vld [vmem:[#allocation8 + $0x48] sm:$0xf]  ;;  %v7425_v2 = vor.u32 %v9723_v17, %v7422_v62  ;;  %v9768_v35 = vld [vmem:[#allocation8 + $0x1ac] sm:$0xf0] }
 0x226   :  { %2106 = vmatmul.bf16.vlgmr.msrb.gmra.mxu3 %v10665_v18  ;;  %v7508_v18 = vld [vmem:[#allocation8 + $0x100] sm:$0xf]  ;;  %v9727_v61 = vld [vmem:[#allocation8 + $0x64] sm:$0xf0]  ;;  %v7625_v31 = vor.u32 %v9772_v15, %v7622_v16  ;;  %v7590_v38 = vld [vmem:[#allocation8 + $0x1b0] sm:$0xf0] }
 0x227   :  { %v7509_v8 = vor.u32 %v9750_v19, %v7508_v18  ;;  %v1990_v43 = vpop.f32.mrf.mxu2  ;;  %v1966_v51 = vpop.f32.mrf.mxu0  ;;  %v7417_v18 = vor.u32 %v9722_v56, %v7414_v59  ;;  %v7421_v19 = vor.u32 %v9727_v61, %v7420_v60  ;;  %v9760_v56 = vld [vmem:[#allocation8 + $0x16c] sm:$0xf0]  ;;  %v9761_v59 = vld [vmem:[#allocation8 + $0x174] sm:$0xf0]  ;;  %v9757_v60 = vld [vmem:[#allocation8 + $0x15c] sm:$0xf] }
 0x228   :  { %v1991_v45 = vadd.f32 %v1990_v43, %v1978_v39  ;;  %v1979_v58 = vpop.f32.mrf.mxu1  ;;  %v7596_v39 = vld [vmem:[#allocation8 + $0x198] sm:$0xf]  ;;  %v9765_v43 = vld [vmem:[#allocation8 + $0x19c] sm:$0xf]  ;;  %v7589_v51 = vor.u32 %v9768_v35, %v7588_v34  ;;  %v405_v17 = vperm.slane %v10709_v29, 6 }
 0x229   :  { %v2003_v47 = vpop.f32.mrf.mxu3  ;;  %v7564_v58 = vld [vmem:[#allocation8 + $0x158] sm:$0xf]  ;;  %v7566_v61 = vld [vmem:[#allocation8 + $0x178] sm:$0xf0] }
 0x22a   :  { %v7502_v34 = vld [vmem:[#allocation8 + $0xf8] sm:$0xf0] }
 0x22b   :  { %5258 = vmatpush.bf16.xpose.msra.mxu0 %v7573_v52  ;;  %v7457_v52 = vor.u32 %v9731_v40, %v7454_v41  ;;  %v9769_v40 = vld [vmem:[#allocation8 + $0x1b4] sm:$0xf0]  ;;  %v10314_v41 = vld [vmem:[#allocation14] sm:$0xff] }
 0x22c   :  { %5271 = vmatpush.bf16.xpose.msra.mxu1 %v7577_v53  ;;  %v2004_v53 = vadd.f32 %v2003_v47, %v1991_v45  ;;  %v7598_v47 = vld [vmem:[#allocation8 + $0x1b8] sm:$0xf0]  ;;  %v10729_v45 = vpack.c.bf16 %v10694_v50, %v10694_v50  ;;  %v7556_v50 = vld [vmem:[#allocation8 + $0x150] sm:$0xf] }
 0x22d   :  { %5284 = vmatpush.bf16.xpose.msra.mxu2 %v7581_v54  ;;  %5297 = vmatpush.bf16.xpose.msra.mxu3 %v7585_v55  ;;  %v7412_v54 = vld [vmem:[#allocation8 + $0x40] sm:$0xf]  ;;  %v7557_v62 = vor.u32 %v9760_v56, %v7556_v50  ;;  %v9733_v50 = vld [vmem:[#allocation8 + $0x9c] sm:$0xf] }
 0x22e   :  { %v9726_v55 = vld [vmem:[#allocation8 + $0x5c] sm:$0xf0]  ;;  %v2116_v57 = vsub.f32 0.0, %v2004_v53  ;;  %v7593_v53 = vor.u32 %v9764_v36, %v7590_v38  ;;  %v7470_v56 = vld [vmem:[#allocation8 + $0xb8] sm:$0xf0] }
 0x233   :  { %5259 = vmatpush.bf16.xpose.msra.mxu0 %v7541_v63  ;;  %v2129_v63 = vmul.f32 1.442695, %v2116_v57  ;;  %v9756_v57 = vld [vmem:[#allocation8 + $0x154] sm:$0xf] }
 0x234   :  { %5272 = vmatpush.bf16.xpose.msra.mxu1 %v7545_v0  ;;  %v7413_v0 = vor.u32 %v9726_v55, %v7412_v54  ;;  %v7597_v54 = vor.u32 %v9769_v40, %v7596_v39  ;;  %v7601_v55 = vor.u32 %v9765_v43, %v7598_v47  ;;  %v7460_v47 = vld [vmem:[#allocation8 + $0x90] sm:$0xf] }
 0x235   :  { %5285 = vmatpush.bf16.xpose.msra.mxu2 %v7549_v11  ;;  %5298 = vmatpush.bf16.xpose.msra.mxu3 %v7553_v1  ;;  %v1992_v11 = vpop.f32.mrf.mxu2  ;;  %v2005_v1 = vpop.f32.mrf.mxu3  ;;  %10269 = vpow2.f32 %v2129_v63 }
 0x236   :  { %v7569_v11 = vor.u32 %v9757_v60, %v7566_v61  ;;  %v7473_v61 = vor.u32 %v9733_v50, %v7470_v56 }
 0x23b   :  { %5260 = vmatpush.bf16.xpose.msra.mxu0 %v7509_v8  ;;  %v9719_v8 = vld [vmem:[#allocation8 + $0x24] sm:$0xf0]  ;;  %v10270_v13 = vpop.eup %10269 }
 0x23c   :  { %5273 = vmatpush.bf16.xpose.msra.mxu1 %v7513_v9  ;;  %v9715_v9 = vld [vmem:[#allocation8 + $0xc] sm:$0xf]  ;;  %v2140_v23 = vadd.f32 1.0, %v10270_v13  ;;  %v7389_v25 = vor.u32 %v9719_v8, %v7388_v7  ;;  %v9753_v7 = vld [vmem:[#allocation8 + $0x134] sm:$0xf0] }
 0x23d   :  { %5286 = vmatpush.bf16.xpose.msra.mxu2 %v7517_v10  ;;  %5299 = vmatpush.bf16.xpose.msra.mxu3 %v7521_v12  ;;  %v7390_v10 = vld [vmem:[#allocation8 + $0x28] sm:$0xf0]  ;;  %v7620_v12 = vld [vmem:[#allocation8 + $0x1d0] sm:$0xf] }
 0x23e   :  { %10271 = vrcp.f32 %v2140_v23 }
 0x243   :  { %5261 = vmatpush.bf16.xpose.msra.mxu0 %v7477_v24  ;;  %v7385_v24 = vor.u32 %v9714_v5, %v7382_v6  ;;  %v7526_v5 = vld [vmem:[#allocation8 + $0x130] sm:$0xf0]  ;;  %v7532_v6 = vld [vmem:[#allocation8 + $0x118] sm:$0xf] }
 0x244   :  { %5274 = vmatpush.bf16.xpose.msra.mxu1 %v7481_v27  ;;  %v7630_v27 = vld [vmem:[#allocation8 + $0x1f8] sm:$0xf0]  ;;  %v10720_v37 = vpop.eup %10271  ;;  %v7529_v13 = vor.u32 %v9748_v4, %v7526_v5 }
 0x245   :  { %5287 = vmatpush.bf16.xpose.msra.mxu2 %v7485_v28  ;;  %5300 = vmatpush.bf16.xpose.msra.mxu3 %v7489_v30  ;;  %v7393_v28 = vor.u32 %v9715_v9, %v7390_v10  ;;  %v7621_v30 = vor.u32 %v9776_v14, %v7620_v12  ;;  %v7633_v33 = vor.u32 %v9773_v26, %v7630_v27  ;;  %v9749_v9 = vld [vmem:[#allocation8 + $0x11c] sm:$0xf]  ;;  %v9744_v26 = vld [vmem:[#allocation8 + $0xec] sm:$0xf0]  ;;  %v9740_v27 = vld [vmem:[#allocation8 + $0xd4] sm:$0xf] }
 0x246   :  { %2156 = vst [vmem:[#allocation14 + $0x28] sm:$0xff] %v10720_v37  ;;  %v7534_v10 = vld [vmem:[#allocation8 + $0x138] sm:$0xf0]  ;;  %v7533_v14 = vor.u32 %v9753_v7, %v7532_v6  ;;  %v7396_v7 = vld [vmem:[#allocation8 + $0x10] sm:$0xf] }
 0x247   :  { %v7537_v16 = vor.u32 %v9749_v9, %v7534_v10  ;;  %v9716_v9 = vld [vmem:[#allocation8 + $0x14] sm:$0xf] }
 0x248   :  { %v7398_v10 = vld [vmem:[#allocation8 + $0x30] sm:$0xf0] }
 0x24b   :  { %5262 = vmatpush.bf16.xpose.msra.mxu0 %v7445_v42  ;;  %v10722_v42 = vpack.c.bf16 %v10314_v41, %v10314_v41 }
 0x24c   :  { %5275 = vmatpush.bf16.xpose.msra.mxu1 %v7449_v48  ;;  %v10315_v48 = vld [vmem:[#allocation14 + $0x8] sm:$0xff] }
 0x24d   :  { %5288 = vmatpush.bf16.xpose.msra.mxu2 %v7453_v49  ;;  %5301 = vmatpush.bf16.xpose.msra.mxu3 %v7457_v52  ;;  %v10725_v49 = vpack.c.bf16 %v10315_v48, %v10315_v48  ;;  %v10733_v52 = vpack.c.bf16 %v10702_v46, %v10702_v46  ;;  %v7558_v46 = vld [vmem:[#allocation8 + $0x170] sm:$0xf0]  ;;  %v9736_v48 = vld [vmem:[#allocation8 + $0xac] sm:$0xf0] }
 0x24e   :  { %v7561_v63 = vor.u32 %v9756_v57, %v7558_v46  ;;  %v7461_v46 = vor.u32 %v9736_v48, %v7460_v47  ;;  %v9831_v47 = vld [vmem:[#allocation8 + $0x3a4] sm:$0xf0]  ;;  %v10744_v48 = vpack.c.bf16 %v10712_v44, %v10712_v44  ;;  %v7796_v44 = vld [vmem:[#allocation8 + $0x340] sm:$0xf] }
 0x253   :  { %5263 = vmatpush.bf16.xpose.msra.mxu0 %v7413_v0  ;;  %v7565_v0 = vor.u32 %v9761_v59, %v7564_v58 }
 0x254   :  { %5276 = vmatpush.bf16.xpose.msra.mxu1 %v7417_v18 }
 0x255   :  { %5289 = vmatpush.bf16.xpose.msra.mxu2 %v7421_v19  ;;  %5302 = vmatpush.bf16.xpose.msra.mxu3 %v7425_v2  ;;  %v7524_v2 = vld [vmem:[#allocation8 + $0x110] sm:$0xf] }
 0x256   :  { %v7525_v12 = vor.u32 %v9752_v3, %v7524_v2 }
 0x25b   :  { %5264 = vmatpush.bf16.xpose.msra.mxu0 %v7381_v20 }
 0x25c   :  { %5277 = vmatpush.bf16.xpose.msra.mxu1 %v7385_v24  ;;  %v7492_v24 = vld [vmem:[#allocation8 + $0xd0] sm:$0xf] }
 0x25d   :  { %5290 = vmatpush.bf16.xpose.msra.mxu2 %v7389_v25  ;;  %5303 = vmatpush.bf16.xpose.msra.mxu3 %v7393_v28  ;;  %v7494_v28 = vld [vmem:[#allocation8 + $0xf0] sm:$0xf0]  ;;  %v7493_v35 = vor.u32 %v9744_v26, %v7492_v24  ;;  %v7868_v24 = vld [vmem:[#allocation8 + $0x3c8] sm:$0xf]  ;;  %v7401_v26 = vor.u32 %v9716_v9, %v7398_v10  ;;  %v9811_v10 = vld [vmem:[#allocation8 + $0x30c] sm:$0xf] }
 0x25e   :  { %v7497_v38 = vor.u32 %v9740_v27, %v7494_v28  ;;  %v9835_v28 = vld [vmem:[#allocation8 + $0x3cc] sm:$0xf]  ;;  %v9815_v9 = vld [vmem:[#allocation8 + $0x324] sm:$0xf0] }
 0x25f   :  { %v2016_v1 = vpop.f32.mrf.mxu0 }
 0x260   :  { %v2017_v18 = vadd.f32 %v2016_v1, %v405_v17  ;;  %v2029_v19 = vpop.f32.mrf.mxu1  ;;  %v7428_v17 = vld [vmem:[#allocation8 + $0x50] sm:$0xf]  ;;  %v9729_v1 = vld [vmem:[#allocation8 + $0x74] sm:$0xf0] }
 0x262   :  { %5265 = vmatmul.bf16.vlgmr.msra.gmra.mxu0 %v10722_v42  ;;  %v2030_v8 = vadd.f32 %v2029_v19, %v2017_v18  ;;  %v9725_v18 = vld [vmem:[#allocation8 + $0x5c] sm:$0xf] }
 0x263   :  { %5309 = vmatpush.bf16.xpose.msrb.mxu0 %v7621_v30  ;;  %5278 = vmatmul.bf16.vlgmr.msra.gmra.mxu1 %v10725_v49  ;;  %v7500_v30 = vld [vmem:[#allocation8 + $0xd8] sm:$0xf]  ;;  %v7438_v19 = vld [vmem:[#allocation8 + $0x78] sm:$0xf0] }
 0x264   :  { %5322 = vmatpush.bf16.xpose.msrb.mxu1 %v7625_v31  ;;  %5291 = vmatmul.bf16.vlgmr.msra.gmra.mxu2 %v10729_v45  ;;  %v9745_v31 = vld [vmem:[#allocation8 + $0xf4] sm:$0xf0]  ;;  %v7441_v6 = vor.u32 %v9725_v18, %v7438_v19 }
 0x265   :  { %5335 = vmatpush.bf16.xpose.msrb.mxu2 %v7629_v32  ;;  %5348 = vmatpush.bf16.xpose.msrb.mxu3 %v7633_v33  ;;  %v9741_v33 = vld [vmem:[#allocation8 + $0xdc] sm:$0xf]  ;;  %v7501_v39 = vor.u32 %v9745_v31, %v7500_v30  ;;  %v7870_v30 = vld [vmem:[#allocation8 + $0x3e8] sm:$0xf0] }
 0x266   :  { %5304 = vmatmul.bf16.vlgmr.msra.gmra.mxu3 %v10733_v52  ;;  %v7505_v41 = vor.u32 %v9741_v33, %v7502_v34 }
 0x267   :  { %v2042_v15 = vpop.f32.mrf.mxu2  ;;  %v2018_v22 = vpop.f32.mrf.mxu0 }
 0x268   :  { %v2043_v20 = vadd.f32 %v2042_v15, %v2030_v8  ;;  %v2031_v23 = vpop.f32.mrf.mxu1  ;;  %v9720_v8 = vld [vmem:[#allocation8 + $0x2c] sm:$0xf0]  ;;  %v7406_v15 = vld [vmem:[#allocation8 + $0x38] sm:$0xf0] }
 0x269   :  { %v2055_v21 = vpop.f32.mrf.mxu3  ;;  %v7397_v22 = vor.u32 %v9720_v8, %v7396_v7  ;;  %v7862_v23 = vld [vmem:[#allocation8 + $0x3e0] sm:$0xf0]  ;;  %v7772_v8 = vld [vmem:[#allocation8 + $0x308] sm:$0xf] }
 0x26a   :  { %v2056_v25 = vadd.f32 %v2055_v21, %v2043_v20  ;;  %v9838_v20 = vld [vmem:[#allocation8 + $0x3dc] sm:$0xf0]  ;;  %v9834_v21 = vld [vmem:[#allocation8 + $0x3c4] sm:$0xf] }
 0x26b   :  { %5310 = vmatpush.bf16.xpose.msrb.mxu0 %v7589_v51  ;;  %v9732_v51 = vld [vmem:[#allocation8 + $0x94] sm:$0xf]  ;;  %v7865_v33 = vor.u32 %v9834_v21, %v7862_v23  ;;  %v7766_v7 = vld [vmem:[#allocation8 + $0x320] sm:$0xf0] }
 0x26c   :  { %5323 = vmatpush.bf16.xpose.msrb.mxu1 %v7593_v53  ;;  %v2117_v32 = vsub.f32 0.0, %v2056_v25  ;;  %v7462_v53 = vld [vmem:[#allocation8 + $0xb0] sm:$0xf0]  ;;  %v9839_v25 = vld [vmem:[#allocation8 + $0x3e4] sm:$0xf0] }
 0x26d   :  { %5336 = vmatpush.bf16.xpose.msrb.mxu2 %v7597_v54  ;;  %5349 = vmatpush.bf16.xpose.msrb.mxu3 %v7601_v55  ;;  %v7468_v54 = vld [vmem:[#allocation8 + $0x98] sm:$0xf]  ;;  %v7465_v59 = vor.u32 %v9732_v51, %v7462_v53  ;;  %v7869_v34 = vor.u32 %v9839_v25, %v7868_v24  ;;  %v9827_v51 = vld [vmem:[#allocation8 + $0x38c] sm:$0xf]  ;;  %v7732_v25 = vld [vmem:[#allocation8 + $0x2c0] sm:$0xf] }
 0x26e   :  { %v2131_v36 = vmul.f32 1.442695, %v2117_v32  ;;  %v9737_v55 = vld [vmem:[#allocation8 + $0xb4] sm:$0xf0]  ;;  %v7838_v53 = vld [vmem:[#allocation8 + $0x3a8] sm:$0xf0] }
 0x26f   :  { %v2044_v40 = vpop.f32.mrf.mxu2  ;;  %v7469_v60 = vor.u32 %v9737_v55, %v7468_v54  ;;  %v10748_v54 = vpack.c.bf16 %v10720_v37, %v10720_v37  ;;  %v7804_v37 = vld [vmem:[#allocation8 + $0x348] sm:$0xf] }
 0x270   :  { %10273 = vpow2.f32 %v2131_v36  ;;  %v7828_v36 = vld [vmem:[#allocation8 + $0x380] sm:$0xf] }
 0x271   :  { %v2057_v43 = vpop.f32.mrf.mxu3 }
 0x272   :  { %v7836_v43 = vld [vmem:[#allocation8 + $0x388] sm:$0xf] }
 0x273   :  { %5311 = vmatpush.bf16.xpose.msrb.mxu0 %v7557_v62  ;;  %v9728_v62 = vld [vmem:[#allocation8 + $0x6c] sm:$0xf0]  ;;  %v7837_v56 = vor.u32 %v9831_v47, %v7836_v43 }
 0x274   :  { %5324 = vmatpush.bf16.xpose.msrb.mxu1 %v7561_v63  ;;  %v9724_v63 = vld [vmem:[#allocation8 + $0x54] sm:$0xf]  ;;  %v7429_v2 = vor.u32 %v9728_v62, %v7428_v17  ;;  %v7806_v17 = vld [vmem:[#allocation8 + $0x368] sm:$0xf0]  ;;  %v406_v62 = vperm.slane %v10709_v29, 7 }
 0x275   :  { %5337 = vmatpush.bf16.xpose.msrb.mxu2 %v7565_v0  ;;  %5350 = vmatpush.bf16.xpose.msrb.mxu3 %v7569_v11  ;;  %v7430_v0 = vld [vmem:[#allocation8 + $0x70] sm:$0xf0]  ;;  %v7436_v11 = vld [vmem:[#allocation8 + $0x58] sm:$0xf]  ;;  %v7774_v29 = vld [vmem:[#allocation8 + $0x328] sm:$0xf0] }
 0x276   :  { %v10274_v57 = vpop.eup %10273  ;;  %v7433_v4 = vor.u32 %v9724_v63, %v7430_v0  ;;  %v7437_v5 = vor.u32 %v9729_v1, %v7436_v11 }
 0x277   :  { %v2141_v58 = vadd.f32 1.0, %v10274_v57  ;;  %v7841_v57 = vor.u32 %v9827_v51, %v7838_v53  ;;  %v7700_v51 = vld [vmem:[#allocation8 + $0x280] sm:$0xf] }
 0x278   :  { %v9798_v53 = vld [vmem:[#allocation8 + $0x29c] sm:$0xf0] }
 0x279   :  { %10275 = vrcp.f32 %v2141_v58  ;;  %v9818_v58 = vld [vmem:[#allocation8 + $0x344] sm:$0xf] }
 0x27b   :  { %5312 = vmatpush.bf16.xpose.msrb.mxu0 %v7525_v12  ;;  %v7404_v12 = vld [vmem:[#allocation8 + $0x18] sm:$0xf] }
 0x27c   :  { %5325 = vmatpush.bf16.xpose.msrb.mxu1 %v7529_v13  ;;  %v9721_v13 = vld [vmem:[#allocation8 + $0x34] sm:$0xf0] }
 0x27d   :  { %5338 = vmatpush.bf16.xpose.msrb.mxu2 %v7533_v14  ;;  %5351 = vmatpush.bf16.xpose.msrb.mxu3 %v7537_v16  ;;  %v9717_v14 = vld [vmem:[#allocation8 + $0x1c] sm:$0xf]  ;;  %v7860_v16 = vld [vmem:[#allocation8 + $0x3c0] sm:$0xf]  ;;  %v7405_v27 = vor.u32 %v9721_v13, %v7404_v12 }
 0x27e   :  { %v7409_v31 = vor.u32 %v9717_v14, %v7406_v15  ;;  %v7861_v32 = vor.u32 %v9838_v20, %v7860_v16  ;;  %v7773_v15 = vor.u32 %v9815_v9, %v7772_v8  ;;  %v7777_v20 = vor.u32 %v9811_v10, %v7774_v29  ;;  %v7636_v9 = vld [vmem:[#allocation8 + $0x200] sm:$0xf]  ;;  %v9778_v29 = vld [vmem:[#allocation8 + $0x204] sm:$0xf] }
 0x27f   :  { %v10276_v3 = vpop.eup %10275  ;;  %v9782_v10 = vld [vmem:[#allocation8 + $0x21c] sm:$0xf0] }
 0x280   :  { %2157 = vst [vmem:[#allocation14 + $0x30] sm:$0xff] %v10276_v3  ;;  %v10740_v40 = vpack.c.bf16 %v10276_v3, %v10276_v3  ;;  %v7764_v3 = vld [vmem:[#allocation8 + $0x300] sm:$0xf] }
 0x283   :  { %5313 = vmatpush.bf16.xpose.msrb.mxu0 %v7493_v35  ;;  %v7873_v35 = vor.u32 %v9835_v28, %v7870_v30  ;;  %v7734_v28 = vld [vmem:[#allocation8 + $0x2e0] sm:$0xf0] }
 0x284   :  { %5326 = vmatpush.bf16.xpose.msrb.mxu1 %v7497_v38  ;;  %v9830_v38 = vld [vmem:[#allocation8 + $0x39c] sm:$0xf0] }
 0x285   :  { %5339 = vmatpush.bf16.xpose.msrb.mxu2 %v7501_v39  ;;  %5352 = vmatpush.bf16.xpose.msrb.mxu3 %v7505_v41  ;;  %v9826_v39 = vld [vmem:[#allocation8 + $0x384] sm:$0xf]  ;;  %v7829_v55 = vor.u32 %v9830_v38, %v7828_v36 }
 0x286   :  { %v7830_v41 = vld [vmem:[#allocation8 + $0x3a0] sm:$0xf0] }
 0x287   :  { %v7833_v50 = vor.u32 %v9826_v39, %v7830_v41 }
 0x28b   :  { %5314 = vmatpush.bf16.xpose.msrb.mxu0 %v7461_v46  ;;  %v9822_v46 = vld [vmem:[#allocation8 + $0x35c] sm:$0xf0] }
 0x28c   :  { %5327 = vmatpush.bf16.xpose.msrb.mxu1 %v7465_v59  ;;  %v7798_v59 = vld [vmem:[#allocation8 + $0x360] sm:$0xf0]  ;;  %v7797_v63 = vor.u32 %v9822_v46, %v7796_v44  ;;  %v9795_v44 = vld [vmem:[#allocation8 + $0x28c] sm:$0xf] }
 0x28d   :  { %5340 = vmatpush.bf16.xpose.msrb.mxu2 %v7469_v60  ;;  %5353 = vmatpush.bf16.xpose.msrb.mxu3 %v7473_v61  ;;  %v9823_v60 = vld [vmem:[#allocation8 + $0x364] sm:$0xf0]  ;;  %v9819_v61 = vld [vmem:[#allocation8 + $0x34c] sm:$0xf]  ;;  %v7801_v0 = vor.u32 %v9818_v58, %v7798_v59  ;;  %v7701_v59 = vor.u32 %v9798_v53, %v7700_v51  ;;  %v9833_v51 = vld [vmem:[#allocation8 + $0x3b4] sm:$0xf0] }
 0x28e   :  { %v7805_v11 = vor.u32 %v9823_v60, %v7804_v37  ;;  %v7809_v1 = vor.u32 %v9819_v61, %v7806_v17  ;;  %v7710_v46 = vld [vmem:[#allocation8 + $0x2a8] sm:$0xf0]  ;;  %v9829_v53 = vld [vmem:[#allocation8 + $0x39c] sm:$0xf] }
 0x28f   :  { %v7713_v17 = vor.u32 %v9795_v44, %v7710_v46  ;;  %v10761_v46 = vld [vmem:[#allocation10] sm:$0xff] }
 0x293   :  { %5315 = vmatpush.bf16.xpose.msrb.mxu0 %v7429_v2 }
 0x294   :  { %5328 = vmatpush.bf16.xpose.msrb.mxu1 %v7433_v4  ;;  %v9814_v4 = vld [vmem:[#allocation8 + $0x31c] sm:$0xf0] }
 0x295   :  { %5341 = vmatpush.bf16.xpose.msrb.mxu2 %v7437_v5  ;;  %5354 = vmatpush.bf16.xpose.msrb.mxu3 %v7441_v6  ;;  %v9810_v5 = vld [vmem:[#allocation8 + $0x304] sm:$0xf]  ;;  %v7765_v12 = vor.u32 %v9814_v4, %v7764_v3 }
 0x296   :  { %v7769_v14 = vor.u32 %v9810_v5, %v7766_v7 }
 0x29b   :  { %5316 = vmatpush.bf16.xpose.msrb.mxu0 %v7397_v22 }
 0x29c   :  { %5329 = vmatpush.bf16.xpose.msrb.mxu1 %v7401_v26  ;;  %v9806_v26 = vld [vmem:[#allocation8 + $0x2dc] sm:$0xf0] }
 0x29d   :  { %5342 = vmatpush.bf16.xpose.msrb.mxu2 %v7405_v27  ;;  %5355 = vmatpush.bf16.xpose.msrb.mxu3 %v7409_v31  ;;  %v9802_v27 = vld [vmem:[#allocation8 + $0x2c4] sm:$0xf]  ;;  %v7740_v31 = vld [vmem:[#allocation8 + $0x2c8] sm:$0xf]  ;;  %v7733_v36 = vor.u32 %v9806_v26, %v7732_v25  ;;  %v7884_v25 = vld [vmem:[#allocation8 + $0x3d8] sm:$0xf] }
 0x29e   :  { %v7737_v39 = vor.u32 %v9802_v27, %v7734_v28  ;;  %v9841_v26 = vld [vmem:[#allocation8 + $0x3f4] sm:$0xf0] }
 0x29f   :  { %v2068_v18 = vpop.f32.mrf.mxu0 }
 0x2a0   :  { %v2069_v19 = vadd.f32 %v2068_v18, %v406_v62  ;;  %v2081_v2 = vpop.f32.mrf.mxu1  ;;  %v7668_v62 = vld [vmem:[#allocation8 + $0x240] sm:$0xf]  ;;  %v9791_v18 = vld [vmem:[#allocation8 + $0x264] sm:$0xf0] }
 0x2a2   :  { %5317 = vmatmul.bf16.vlgmr.msrb.gmra.mxu0 %v10744_v48  ;;  %v2082_v6 = vadd.f32 %v2081_v2, %v2069_v19  ;;  %v9787_v19 = vld [vmem:[#allocation8 + $0x24c] sm:$0xf] }
 0x2a3   :  { %5361 = vmatpush.bf16.xpose.msra.mxu0 %v7861_v32  ;;  %5330 = vmatmul.bf16.vlgmr.msrb.gmra.mxu1 %v10748_v54  ;;  %v9807_v32 = vld [vmem:[#allocation8 + $0x2e4] sm:$0xf0]  ;;  %v7678_v2 = vld [vmem:[#allocation8 + $0x268] sm:$0xf0] }
 0x2a4   :  { %5374 = vmatpush.bf16.xpose.msra.mxu1 %v7865_v33  ;;  %5343 = vmatmul.bf16.vlgmr.msrb.gmra.mxu2 %v10740_v40  ;;  %v9803_v33 = vld [vmem:[#allocation8 + $0x2cc] sm:$0xf]  ;;  %v7741_v41 = vor.u32 %v9807_v32, %v7740_v31  ;;  %v7681_v8 = vor.u32 %v9787_v19, %v7678_v2  ;;  %v7886_v31 = vld [vmem:[#allocation8 + $0x3f8] sm:$0xf0] }
 0x2a5   :  { %5387 = vmatpush.bf16.xpose.msra.mxu2 %v7869_v34  ;;  %5400 = vmatpush.bf16.xpose.msra.mxu3 %v7873_v35  ;;  %v7742_v34 = vld [vmem:[#allocation8 + $0x2e8] sm:$0xf0] }
 0x2a6   :  { %v7745_v43 = vor.u32 %v9803_v33, %v7742_v34 }
 0x2a7   :  { %v2094_v13 = vpop.f32.mrf.mxu2  ;;  %v2070_v22 = vpop.f32.mrf.mxu0 }
 0x2a8   :  { %v2095_v16 = vadd.f32 %v2094_v13, %v2082_v6  ;;  %v2083_v23 = vpop.f32.mrf.mxu1  ;;  %v7644_v13 = vld [vmem:[#allocation8 + $0x208] sm:$0xf]  ;;  %v9836_v22 = vld [vmem:[#allocation8 + $0x3d4] sm:$0xf] }
 0x2a9   :  { %v2107_v21 = vpop.f32.mrf.mxu3  ;;  %v7637_v23 = vor.u32 %v9782_v10, %v7636_v9  ;;  %v9812_v9 = vld [vmem:[#allocation8 + $0x314] sm:$0xf] }
 0x2aa   :  { %v2108_v24 = vadd.f32 %v2107_v21, %v2095_v16  ;;  %v7646_v16 = vld [vmem:[#allocation8 + $0x228] sm:$0xf0]  ;;  %v9840_v21 = vld [vmem:[#allocation8 + $0x3ec] sm:$0xf0]  ;;  %v7782_v10 = vld [vmem:[#allocation8 + $0x330] sm:$0xf0] }
 0x2ab   :  { %5362 = vmatpush.bf16.xpose.msra.mxu0 %v7829_v55  ;;  %v9794_v55 = vld [vmem:[#allocation8 + $0x284] sm:$0xf] }
 0x2ac   :  { %5375 = vmatpush.bf16.xpose.msra.mxu1 %v7833_v50  ;;  %v2118_v30 = vsub.f32 0.0, %v2108_v24  ;;  %v7702_v50 = vld [vmem:[#allocation8 + $0x2a0] sm:$0xf0]  ;;  %v7878_v24 = vld [vmem:[#allocation8 + $0x3f0] sm:$0xf0] }
 0x2ad   :  { %5388 = vmatpush.bf16.xpose.msra.mxu2 %v7837_v56  ;;  %5401 = vmatpush.bf16.xpose.msra.mxu3 %v7841_v57  ;;  %v7708_v56 = vld [vmem:[#allocation8 + $0x288] sm:$0xf]  ;;  %v7705_v60 = vor.u32 %v9794_v55, %v7702_v50  ;;  %v7881_v34 = vor.u32 %v9836_v22, %v7878_v24  ;;  %v7854_v55 = vld [vmem:[#allocation8 + $0x3b8] sm:$0xf0] }
 0x2ae   :  { %v2133_v35 = vmul.f32 1.442695, %v2118_v30  ;;  %v9799_v57 = vld [vmem:[#allocation8 + $0x2a4] sm:$0xf0]  ;;  %v9837_v30 = vld [vmem:[#allocation8 + $0x3dc] sm:$0xf]  ;;  %v7857_v44 = vor.u32 %v9829_v53, %v7854_v55 }
 0x2af   :  { %v2096_v38 = vpop.f32.mrf.mxu2  ;;  %v7709_v61 = vor.u32 %v9799_v57, %v7708_v56  ;;  %v7716_v53 = vld [vmem:[#allocation8 + $0x290] sm:$0xf] }
 0x2b0   :  { %10277 = vpow2.f32 %v2133_v35  ;;  %v7885_v35 = vor.u32 %v9841_v26, %v7884_v25  ;;  %v7844_v38 = vld [vmem:[#allocation8 + $0x390] sm:$0xf] }
 0x2b1   :  { %v2109_v47 = vpop.f32.mrf.mxu3  ;;  %v9800_v55 = vld [vmem:[#allocation8 + $0x2ac] sm:$0xf0] }
 0x2b2   :  { %v7852_v47 = vld [vmem:[#allocation8 + $0x398] sm:$0xf] }
 0x2b3   :  { %5363 = vmatpush.bf16.xpose.msra.mxu0 %v7797_v63  ;;  %v9790_v63 = vld [vmem:[#allocation8 + $0x25c] sm:$0xf0]  ;;  %v7853_v57 = vor.u32 %v9833_v51, %v7852_v47 }
 0x2b4   :  { %5376 = vmatpush.bf16.xpose.msra.mxu1 %v7801_v0  ;;  %v9786_v0 = vld [vmem:[#allocation8 + $0x244] sm:$0xf]  ;;  %v7669_v3 = vor.u32 %v9790_v63, %v7668_v62  ;;  %v9821_v62 = vld [vmem:[#allocation8 + $0x35c] sm:$0xf] }
 0x2b5   :  { %5389 = vmatpush.bf16.xpose.msra.mxu2 %v7805_v11  ;;  %5402 = vmatpush.bf16.xpose.msra.mxu3 %v7809_v1  ;;  %v7670_v11 = vld [vmem:[#allocation8 + $0x260] sm:$0xf0]  ;;  %v7676_v1 = vld [vmem:[#allocation8 + $0x248] sm:$0xf]  ;;  %v7822_v63 = vld [vmem:[#allocation8 + $0x378] sm:$0xf0] }
 0x2b6   :  { %v10278_v58 = vpop.eup %10277  ;;  %v7673_v5 = vor.u32 %v9786_v0, %v7670_v11  ;;  %v7677_v6 = vor.u32 %v9791_v18, %v7676_v1  ;;  %v2681_v0 = vperm.slane %v10761_v46, 0  ;;  %v7825_v19 = vor.u32 %v9821_v62, %v7822_v63  ;;  %v7684_v62 = vld [vmem:[#allocation8 + $0x250] sm:$0xf] }
 0x2b7   :  { %v2142_v37 = vadd.f32 1.0, %v10278_v58  ;;  %v7812_v58 = vld [vmem:[#allocation8 + $0x350] sm:$0xf] }
 0x2b8   :  { %v9792_v63 = vld [vmem:[#allocation8 + $0x26c] sm:$0xf0] }
 0x2b9   :  { %10279 = vrcp.f32 %v2142_v37  ;;  %v9820_v37 = vld [vmem:[#allocation8 + $0x354] sm:$0xf] }
 0x2bb   :  { %5364 = vmatpush.bf16.xpose.msra.mxu0 %v7765_v12  ;;  %v7638_v12 = vld [vmem:[#allocation8 + $0x220] sm:$0xf0] }
 0x2bc   :  { %5377 = vmatpush.bf16.xpose.msra.mxu1 %v7769_v14  ;;  %v9783_v14 = vld [vmem:[#allocation8 + $0x224] sm:$0xf0]  ;;  %v7641_v27 = vor.u32 %v9778_v29, %v7638_v12  ;;  %v7788_v29 = vld [vmem:[#allocation8 + $0x318] sm:$0xf] }
 0x2bd   :  { %5390 = vmatpush.bf16.xpose.msra.mxu2 %v7773_v15  ;;  %5403 = vmatpush.bf16.xpose.msra.mxu3 %v7777_v20  ;;  %v9779_v15 = vld [vmem:[#allocation8 + $0x20c] sm:$0xf]  ;;  %v7876_v20 = vld [vmem:[#allocation8 + $0x3d0] sm:$0xf]  ;;  %v7645_v28 = vor.u32 %v9783_v14, %v7644_v13  ;;  %v9817_v12 = vld [vmem:[#allocation8 + $0x334] sm:$0xf0] }
 0x2be   :  { %v7649_v32 = vor.u32 %v9779_v15, %v7646_v16  ;;  %v7877_v33 = vor.u32 %v9840_v21, %v7876_v20  ;;  %v9813_v13 = vld [vmem:[#allocation8 + $0x31c] sm:$0xf]  ;;  %v7785_v20 = vor.u32 %v9812_v9, %v7782_v10  ;;  %v7789_v21 = vor.u32 %v9817_v12, %v7788_v29  ;;  %v9784_v9 = vld [vmem:[#allocation8 + $0x22c] sm:$0xf0]  ;;  %v9780_v10 = vld [vmem:[#allocation8 + $0x214] sm:$0xf] }
 0x2bf   :  { %v10280_v4 = vpop.eup %10279  ;;  %v7790_v14 = vld [vmem:[#allocation8 + $0x338] sm:$0xf0]  ;;  %v7654_v29 = vld [vmem:[#allocation8 + $0x230] sm:$0xf0]  ;;  %v7660_v12 = vld [vmem:[#allocation8 + $0x218] sm:$0xf] }
 0x2c0   :  { %2158 = vst [vmem:[#allocation14 + $0x38] sm:$0xff] %v10280_v4  ;;  %v10754_v7 = vpack.c.bf16 %v10280_v4, %v10280_v4  ;;  %v7793_v24 = vor.u32 %v9813_v13, %v7790_v14  ;;  %v9785_v13 = vld [vmem:[#allocation8 + $0x234] sm:$0xf0]  ;;  %v9781_v14 = vld [vmem:[#allocation8 + $0x21c] sm:$0xf] }
 0x2c1   :  { %6313 = dma.vmem_to_hbm [thread:$0]  %s6309_s3, 1024, %s6311_s26, [#allocation4]  }
 0x2c2   :  { %5356 = vmatmul.bf16.vlgmr.msrb.gmra.mxu3 %v10754_v7 }
 0x2c3   :  { %5365 = vmatpush.bf16.xpose.msra.mxu0 %v7733_v36  ;;  %v7889_v36 = vor.u32 %v9837_v30, %v7886_v31  ;;  %v9808_v30 = vld [vmem:[#allocation8 + $0x2ec] sm:$0xf0]  ;;  %v9804_v31 = vld [vmem:[#allocation8 + $0x2d4] sm:$0xf] }
 0x2c4   :  { %5378 = vmatpush.bf16.xpose.msra.mxu1 %v7737_v39  ;;  %v9832_v39 = vld [vmem:[#allocation8 + $0x3ac] sm:$0xf0] }
 0x2c5   :  { %5391 = vmatpush.bf16.xpose.msra.mxu2 %v7741_v41  ;;  %5404 = vmatpush.bf16.xpose.msra.mxu3 %v7745_v43  ;;  %v9828_v41 = vld [vmem:[#allocation8 + $0x394] sm:$0xf]  ;;  %v7845_v50 = vor.u32 %v9832_v39, %v7844_v38 }
 0x2c6   :  { %v7846_v43 = vld [vmem:[#allocation8 + $0x3b0] sm:$0xf0] }
 0x2c7   :  { %v7849_v56 = vor.u32 %v9828_v41, %v7846_v43 }
 0x2cb   :  { %5366 = vmatpush.bf16.xpose.msra.mxu0 %v7701_v59  ;;  %v9824_v59 = vld [vmem:[#allocation8 + $0x36c] sm:$0xf0] }
 0x2cc   :  { %5379 = vmatpush.bf16.xpose.msra.mxu1 %v7705_v60  ;;  %v7814_v60 = vld [vmem:[#allocation8 + $0x370] sm:$0xf0]  ;;  %v7813_v11 = vor.u32 %v9824_v59, %v7812_v58  ;;  %v9797_v58 = vld [vmem:[#allocation8 + $0x29c] sm:$0xf] }
 0x2cd   :  { %5392 = vmatpush.bf16.xpose.msra.mxu2 %v7709_v61  ;;  %5405 = vmatpush.bf16.xpose.msra.mxu3 %v7713_v17  ;;  %v7820_v61 = vld [vmem:[#allocation8 + $0x358] sm:$0xf]  ;;  %v7817_v1 = vor.u32 %v9820_v37, %v7814_v60  ;;  %v7726_v59 = vld [vmem:[#allocation8 + $0x2b8] sm:$0xf0]  ;;  %v7717_v37 = vor.u32 %v9800_v55, %v7716_v53  ;;  %v9891_v53 = vld [vmem:[#allocation8 + $0x58c] sm:$0xf] }
 0x2ce   :  { %v9825_v17 = vld [vmem:[#allocation8 + $0x374] sm:$0xf0]  ;;  %v8094_v55 = vld [vmem:[#allocation8 + $0x5a8] sm:$0xf0] }
 0x2cf   :  { %v7821_v18 = vor.u32 %v9825_v17, %v7820_v61  ;;  %v7729_v17 = vor.u32 %v9797_v58, %v7726_v59  ;;  %v8052_v58 = vld [vmem:[#allocation8 + $0x540] sm:$0xf] }
 0x2d0   :  { %v9886_v59 = vld [vmem:[#allocation8 + $0x55c] sm:$0xf0] }
 0x2d3   :  { %5367 = vmatpush.bf16.xpose.msra.mxu0 %v7669_v3 }
 0x2d4   :  { %5380 = vmatpush.bf16.xpose.msra.mxu1 %v7673_v5 }
 0x2d5   :  { %5393 = vmatpush.bf16.xpose.msra.mxu2 %v7677_v6  ;;  %5406 = vmatpush.bf16.xpose.msra.mxu3 %v7681_v8  ;;  %v7780_v6 = vld [vmem:[#allocation8 + $0x310] sm:$0xf] }
 0x2d6   :  { %v9816_v8 = vld [vmem:[#allocation8 + $0x32c] sm:$0xf0] }
 0x2d7   :  { %v7781_v15 = vor.u32 %v9816_v8, %v7780_v6  ;;  %v7652_v8 = vld [vmem:[#allocation8 + $0x210] sm:$0xf] }
 0x2db   :  { %5368 = vmatpush.bf16.xpose.msra.mxu0 %v7637_v23 }
 0x2dc   :  { %5381 = vmatpush.bf16.xpose.msra.mxu1 %v7641_v27 }
 0x2dd   :  { %5394 = vmatpush.bf16.xpose.msra.mxu2 %v7645_v28  ;;  %5407 = vmatpush.bf16.xpose.msra.mxu3 %v7649_v32  ;;  %v7748_v28 = vld [vmem:[#allocation8 + $0x2d0] sm:$0xf]  ;;  %v7750_v32 = vld [vmem:[#allocation8 + $0x2f0] sm:$0xf0] }
 0x2de   :  { %v7749_v38 = vor.u32 %v9808_v30, %v7748_v28  ;;  %v7753_v41 = vor.u32 %v9804_v31, %v7750_v32  ;;  %v7661_v28 = vor.u32 %v9785_v13, %v7660_v12  ;;  %v9899_v30 = vld [vmem:[#allocation8 + $0x5cc] sm:$0xf] }
 0x2df   :  { %v5266_v2 = vpop.f32.mrf.mxu0  ;;  %v8126_v31 = vld [vmem:[#allocation8 + $0x5e8] sm:$0xf0] }
 0x2e0   :  { %v5267_v3 = vadd.f32 %v5266_v2, %v2681_v0  ;;  %v5279_v4 = vpop.f32.mrf.mxu1  ;;  %v9788_v0 = vld [vmem:[#allocation8 + $0x254] sm:$0xf]  ;;  %v7694_v2 = vld [vmem:[#allocation8 + $0x278] sm:$0xf0] }
 0x2e2   :  { %5369 = vmatmul.bf16.vlgmr.msra.gmra.mxu0 %v10722_v42  ;;  %v5280_v5 = vadd.f32 %v5279_v4, %v5267_v3  ;;  %v7685_v3 = vor.u32 %v9792_v63, %v7684_v62  ;;  %v9883_v62 = vld [vmem:[#allocation8 + $0x54c] sm:$0xf] }
 0x2e3   :  { %5413 = vmatpush.bf16.xpose.msrb.mxu0 %v7877_v33  ;;  %5382 = vmatmul.bf16.vlgmr.msra.gmra.mxu1 %v10725_v49  ;;  %v7756_v33 = vld [vmem:[#allocation8 + $0x2d8] sm:$0xf]  ;;  %v8062_v63 = vld [vmem:[#allocation8 + $0x568] sm:$0xf0] }
 0x2e4   :  { %5426 = vmatpush.bf16.xpose.msrb.mxu1 %v7881_v34  ;;  %5395 = vmatmul.bf16.vlgmr.msra.gmra.mxu2 %v10729_v45  ;;  %v9809_v34 = vld [vmem:[#allocation8 + $0x2f4] sm:$0xf0] }
 0x2e5   :  { %5439 = vmatpush.bf16.xpose.msrb.mxu2 %v7885_v35  ;;  %5452 = vmatpush.bf16.xpose.msrb.mxu3 %v7889_v36  ;;  %v9805_v35 = vld [vmem:[#allocation8 + $0x2dc] sm:$0xf]  ;;  %v7757_v43 = vor.u32 %v9809_v34, %v7756_v33 }
 0x2e6   :  { %5408 = vmatmul.bf16.vlgmr.msra.gmra.mxu3 %v10733_v52  ;;  %v7758_v36 = vld [vmem:[#allocation8 + $0x2f8] sm:$0xf0] }
 0x2e7   :  { %v5292_v16 = vpop.f32.mrf.mxu2  ;;  %v5268_v25 = vpop.f32.mrf.mxu0  ;;  %v7761_v51 = vor.u32 %v9805_v35, %v7758_v36  ;;  %v8129_v36 = vor.u32 %v9899_v30, %v8126_v31  ;;  %v9867_v30 = vld [vmem:[#allocation8 + $0x4cc] sm:$0xf] }
 0x2e8   :  { %v5293_v22 = vadd.f32 %v5292_v16, %v5280_v5  ;;  %v5281_v26 = vpop.f32.mrf.mxu1  ;;  %v8116_v16 = vld [vmem:[#allocation8 + $0x5c0] sm:$0xf]  ;;  %v9903_v25 = vld [vmem:[#allocation8 + $0x5e4] sm:$0xf0]  ;;  %v7998_v31 = vld [vmem:[#allocation8 + $0x4e8] sm:$0xf0] }
 0x2e9   :  { %v5305_v23 = vpop.f32.mrf.mxu3  ;;  %v7657_v26 = vor.u32 %v9780_v10, %v7654_v29  ;;  %v9875_v10 = vld [vmem:[#allocation8 + $0x50c] sm:$0xf] }
 0x2ea   :  { %v10764_v27 = vadd.f32 %v5305_v23, %v5293_v22  ;;  %v7653_v22 = vor.u32 %v9784_v9, %v7652_v8  ;;  %v8118_v23 = vld [vmem:[#allocation8 + $0x5e0] sm:$0xf0]  ;;  %v8028_v8 = vld [vmem:[#allocation8 + $0x508] sm:$0xf]  ;;  %v8030_v29 = vld [vmem:[#allocation8 + $0x528] sm:$0xf0] }
 0x2eb   :  { %5414 = vmatpush.bf16.xpose.msrb.mxu0 %v7845_v50  ;;  %v9796_v50 = vld [vmem:[#allocation8 + $0x294] sm:$0xf]  ;;  %v9879_v9 = vld [vmem:[#allocation8 + $0x524] sm:$0xf0] }
 0x2ec   :  { %5427 = vmatpush.bf16.xpose.msrb.mxu1 %v7849_v56  ;;  %v7718_v56 = vld [vmem:[#allocation8 + $0x2b0] sm:$0xf0] }
 0x2ed   :  { %5440 = vmatpush.bf16.xpose.msrb.mxu2 %v7853_v57  ;;  %5453 = vmatpush.bf16.xpose.msrb.mxu3 %v7857_v44  ;;  %v7724_v57 = vld [vmem:[#allocation8 + $0x298] sm:$0xf]  ;;  %v7721_v60 = vor.u32 %v9796_v50, %v7718_v56 }
 0x2ee   :  { %v9801_v44 = vld [vmem:[#allocation8 + $0x2b4] sm:$0xf0] }
 0x2ef   :  { %v5294_v39 = vpop.f32.mrf.mxu2  ;;  %v7725_v61 = vor.u32 %v9801_v44, %v7724_v57  ;;  %v8097_v44 = vor.u32 %v9891_v53, %v8094_v55  ;;  %v9859_v53 = vld [vmem:[#allocation8 + $0x48c] sm:$0xf] }
 0x2f0   :  { %v9894_v39 = vld [vmem:[#allocation8 + $0x59c] sm:$0xf0]  ;;  %v7966_v55 = vld [vmem:[#allocation8 + $0x4a8] sm:$0xf0] }
 0x2f1   :  { %v5307_v47 = vpop.f32.mrf.mxu3 }
 0x2f2   :  { %v8092_v47 = vld [vmem:[#allocation8 + $0x588] sm:$0xf] }
 0x2f3   :  { %5415 = vmatpush.bf16.xpose.msrb.mxu0 %v7813_v11  ;;  %v7686_v11 = vld [vmem:[#allocation8 + $0x270] sm:$0xf0] }
 0x2f4   :  { %5428 = vmatpush.bf16.xpose.msrb.mxu1 %v7817_v1  ;;  %v7692_v1 = vld [vmem:[#allocation8 + $0x258] sm:$0xf]  ;;  %v7689_v4 = vor.u32 %v9788_v0, %v7686_v11  ;;  %v8053_v0 = vor.u32 %v9886_v59, %v8052_v58  ;;  %v7924_v58 = vld [vmem:[#allocation8 + $0x440] sm:$0xf] }
 0x2f5   :  { %5441 = vmatpush.bf16.xpose.msrb.mxu2 %v7821_v18  ;;  %5454 = vmatpush.bf16.xpose.msrb.mxu3 %v7825_v19  ;;  %v9793_v18 = vld [vmem:[#allocation8 + $0x274] sm:$0xf0]  ;;  %v9789_v19 = vld [vmem:[#allocation8 + $0x25c] sm:$0xf]  ;;  %v9854_v59 = vld [vmem:[#allocation8 + $0x45c] sm:$0xf0] }
 0x2f6   :  { %v7693_v5 = vor.u32 %v9793_v18, %v7692_v1  ;;  %v7697_v6 = vor.u32 %v9789_v19, %v7694_v2  ;;  %v8065_v18 = vor.u32 %v9883_v62, %v8062_v63  ;;  %v9851_v62 = vld [vmem:[#allocation8 + $0x44c] sm:$0xf] }
 0x2f7   :  { %v7934_v63 = vld [vmem:[#allocation8 + $0x468] sm:$0xf0] }
 0x2fb   :  { %5416 = vmatpush.bf16.xpose.msrb.mxu0 %v7781_v15  ;;  %v7662_v15 = vld [vmem:[#allocation8 + $0x238] sm:$0xf0] }
 0x2fc   :  { %5429 = vmatpush.bf16.xpose.msrb.mxu1 %v7785_v20  ;;  %v9902_v20 = vld [vmem:[#allocation8 + $0x5dc] sm:$0xf0]  ;;  %v7665_v32 = vor.u32 %v9781_v14, %v7662_v15  ;;  %v8029_v15 = vor.u32 %v9879_v9, %v8028_v8  ;;  %v7900_v8 = vld [vmem:[#allocation8 + $0x408] sm:$0xf] }
 0x2fd   :  { %5442 = vmatpush.bf16.xpose.msrb.mxu2 %v7789_v21  ;;  %5455 = vmatpush.bf16.xpose.msrb.mxu3 %v7793_v24  ;;  %v9898_v21 = vld [vmem:[#allocation8 + $0x5c4] sm:$0xf]  ;;  %v8124_v24 = vld [vmem:[#allocation8 + $0x5c8] sm:$0xf]  ;;  %v8117_v33 = vor.u32 %v9902_v20, %v8116_v16  ;;  %v8033_v16 = vor.u32 %v9875_v10, %v8030_v29  ;;  %v9843_v10 = vld [vmem:[#allocation8 + $0x40c] sm:$0xf] }
 0x2fe   :  { %v8121_v34 = vor.u32 %v9898_v21, %v8118_v23  ;;  %v8125_v35 = vor.u32 %v9903_v25, %v8124_v24  ;;  %v9870_v23 = vld [vmem:[#allocation8 + $0x4dc] sm:$0xf0]  ;;  %v9866_v24 = vld [vmem:[#allocation8 + $0x4c4] sm:$0xf]  ;;  %v9847_v9 = vld [vmem:[#allocation8 + $0x424] sm:$0xf0] }
 0x2ff   :  { %v7990_v25 = vld [vmem:[#allocation8 + $0x4e0] sm:$0xf0]  ;;  %v7902_v29 = vld [vmem:[#allocation8 + $0x428] sm:$0xf0] }
 0x303   :  { %5417 = vmatpush.bf16.xpose.msrb.mxu0 %v7749_v38  ;;  %v8084_v38 = vld [vmem:[#allocation8 + $0x580] sm:$0xf] }
 0x304   :  { %5430 = vmatpush.bf16.xpose.msrb.mxu1 %v7753_v41  ;;  %v9890_v41 = vld [vmem:[#allocation8 + $0x584] sm:$0xf]  ;;  %v8085_v50 = vor.u32 %v9894_v39, %v8084_v38  ;;  %v7956_v38 = vld [vmem:[#allocation8 + $0x480] sm:$0xf] }
 0x305   :  { %5443 = vmatpush.bf16.xpose.msrb.mxu2 %v7757_v43  ;;  %5456 = vmatpush.bf16.xpose.msrb.mxu3 %v7761_v51  ;;  %v8086_v43 = vld [vmem:[#allocation8 + $0x5a0] sm:$0xf0]  ;;  %v9895_v51 = vld [vmem:[#allocation8 + $0x5a4] sm:$0xf0]  ;;  %v9862_v39 = vld [vmem:[#allocation8 + $0x49c] sm:$0xf0] }
 0x306   :  { %v8089_v56 = vor.u32 %v9890_v41, %v8086_v43  ;;  %v8093_v57 = vor.u32 %v9895_v51, %v8092_v47  ;;  %v9858_v41 = vld [vmem:[#allocation8 + $0x484] sm:$0xf]  ;;  %v7964_v47 = vld [vmem:[#allocation8 + $0x488] sm:$0xf] }
 0x307   :  { %v7958_v43 = vld [vmem:[#allocation8 + $0x4a0] sm:$0xf0]  ;;  %v9863_v51 = vld [vmem:[#allocation8 + $0x4a4] sm:$0xf0] }
 0x30b   :  { %5418 = vmatpush.bf16.xpose.msrb.mxu0 %v7717_v37  ;;  %v9882_v37 = vld [vmem:[#allocation8 + $0x544] sm:$0xf] }
 0x30c   :  { %5431 = vmatpush.bf16.xpose.msrb.mxu1 %v7721_v60  ;;  %v8054_v60 = vld [vmem:[#allocation8 + $0x560] sm:$0xf0] }
 0x30d   :  { %5444 = vmatpush.bf16.xpose.msrb.mxu2 %v7725_v61  ;;  %5457 = vmatpush.bf16.xpose.msrb.mxu3 %v7729_v17  ;;  %v8060_v61 = vld [vmem:[#allocation8 + $0x548] sm:$0xf]  ;;  %v8057_v11 = vor.u32 %v9882_v37, %v8054_v60  ;;  %v9850_v37 = vld [vmem:[#allocation8 + $0x444] sm:$0xf] }
 0x30e   :  { %v9887_v17 = vld [vmem:[#allocation8 + $0x564] sm:$0xf0]  ;;  %v7926_v60 = vld [vmem:[#allocation8 + $0x460] sm:$0xf0] }
 0x30f   :  { %v8061_v1 = vor.u32 %v9887_v17, %v8060_v61  ;;  %v7932_v61 = vld [vmem:[#allocation8 + $0x448] sm:$0xf] }
 0x310   :  { %v9855_v17 = vld [vmem:[#allocation8 + $0x464] sm:$0xf0] }
 0x313   :  { %5419 = vmatpush.bf16.xpose.msrb.mxu0 %v7685_v3  ;;  %v8020_v3 = vld [vmem:[#allocation8 + $0x500] sm:$0xf] }
 0x314   :  { %5432 = vmatpush.bf16.xpose.msrb.mxu1 %v7689_v4  ;;  %v9878_v4 = vld [vmem:[#allocation8 + $0x51c] sm:$0xf0] }
 0x315   :  { %5445 = vmatpush.bf16.xpose.msrb.mxu2 %v7693_v5  ;;  %5458 = vmatpush.bf16.xpose.msrb.mxu3 %v7697_v6  ;;  %v9874_v5 = vld [vmem:[#allocation8 + $0x504] sm:$0xf]  ;;  %v8021_v12 = vor.u32 %v9878_v4, %v8020_v3  ;;  %v7892_v3 = vld [vmem:[#allocation8 + $0x400] sm:$0xf] }
 0x316   :  { %v8022_v6 = vld [vmem:[#allocation8 + $0x520] sm:$0xf0]  ;;  %v9846_v4 = vld [vmem:[#allocation8 + $0x41c] sm:$0xf0] }
 0x317   :  { %v8025_v14 = vor.u32 %v9874_v5, %v8022_v6  ;;  %v9842_v5 = vld [vmem:[#allocation8 + $0x404] sm:$0xf] }
 0x318   :  { %v7894_v6 = vld [vmem:[#allocation8 + $0x420] sm:$0xf0] }
 0x31b   :  { %5420 = vmatpush.bf16.xpose.msrb.mxu0 %v7653_v22  ;;  %v7988_v22 = vld [vmem:[#allocation8 + $0x4c0] sm:$0xf] }
 0x31c   :  { %5433 = vmatpush.bf16.xpose.msrb.mxu1 %v7657_v26  ;;  %v7996_v26 = vld [vmem:[#allocation8 + $0x4c8] sm:$0xf] }
 0x31d   :  { %5446 = vmatpush.bf16.xpose.msrb.mxu2 %v7661_v28  ;;  %5459 = vmatpush.bf16.xpose.msrb.mxu3 %v7665_v32  ;;  %v9871_v28 = vld [vmem:[#allocation8 + $0x4e4] sm:$0xf0]  ;;  %v7989_v32 = vor.u32 %v9870_v23, %v7988_v22  ;;  %v9905_v22 = vld [vmem:[#allocation8 + $0x5f4] sm:$0xf0]  ;;  %v7897_v23 = vor.u32 %v9842_v5, %v7894_v6  ;;  %v8036_v6 = vld [vmem:[#allocation8 + $0x510] sm:$0xf] }
 0x31f   :  { %v10770_v19 = vpop.f32.mrf.mxu0 }
 0x320   :  { %v10772_v2 = vpop.f32.mrf.mxu1 }
 0x322   :  { %5421 = vmatmul.bf16.vlgmr.msrb.gmra.mxu0 %v10744_v48 }
 0x323   :  { %5465 = vmatpush.bf16.xpose.msra.mxu0 %v8117_v33  ;;  %5434 = vmatmul.bf16.vlgmr.msrb.gmra.mxu1 %v10748_v54  ;;  %v7993_v33 = vor.u32 %v9866_v24, %v7990_v25  ;;  %v7901_v24 = vor.u32 %v9847_v9, %v7900_v8  ;;  %v9901_v25 = vld [vmem:[#allocation8 + $0x5dc] sm:$0xf]  ;;  %v9880_v8 = vld [vmem:[#allocation8 + $0x52c] sm:$0xf0]  ;;  %v9876_v9 = vld [vmem:[#allocation8 + $0x514] sm:$0xf] }
 0x324   :  { %5478 = vmatpush.bf16.xpose.msra.mxu1 %v8121_v34  ;;  %5447 = vmatmul.bf16.vlgmr.msrb.gmra.mxu2 %v10740_v40  ;;  %v7997_v34 = vor.u32 %v9871_v28, %v7996_v26  ;;  %v8142_v26 = vld [vmem:[#allocation8 + $0x5f8] sm:$0xf0]  ;;  %v7905_v28 = vor.u32 %v9843_v10, %v7902_v29  ;;  %v8038_v29 = vld [vmem:[#allocation8 + $0x530] sm:$0xf0] }
 0x325   :  { %5491 = vmatpush.bf16.xpose.msra.mxu2 %v8125_v35  ;;  %5504 = vmatpush.bf16.xpose.msra.mxu3 %v8129_v36  ;;  %v8001_v36 = vor.u32 %v9867_v30, %v7998_v31 }
 0x326   :  { %5460 = vmatmul.bf16.vlgmr.msrb.gmra.mxu3 %v10754_v7 }
 0x327   :  { %v10774_v13 = vpop.f32.mrf.mxu2  ;;  %v5320_v20 = vpop.f32.mrf.mxu0 }
 0x328   :  { %v5333_v21 = vpop.f32.mrf.mxu1  ;;  %v8134_v20 = vld [vmem:[#allocation8 + $0x5f0] sm:$0xf0] }
 0x329   :  { %v8140_v21 = vld [vmem:[#allocation8 + $0x5d8] sm:$0xf] }
 0x32b   :  { %5466 = vmatpush.bf16.xpose.msra.mxu0 %v8085_v50  ;;  %v7957_v50 = vor.u32 %v9862_v39, %v7956_v38  ;;  %v9892_v38 = vld [vmem:[#allocation8 + $0x594] sm:$0xf] }
 0x32c   :  { %5479 = vmatpush.bf16.xpose.msra.mxu1 %v8089_v56  ;;  %v7961_v56 = vor.u32 %v9858_v41, %v7958_v43  ;;  %v8102_v41 = vld [vmem:[#allocation8 + $0x5b0] sm:$0xf0]  ;;  %v8108_v43 = vld [vmem:[#allocation8 + $0x598] sm:$0xf] }
 0x32d   :  { %5492 = vmatpush.bf16.xpose.msra.mxu2 %v8093_v57  ;;  %5505 = vmatpush.bf16.xpose.msra.mxu3 %v8097_v44  ;;  %v7965_v57 = vor.u32 %v9863_v51, %v7964_v47  ;;  %v7969_v44 = vor.u32 %v9859_v53, %v7966_v55  ;;  %v9897_v47 = vld [vmem:[#allocation8 + $0x5b4] sm:$0xf0]  ;;  %v9893_v51 = vld [vmem:[#allocation8 + $0x59c] sm:$0xf]  ;;  %v8105_v55 = vor.u32 %v9892_v38, %v8102_v41 }
 0x32e   :  { %v8110_v53 = vld [vmem:[#allocation8 + $0x5b8] sm:$0xf0] }
 0x32f   :  { %v5346_v35 = vpop.f32.mrf.mxu2  ;;  %v8014_v41 = vld [vmem:[#allocation8 + $0x4f8] sm:$0xf0] }
 0x330   :  { %v8100_v35 = vld [vmem:[#allocation8 + $0x590] sm:$0xf] }
 0x333   :  { %5467 = vmatpush.bf16.xpose.msra.mxu0 %v8053_v0  ;;  %v7925_v0 = vor.u32 %v9854_v59, %v7924_v58  ;;  %v8068_v58 = vld [vmem:[#allocation8 + $0x550] sm:$0xf]  ;;  %v9884_v59 = vld [vmem:[#allocation8 + $0x554] sm:$0xf] }
 0x334   :  { %5480 = vmatpush.bf16.xpose.msra.mxu1 %v8057_v11  ;;  %v7929_v11 = vor.u32 %v9850_v37, %v7926_v60  ;;  %v8070_v37 = vld [vmem:[#allocation8 + $0x570] sm:$0xf0] }
 0x335   :  { %5493 = vmatpush.bf16.xpose.msra.mxu2 %v8061_v1  ;;  %5506 = vmatpush.bf16.xpose.msra.mxu3 %v8065_v18  ;;  %v7933_v1 = vor.u32 %v9855_v17, %v7932_v61  ;;  %v7937_v18 = vor.u32 %v9851_v62, %v7934_v63  ;;  %v8076_v61 = vld [vmem:[#allocation8 + $0x558] sm:$0xf]  ;;  %v9885_v62 = vld [vmem:[#allocation8 + $0x55c] sm:$0xf] }
 0x336   :  { %v9889_v17 = vld [vmem:[#allocation8 + $0x574] sm:$0xf0]  ;;  %v8078_v63 = vld [vmem:[#allocation8 + $0x578] sm:$0xf0] }
 0x33b   :  { %5468 = vmatpush.bf16.xpose.msra.mxu0 %v8021_v12  ;;  %v8132_v12 = vld [vmem:[#allocation8 + $0x5d0] sm:$0xf] }
 0x33c   :  { %5481 = vmatpush.bf16.xpose.msra.mxu1 %v8025_v14  ;;  %v9904_v14 = vld [vmem:[#allocation8 + $0x5ec] sm:$0xf0] }
 0x33d   :  { %5494 = vmatpush.bf16.xpose.msra.mxu2 %v8029_v15  ;;  %5507 = vmatpush.bf16.xpose.msra.mxu3 %v8033_v16  ;;  %v9900_v15 = vld [vmem:[#allocation8 + $0x5d4] sm:$0xf]  ;;  %v7893_v16 = vor.u32 %v9846_v4, %v7892_v3  ;;  %v8133_v30 = vor.u32 %v9904_v14, %v8132_v12  ;;  %v8081_v3 = vor.u32 %v9885_v62, %v8078_v63  ;;  %v8044_v12 = vld [vmem:[#allocation8 + $0x518] sm:$0xf]  ;;  %v9856_v62 = vld [vmem:[#allocation8 + $0x46c] sm:$0xf0] }
 0x33e   :  { %v8137_v31 = vor.u32 %v9900_v15, %v8134_v20  ;;  %v9881_v14 = vld [vmem:[#allocation8 + $0x534] sm:$0xf0]  ;;  %v8046_v20 = vld [vmem:[#allocation8 + $0x538] sm:$0xf0]  ;;  %v9852_v63 = vld [vmem:[#allocation8 + $0x454] sm:$0xf] }
 0x343   :  { %5469 = vmatpush.bf16.xpose.msra.mxu0 %v7989_v32  ;;  %v8141_v32 = vor.u32 %v9905_v22, %v8140_v21  ;;  %v8037_v21 = vor.u32 %v9880_v8, %v8036_v6 }
 0x344   :  { %5482 = vmatpush.bf16.xpose.msra.mxu1 %v7993_v33  ;;  %v5319_v33 = vadd.f32 %v10770_v19, %v10764_v27 }
 0x345   :  { %5495 = vmatpush.bf16.xpose.msra.mxu2 %v7997_v34  ;;  %5508 = vmatpush.bf16.xpose.msra.mxu3 %v8001_v36  ;;  %v8145_v34 = vor.u32 %v9901_v25, %v8142_v26  ;;  %v9896_v36 = vld [vmem:[#allocation8 + $0x5ac] sm:$0xf0] }
 0x346   :  { %v5332_v39 = vadd.f32 %v10772_v2, %v5319_v33  ;;  %v8101_v19 = vor.u32 %v9896_v36, %v8100_v35  ;;  %v9868_v33 = vld [vmem:[#allocation8 + $0x4d4] sm:$0xf]  ;;  %v8012_v35 = vld [vmem:[#allocation8 + $0x4d8] sm:$0xf] }
 0x347   :  { %v9873_v36 = vld [vmem:[#allocation8 + $0x4f4] sm:$0xf0] }
 0x348   :  { %v5345_v27 = vadd.f32 %v10774_v13, %v5332_v39  ;;  %v9888_v13 = vld [vmem:[#allocation8 + $0x56c] sm:$0xf0]  ;;  %v9869_v39 = vld [vmem:[#allocation8 + $0x4dc] sm:$0xf] }
 0x34b   :  { %5470 = vmatpush.bf16.xpose.msra.mxu0 %v7957_v50  ;;  %v8109_v50 = vor.u32 %v9897_v47, %v8108_v43 }
 0x34c   :  { %5483 = vmatpush.bf16.xpose.msra.mxu1 %v7961_v56  ;;  %v5357_v56 = vpop.f32.mrf.mxu3 }
 0x34d   :  { %5496 = vmatpush.bf16.xpose.msra.mxu2 %v7965_v57  ;;  %5509 = vmatpush.bf16.xpose.msra.mxu3 %v7969_v44  ;;  %v8113_v57 = vor.u32 %v9893_v51, %v8110_v53  ;;  %v5358_v2 = vadd.f32 %v5357_v56, %v5345_v27  ;;  %v8013_v53 = vor.u32 %v9873_v36, %v8012_v35  ;;  %v9860_v56 = vld [vmem:[#allocation8 + $0x494] sm:$0xf]  ;;  %v9963_v36 = vld [vmem:[#allocation8 + $0x7cc] sm:$0xf] }
 0x34e   :  { %v8017_v27 = vor.u32 %v9869_v39, %v8014_v41 }
 0x34f   :  { %v6089_v44 = vsub.f32 0.0, %v5358_v2  ;;  %v7980_v2 = vld [vmem:[#allocation8 + $0x498] sm:$0xf] }
 0x351   :  { %v6097_v60 = vmul.f32 1.442695, %v6089_v44  ;;  %v9865_v44 = vld [vmem:[#allocation8 + $0x4b4] sm:$0xf0] }
 0x353   :  { %5471 = vmatpush.bf16.xpose.msra.mxu0 %v7925_v0  ;;  %10281 = vpow2.f32 %v6097_v60  ;;  %v8069_v0 = vor.u32 %v9888_v13, %v8068_v58  ;;  %v9861_v58 = vld [vmem:[#allocation8 + $0x49c] sm:$0xf]  ;;  %v7981_v60 = vor.u32 %v9865_v44, %v7980_v2  ;;  %v9955_v2 = vld [vmem:[#allocation8 + $0x78c] sm:$0xf] }
 0x354   :  { %5484 = vmatpush.bf16.xpose.msra.mxu1 %v7929_v11  ;;  %v8073_v11 = vor.u32 %v9884_v59, %v8070_v37  ;;  %v7982_v13 = vld [vmem:[#allocation8 + $0x4b8] sm:$0xf0]  ;;  %v8350_v44 = vld [vmem:[#allocation8 + $0x7a8] sm:$0xf0] }
 0x355   :  { %5497 = vmatpush.bf16.xpose.msra.mxu2 %v7933_v1  ;;  %5510 = vmatpush.bf16.xpose.msra.mxu3 %v7937_v18  ;;  %v8077_v1 = vor.u32 %v9889_v17, %v8076_v61  ;;  %v5359_v18 = vpop.f32.mrf.mxu3  ;;  %v7985_v61 = vor.u32 %v9861_v58, %v7982_v13  ;;  %v7940_v17 = vld [vmem:[#allocation8 + $0x450] sm:$0xf] }
 0x356   :  { %v9853_v18 = vld [vmem:[#allocation8 + $0x45c] sm:$0xf]  ;;  %v7941_v6 = vor.u32 %v9856_v62, %v7940_v17  ;;  %v9950_v17 = vld [vmem:[#allocation8 + $0x75c] sm:$0xf0] }
 0x359   :  { %v10282_v10 = vpop.eup %10281 }
 0x35a   :  { %v6113_v15 = vadd.f32 1.0, %v10282_v10 }
 0x35b   :  { %5472 = vmatpush.bf16.xpose.msra.mxu0 %v7893_v16  ;;  %v9877_v16 = vld [vmem:[#allocation8 + $0x51c] sm:$0xf] }
 0x35c   :  { %5485 = vmatpush.bf16.xpose.msra.mxu1 %v7897_v23  ;;  %10283 = vrcp.f32 %v6113_v15  ;;  %v8041_v23 = vor.u32 %v9876_v9, %v8038_v29  ;;  %v8049_v25 = vor.u32 %v9877_v16, %v8046_v20  ;;  %v7908_v29 = vld [vmem:[#allocation8 + $0x410] sm:$0xf]  ;;  %v7910_v15 = vld [vmem:[#allocation8 + $0x430] sm:$0xf0]  ;;  %v7916_v16 = vld [vmem:[#allocation8 + $0x418] sm:$0xf] }
 0x35d   :  { %5498 = vmatpush.bf16.xpose.msra.mxu2 %v7901_v24  ;;  %5511 = vmatpush.bf16.xpose.msra.mxu3 %v7905_v28  ;;  %v8045_v24 = vor.u32 %v9881_v14, %v8044_v12  ;;  %v9848_v12 = vld [vmem:[#allocation8 + $0x42c] sm:$0xf0]  ;;  %v9844_v14 = vld [vmem:[#allocation8 + $0x414] sm:$0xf]  ;;  %v9849_v20 = vld [vmem:[#allocation8 + $0x434] sm:$0xf0] }
 0x35e   :  { %v7917_v35 = vor.u32 %v9849_v20, %v7916_v16  ;;  %v8278_v16 = vld [vmem:[#allocation8 + $0x720] sm:$0xf0]  ;;  %v8284_v20 = vld [vmem:[#allocation8 + $0x708] sm:$0xf] }
 0x35f   :  { %v10784_v4 = vpop.f32.mrf.mxu0 }
 0x360   :  { %v10786_v5 = vpop.f32.mrf.mxu1 }
 0x362   :  { %5473 = vmatmul.bf16.vlgmr.msra.gmra.mxu0 %v10722_v42  ;;  %v10284_v38 = vpop.eup %10283 }
 0x363   :  { %5517 = vmatpush.bf16.xpose.msrb.mxu0 %v8133_v30  ;;  %5486 = vmatmul.bf16.vlgmr.msra.gmra.mxu1 %v10725_v49  ;;  %6129 = vst [vmem:[#allocation15] sm:$0xff] %v10284_v38  ;;  %v8382_v38 = vld [vmem:[#allocation8 + $0x7e8] sm:$0xf0] }
 0x364   :  { %5530 = vmatpush.bf16.xpose.msrb.mxu1 %v8137_v31  ;;  %5499 = vmatmul.bf16.vlgmr.msra.gmra.mxu2 %v10729_v45  ;;  %v8004_v31 = vld [vmem:[#allocation8 + $0x4d0] sm:$0xf] }
 0x365   :  { %5543 = vmatpush.bf16.xpose.msrb.mxu2 %v8141_v32  ;;  %5556 = vmatpush.bf16.xpose.msrb.mxu3 %v8145_v34  ;;  %v9872_v32 = vld [vmem:[#allocation8 + $0x4ec] sm:$0xf0]  ;;  %v8006_v34 = vld [vmem:[#allocation8 + $0x4f0] sm:$0xf0] }
 0x366   :  { %5512 = vmatmul.bf16.vlgmr.msra.gmra.mxu3 %v10733_v52  ;;  %v8005_v43 = vor.u32 %v9872_v32, %v8004_v31  ;;  %v8009_v51 = vor.u32 %v9868_v33, %v8006_v34  ;;  %v8374_v31 = vld [vmem:[#allocation8 + $0x7e0] sm:$0xf0]  ;;  %v8380_v32 = vld [vmem:[#allocation8 + $0x7c8] sm:$0xf]  ;;  %v7913_v34 = vor.u32 %v9844_v14, %v7910_v15  ;;  %v8276_v14 = vld [vmem:[#allocation8 + $0x700] sm:$0xf] }
 0x367   :  { %v10788_v22 = vpop.f32.mrf.mxu2  ;;  %v5372_v26 = vpop.f32.mrf.mxu0  ;;  %v9967_v33 = vld [vmem:[#allocation8 + $0x7e4] sm:$0xf0]  ;;  %v9938_v15 = vld [vmem:[#allocation8 + $0x704] sm:$0xf] }
 0x368   :  { %v5385_v30 = vpop.f32.mrf.mxu1  ;;  %v9962_v26 = vld [vmem:[#allocation8 + $0x7c4] sm:$0xf] }
 0x369   :  { %v10790_v28 = vpop.f32.mrf.mxu3  ;;  %v7909_v30 = vor.u32 %v9848_v12, %v7908_v29 }
 0x36b   :  { %5518 = vmatpush.bf16.xpose.msrb.mxu0 %v8101_v19 }
 0x36c   :  { %5531 = vmatpush.bf16.xpose.msrb.mxu1 %v8105_v55  ;;  %v7972_v55 = vld [vmem:[#allocation8 + $0x490] sm:$0xf] }
 0x36d   :  { %5544 = vmatpush.bf16.xpose.msrb.mxu2 %v8109_v50  ;;  %5557 = vmatpush.bf16.xpose.msrb.mxu3 %v8113_v57  ;;  %v9864_v50 = vld [vmem:[#allocation8 + $0x4ac] sm:$0xf0]  ;;  %v7974_v57 = vld [vmem:[#allocation8 + $0x4b0] sm:$0xf0] }
 0x36e   :  { %v7973_v59 = vor.u32 %v9864_v50, %v7972_v55  ;;  %v7977_v37 = vor.u32 %v9860_v56, %v7974_v57  ;;  %v9954_v55 = vld [vmem:[#allocation8 + $0x784] sm:$0xf]  ;;  %v8348_v56 = vld [vmem:[#allocation8 + $0x788] sm:$0xf] }
 0x36f   :  { %v5398_v47 = vpop.f32.mrf.mxu2  ;;  %v8342_v50 = vld [vmem:[#allocation8 + $0x7a0] sm:$0xf0]  ;;  %v9959_v57 = vld [vmem:[#allocation8 + $0x7a4] sm:$0xf0] }
 0x370   :  { %v8381_v47 = vor.u32 %v9967_v33, %v8380_v32 }
 0x371   :  { %v5411_v19 = vpop.f32.mrf.mxu3 }
 0x372   :  { %v9958_v19 = vld [vmem:[#allocation8 + $0x79c] sm:$0xf0] }
 0x373   :  { %5519 = vmatpush.bf16.xpose.msrb.mxu0 %v8069_v0  ;;  %v7942_v0 = vld [vmem:[#allocation8 + $0x470] sm:$0xf0] }
 0x374   :  { %5532 = vmatpush.bf16.xpose.msrb.mxu1 %v8073_v11  ;;  %v7948_v11 = vld [vmem:[#allocation8 + $0x458] sm:$0xf]  ;;  %v7945_v8 = vor.u32 %v9852_v63, %v7942_v0  ;;  %v8310_v63 = vld [vmem:[#allocation8 + $0x760] sm:$0xf0]  ;;  %v8316_v0 = vld [vmem:[#allocation8 + $0x748] sm:$0xf] }
 0x375   :  { %5545 = vmatpush.bf16.xpose.msrb.mxu2 %v8077_v1  ;;  %5558 = vmatpush.bf16.xpose.msrb.mxu3 %v8081_v3  ;;  %v9857_v1 = vld [vmem:[#allocation8 + $0x474] sm:$0xf0]  ;;  %v7950_v3 = vld [vmem:[#allocation8 + $0x478] sm:$0xf0] }
 0x376   :  { %v7949_v9 = vor.u32 %v9857_v1, %v7948_v11  ;;  %v7953_v10 = vor.u32 %v9853_v18, %v7950_v3  ;;  %v9951_v11 = vld [vmem:[#allocation8 + $0x764] sm:$0xf0]  ;;  %v9947_v1 = vld [vmem:[#allocation8 + $0x74c] sm:$0xf] }
 0x377   :  { %v8318_v18 = vld [vmem:[#allocation8 + $0x768] sm:$0xf0] }
 0x37b   :  { %5520 = vmatpush.bf16.xpose.msrb.mxu0 %v8037_v21  ;;  %v9845_v21 = vld [vmem:[#allocation8 + $0x41c] sm:$0xf] }
 0x37c   :  { %5533 = vmatpush.bf16.xpose.msrb.mxu1 %v8041_v23  ;;  %v7918_v23 = vld [vmem:[#allocation8 + $0x438] sm:$0xf0] }
 0x37d   :  { %5546 = vmatpush.bf16.xpose.msrb.mxu2 %v8045_v24  ;;  %5559 = vmatpush.bf16.xpose.msrb.mxu3 %v8049_v25  ;;  %v8372_v24 = vld [vmem:[#allocation8 + $0x7c0] sm:$0xf]  ;;  %v7921_v39 = vor.u32 %v9845_v21, %v7918_v23  ;;  %v9943_v21 = vld [vmem:[#allocation8 + $0x724] sm:$0xf0]  ;;  %v9939_v23 = vld [vmem:[#allocation8 + $0x70c] sm:$0xf] }
 0x37e   :  { %v9966_v25 = vld [vmem:[#allocation8 + $0x7dc] sm:$0xf0] }
 0x37f   :  { %v8373_v41 = vor.u32 %v9966_v25, %v8372_v24  ;;  %v8286_v24 = vld [vmem:[#allocation8 + $0x728] sm:$0xf0] }
 0x383   :  { %5521 = vmatpush.bf16.xpose.msrb.mxu0 %v8005_v43  ;;  %v8377_v43 = vor.u32 %v9962_v26, %v8374_v31  ;;  %v8285_v31 = vor.u32 %v9943_v21, %v8284_v20 }
 0x384   :  { %5534 = vmatpush.bf16.xpose.msrb.mxu1 %v8009_v51  ;;  %v8385_v51 = vor.u32 %v9963_v36, %v8382_v38 }
 0x385   :  { %5547 = vmatpush.bf16.xpose.msrb.mxu2 %v8013_v53  ;;  %5560 = vmatpush.bf16.xpose.msrb.mxu3 %v8017_v27  ;;  %v2682_v53 = vperm.slane %v10761_v46, 1  ;;  %v8340_v27 = vld [vmem:[#allocation8 + $0x780] sm:$0xf]  ;;  %v8349_v46 = vor.u32 %v9959_v57, %v8348_v56 }
 0x386   :  { %v8341_v13 = vor.u32 %v9958_v19, %v8340_v27  ;;  %v9935_v27 = vld [vmem:[#allocation8 + $0x6e4] sm:$0xf0]  ;;  %v9931_v19 = vld [vmem:[#allocation8 + $0x6cc] sm:$0xf] }
 0x387   :  { %v5371_v58 = vadd.f32 %v10784_v4, %v2682_v53  ;;  %v9946_v4 = vld [vmem:[#allocation8 + $0x744] sm:$0xf]  ;;  %v8252_v53 = vld [vmem:[#allocation8 + $0x6c8] sm:$0xf] }
 0x38b   :  { %5522 = vmatpush.bf16.xpose.msrb.mxu0 %v7973_v59  ;;  %v8345_v59 = vor.u32 %v9954_v55, %v8342_v50  ;;  %v8254_v55 = vld [vmem:[#allocation8 + $0x6e8] sm:$0xf0] }
 0x38c   :  { %5535 = vmatpush.bf16.xpose.msrb.mxu1 %v7977_v37  ;;  %v8353_v37 = vor.u32 %v9955_v2, %v8350_v44  ;;  %v8253_v44 = vor.u32 %v9935_v27, %v8252_v53  ;;  %v8398_v53 = vld [vmem:[#allocation8 + $0x7f8] sm:$0xf0] }
 0x38d   :  { %5548 = vmatpush.bf16.xpose.msrb.mxu2 %v7981_v60  ;;  %5561 = vmatpush.bf16.xpose.msrb.mxu3 %v7985_v61  ;;  %v5384_v60 = vadd.f32 %v10786_v5, %v5371_v58  ;;  %v8308_v61 = vld [vmem:[#allocation8 + $0x740] sm:$0xf]  ;;  %v8321_v5 = vor.u32 %v9947_v1, %v8318_v18 }
 0x38e   :  { %v8309_v3 = vor.u32 %v9950_v17, %v8308_v61  ;;  %v8220_v61 = vld [vmem:[#allocation8 + $0x688] sm:$0xf] }
 0x38f   :  { %v5397_v62 = vadd.f32 %v10788_v22, %v5384_v60  ;;  %v9942_v22 = vld [vmem:[#allocation8 + $0x71c] sm:$0xf0]  ;;  %v8214_v60 = vld [vmem:[#allocation8 + $0x6a0] sm:$0xf0]  ;;  %v9927_v17 = vld [vmem:[#allocation8 + $0x6a4] sm:$0xf0] }
 0x390   :  { %v8277_v26 = vor.u32 %v9942_v22, %v8276_v14  ;;  %v8221_v18 = vor.u32 %v9927_v17, %v8220_v61  ;;  %v8190_v14 = vld [vmem:[#allocation8 + $0x668] sm:$0xf0] }
 0x393   :  { %5523 = vmatpush.bf16.xpose.msrb.mxu0 %v7941_v6  ;;  %v8313_v6 = vor.u32 %v9946_v4, %v8310_v63  ;;  %v9923_v4 = vld [vmem:[#allocation8 + $0x68c] sm:$0xf] }
 0x394   :  { %5536 = vmatpush.bf16.xpose.msrb.mxu1 %v7945_v8  ;;  %v8317_v8 = vor.u32 %v9951_v11, %v8316_v0 }
 0x395   :  { %5549 = vmatpush.bf16.xpose.msrb.mxu2 %v7949_v9  ;;  %5562 = vmatpush.bf16.xpose.msrb.mxu3 %v7953_v10  ;;  %v5410_v9 = vadd.f32 %v10790_v28, %v5397_v62  ;;  %v8281_v28 = vor.u32 %v9938_v15, %v8278_v16  ;;  %v8222_v62 = vld [vmem:[#allocation8 + $0x6a8] sm:$0xf0] }
 0x39b   :  { %5524 = vmatpush.bf16.xpose.msrb.mxu0 %v7909_v30 }
 0x39c   :  { %5537 = vmatpush.bf16.xpose.msrb.mxu1 %v7913_v34  ;;  %v8289_v34 = vor.u32 %v9939_v23, %v8286_v24  ;;  %v8148_v23 = vld [vmem:[#allocation8 + $0x600] sm:$0xf] }
 0x39d   :  { %5550 = vmatpush.bf16.xpose.msrb.mxu2 %v7917_v35  ;;  %5563 = vmatpush.bf16.xpose.msrb.mxu3 %v7921_v39  ;;  %v8244_v39 = vld [vmem:[#allocation8 + $0x6c0] sm:$0xf] }
 0x39e   :  { %v9910_v24 = vld [vmem:[#allocation8 + $0x61c] sm:$0xf0] }
 0x39f   :  { %v5422_v10 = vpop.f32.mrf.mxu0 }
 0x3a0   :  { %v5435_v29 = vpop.f32.mrf.mxu1  ;;  %v5423_v12 = vadd.f32 %v5422_v10, %v5410_v9  ;;  %v9914_v9 = vld [vmem:[#allocation8 + $0x644] sm:$0xf]  ;;  %v8188_v10 = vld [vmem:[#allocation8 + $0x648] sm:$0xf] }
 0x3a2   :  { %5525 = vmatmul.bf16.vlgmr.msrb.gmra.mxu0 %v10744_v48  ;;  %v5436_v25 = vadd.f32 %v5435_v29, %v5423_v12  ;;  %v9919_v29 = vld [vmem:[#allocation8 + $0x664] sm:$0xf0]  ;;  %v9915_v12 = vld [vmem:[#allocation8 + $0x64c] sm:$0xf] }
 0x3a3   :  { %5569 = vmatpush.bf16.xpose.msra.mxu0 %v8373_v41  ;;  %5538 = vmatmul.bf16.vlgmr.msrb.gmra.mxu1 %v10748_v54  ;;  %v9934_v41 = vld [vmem:[#allocation8 + $0x6dc] sm:$0xf0]  ;;  %v8189_v20 = vor.u32 %v9919_v29, %v8188_v10  ;;  %v8193_v21 = vor.u32 %v9915_v12, %v8190_v14  ;;  %v8292_v14 = vld [vmem:[#allocation8 + $0x710] sm:$0xf] }
 0x3a4   :  { %5582 = vmatpush.bf16.xpose.msra.mxu1 %v8377_v43  ;;  %5551 = vmatmul.bf16.vlgmr.msrb.gmra.mxu2 %v10740_v40  ;;  %v9930_v43 = vld [vmem:[#allocation8 + $0x6c4] sm:$0xf]  ;;  %v8245_v56 = vor.u32 %v9934_v41, %v8244_v39  ;;  %v8396_v39 = vld [vmem:[#allocation8 + $0x7d8] sm:$0xf] }
 0x3a5   :  { %5595 = vmatpush.bf16.xpose.msra.mxu2 %v8381_v47  ;;  %5608 = vmatpush.bf16.xpose.msra.mxu3 %v8385_v51  ;;  %v8246_v47 = vld [vmem:[#allocation8 + $0x6e0] sm:$0xf0]  ;;  %v9969_v41 = vld [vmem:[#allocation8 + $0x7f4] sm:$0xf0] }
 0x3a6   :  { %5564 = vmatmul.bf16.vlgmr.msrb.gmra.mxu3 %v10754_v7  ;;  %v8249_v2 = vor.u32 %v9930_v43, %v8246_v47 }
 0x3a7   :  { %v5448_v30 = vpop.f32.mrf.mxu2  ;;  %v5424_v35 = vpop.f32.mrf.mxu0 }
 0x3a8   :  { %v5449_v32 = vadd.f32 %v5448_v30, %v5436_v25  ;;  %v5437_v36 = vpop.f32.mrf.mxu1  ;;  %v9906_v25 = vld [vmem:[#allocation8 + $0x604] sm:$0xf]  ;;  %v8156_v30 = vld [vmem:[#allocation8 + $0x608] sm:$0xf]  ;;  %v9964_v35 = vld [vmem:[#allocation8 + $0x7d4] sm:$0xf] }
 0x3a9   :  { %v5461_v33 = vpop.f32.mrf.mxu3  ;;  %v8149_v36 = vor.u32 %v9910_v24, %v8148_v23  ;;  %v9941_v23 = vld [vmem:[#allocation8 + $0x71c] sm:$0xf] }
 0x3aa   :  { %v5462_v38 = vadd.f32 %v5461_v33, %v5449_v32  ;;  %v8158_v32 = vld [vmem:[#allocation8 + $0x628] sm:$0xf0]  ;;  %v8388_v33 = vld [vmem:[#allocation8 + $0x7d0] sm:$0xf]  ;;  %v8302_v24 = vld [vmem:[#allocation8 + $0x738] sm:$0xf0] }
 0x3ab   :  { %5570 = vmatpush.bf16.xpose.msra.mxu0 %v8341_v13  ;;  %v8257_v13 = vor.u32 %v9931_v19, %v8254_v55 }
 0x3ac   :  { %5583 = vmatpush.bf16.xpose.msra.mxu1 %v8345_v59  ;;  %v6090_v51 = vsub.f32 0.0, %v5462_v38  ;;  %v8212_v59 = vld [vmem:[#allocation8 + $0x680] sm:$0xf]  ;;  %v8390_v38 = vld [vmem:[#allocation8 + $0x7f0] sm:$0xf0] }
 0x3ad   :  { %5596 = vmatpush.bf16.xpose.msra.mxu2 %v8349_v46  ;;  %5609 = vmatpush.bf16.xpose.msra.mxu3 %v8353_v37  ;;  %v9926_v46 = vld [vmem:[#allocation8 + $0x69c] sm:$0xf0]  ;;  %v9922_v37 = vld [vmem:[#allocation8 + $0x684] sm:$0xf]  ;;  %v8393_v55 = vor.u32 %v9964_v35, %v8390_v38  ;;  %v8260_v35 = vld [vmem:[#allocation8 + $0x6d0] sm:$0xf] }
 0x3ae   :  { %v6099_v50 = vmul.f32 1.442695, %v6090_v51  ;;  %v8213_v0 = vor.u32 %v9926_v46, %v8212_v59  ;;  %v8217_v1 = vor.u32 %v9922_v37, %v8214_v60  ;;  %v9965_v51 = vld [vmem:[#allocation8 + $0x7dc] sm:$0xf]  ;;  %v9961_v59 = vld [vmem:[#allocation8 + $0x7b4] sm:$0xf0] }
 0x3af   :  { %v5450_v57 = vpop.f32.mrf.mxu2  ;;  %v9957_v46 = vld [vmem:[#allocation8 + $0x79c] sm:$0xf]  ;;  %v9932_v38 = vld [vmem:[#allocation8 + $0x6d4] sm:$0xf] }
 0x3b0   :  { %10285 = vpow2.f32 %v6099_v50  ;;  %v8397_v50 = vor.u32 %v9969_v41, %v8396_v39  ;;  %v8356_v57 = vld [vmem:[#allocation8 + $0x790] sm:$0xf]  ;;  %v8366_v37 = vld [vmem:[#allocation8 + $0x7b8] sm:$0xf0]  ;;  %v8262_v39 = vld [vmem:[#allocation8 + $0x6f0] sm:$0xf0] }
 0x3b1   :  { %v5463_v58 = vpop.f32.mrf.mxu3  ;;  %v8268_v41 = vld [vmem:[#allocation8 + $0x6d8] sm:$0xf] }
 0x3b2   :  { %v8358_v58 = vld [vmem:[#allocation8 + $0x7b0] sm:$0xf0] }
 0x3b3   :  { %5571 = vmatpush.bf16.xpose.msra.mxu0 %v8309_v3  ;;  %v8225_v3 = vor.u32 %v9923_v4, %v8222_v62  ;;  %v8369_v4 = vor.u32 %v9957_v46, %v8366_v37  ;;  %v8324_v62 = vld [vmem:[#allocation8 + $0x750] sm:$0xf]  ;;  %v9925_v46 = vld [vmem:[#allocation8 + $0x69c] sm:$0xf] }
 0x3b4   :  { %5584 = vmatpush.bf16.xpose.msra.mxu1 %v8313_v6  ;;  %v8180_v6 = vld [vmem:[#allocation8 + $0x640] sm:$0xf]  ;;  %v8238_v37 = vld [vmem:[#allocation8 + $0x6b8] sm:$0xf0] }
 0x3b5   :  { %5597 = vmatpush.bf16.xpose.msra.mxu2 %v8317_v8  ;;  %5610 = vmatpush.bf16.xpose.msra.mxu3 %v8321_v5  ;;  %v9918_v8 = vld [vmem:[#allocation8 + $0x65c] sm:$0xf0]  ;;  %v8182_v5 = vld [vmem:[#allocation8 + $0x660] sm:$0xf0] }
 0x3b6   :  { %v10286_v63 = vpop.eup %10285  ;;  %v8181_v22 = vor.u32 %v9918_v8, %v8180_v6  ;;  %v8185_v16 = vor.u32 %v9914_v9, %v8182_v5  ;;  %v8334_v6 = vld [vmem:[#allocation8 + $0x778] sm:$0xf0] }
 0x3b7   :  { %v6114_v11 = vadd.f32 1.0, %v10286_v63  ;;  %v9952_v63 = vld [vmem:[#allocation8 + $0x76c] sm:$0xf0] }
 0x3b8   :  { %v8325_v8 = vor.u32 %v9952_v63, %v8324_v62  ;;  %v8196_v62 = vld [vmem:[#allocation8 + $0x650] sm:$0xf] }
 0x3b9   :  { %10287 = vrcp.f32 %v6114_v11  ;;  %v8326_v11 = vld [vmem:[#allocation8 + $0x770] sm:$0xf0]  ;;  %v9920_v63 = vld [vmem:[#allocation8 + $0x66c] sm:$0xf0] }
 0x3bb   :  { %5572 = vmatpush.bf16.xpose.msra.mxu0 %v8277_v26  ;;  %v8150_v26 = vld [vmem:[#allocation8 + $0x620] sm:$0xf0] }
 0x3bc   :  { %5585 = vmatpush.bf16.xpose.msra.mxu1 %v8281_v28  ;;  %v9911_v28 = vld [vmem:[#allocation8 + $0x624] sm:$0xf0]  ;;  %v8153_v43 = vor.u32 %v9906_v25, %v8150_v26 }
 0x3bd   :  { %5598 = vmatpush.bf16.xpose.msra.mxu2 %v8285_v31  ;;  %5611 = vmatpush.bf16.xpose.msra.mxu3 %v8289_v34  ;;  %v9907_v31 = vld [vmem:[#allocation8 + $0x60c] sm:$0xf]  ;;  %v9968_v34 = vld [vmem:[#allocation8 + $0x7ec] sm:$0xf0]  ;;  %v8157_v47 = vor.u32 %v9911_v28, %v8156_v30 }
 0x3be   :  { %v8161_v27 = vor.u32 %v9907_v31, %v8158_v32  ;;  %v8389_v19 = vor.u32 %v9968_v34, %v8388_v33  ;;  %v8305_v32 = vor.u32 %v9941_v23, %v8302_v24  ;;  %v9909_v23 = vld [vmem:[#allocation8 + $0x61c] sm:$0xf] }
 0x3bf   :  { %v10288_v15 = vpop.eup %10287  ;;  %v8174_v24 = vld [vmem:[#allocation8 + $0x638] sm:$0xf0] }
 0x3c0   :  { %6130 = vst [vmem:[#allocation15 + $0x8] sm:$0xff] %v10288_v15  ;;  %v9940_v15 = vld [vmem:[#allocation8 + $0x714] sm:$0xf] }
 0x3c3   :  { %5573 = vmatpush.bf16.xpose.msra.mxu0 %v8245_v56  ;;  %v8401_v56 = vor.u32 %v9965_v51, %v8398_v53  ;;  %v8270_v51 = vld [vmem:[#allocation8 + $0x6f8] sm:$0xf0] }
 0x3c4   :  { %5586 = vmatpush.bf16.xpose.msra.mxu1 %v8249_v2  ;;  %v9960_v2 = vld [vmem:[#allocation8 + $0x7ac] sm:$0xf0] }
 0x3c5   :  { %5599 = vmatpush.bf16.xpose.msra.mxu2 %v8253_v44  ;;  %5612 = vmatpush.bf16.xpose.msra.mxu3 %v8257_v13  ;;  %v9956_v44 = vld [vmem:[#allocation8 + $0x794] sm:$0xf]  ;;  %v8364_v13 = vld [vmem:[#allocation8 + $0x798] sm:$0xf]  ;;  %v8357_v60 = vor.u32 %v9960_v2, %v8356_v57  ;;  %v8228_v57 = vld [vmem:[#allocation8 + $0x690] sm:$0xf] }
 0x3c6   :  { %v8361_v61 = vor.u32 %v9956_v44, %v8358_v58  ;;  %v8365_v17 = vor.u32 %v9961_v59, %v8364_v13  ;;  %v9928_v2 = vld [vmem:[#allocation8 + $0x6ac] sm:$0xf0]  ;;  %v9924_v44 = vld [vmem:[#allocation8 + $0x694] sm:$0xf]  ;;  %v8236_v13 = vld [vmem:[#allocation8 + $0x698] sm:$0xf] }
 0x3c7   :  { %v8230_v58 = vld [vmem:[#allocation8 + $0x6b0] sm:$0xf0]  ;;  %v9929_v59 = vld [vmem:[#allocation8 + $0x6b4] sm:$0xf0] }
 0x3cb   :  { %5574 = vmatpush.bf16.xpose.msra.mxu0 %v8213_v0  ;;  %v9948_v0 = vld [vmem:[#allocation8 + $0x754] sm:$0xf] }
 0x3cc   :  { %5587 = vmatpush.bf16.xpose.msra.mxu1 %v8217_v1  ;;  %v8332_v1 = vld [vmem:[#allocation8 + $0x758] sm:$0xf]  ;;  %v8329_v9 = vor.u32 %v9948_v0, %v8326_v11  ;;  %v9916_v0 = vld [vmem:[#allocation8 + $0x654] sm:$0xf] }
 0x3cd   :  { %5600 = vmatpush.bf16.xpose.msra.mxu2 %v8221_v18  ;;  %5613 = vmatpush.bf16.xpose.msra.mxu3 %v8225_v3  ;;  %v9953_v18 = vld [vmem:[#allocation8 + $0x774] sm:$0xf0]  ;;  %v9949_v3 = vld [vmem:[#allocation8 + $0x75c] sm:$0xf]  ;;  %v8198_v11 = vld [vmem:[#allocation8 + $0x670] sm:$0xf0] }
 0x3ce   :  { %v8333_v5 = vor.u32 %v9953_v18, %v8332_v1  ;;  %v8337_v10 = vor.u32 %v9949_v3, %v8334_v6  ;;  %v8204_v1 = vld [vmem:[#allocation8 + $0x658] sm:$0xf]  ;;  %v9917_v3 = vld [vmem:[#allocation8 + $0x65c] sm:$0xf] }
 0x3cf   :  { %v9921_v18 = vld [vmem:[#allocation8 + $0x674] sm:$0xf0]  ;;  %v8206_v6 = vld [vmem:[#allocation8 + $0x678] sm:$0xf0] }
 0x3d3   :  { %5575 = vmatpush.bf16.xpose.msra.mxu0 %v8181_v22  ;;  %v9944_v22 = vld [vmem:[#allocation8 + $0x72c] sm:$0xf0] }
 0x3d4   :  { %5588 = vmatpush.bf16.xpose.msra.mxu1 %v8185_v16  ;;  %v8294_v16 = vld [vmem:[#allocation8 + $0x730] sm:$0xf0]  ;;  %v8293_v25 = vor.u32 %v9944_v22, %v8292_v14  ;;  %v8164_v14 = vld [vmem:[#allocation8 + $0x610] sm:$0xf] }
 0x3d5   :  { %5601 = vmatpush.bf16.xpose.msra.mxu2 %v8189_v20  ;;  %5614 = vmatpush.bf16.xpose.msra.mxu3 %v8193_v21  ;;  %v8300_v20 = vld [vmem:[#allocation8 + $0x718] sm:$0xf]  ;;  %v8297_v30 = vor.u32 %v9940_v15, %v8294_v16  ;;  %v9912_v22 = vld [vmem:[#allocation8 + $0x62c] sm:$0xf0]  ;;  %v9908_v15 = vld [vmem:[#allocation8 + $0x614] sm:$0xf] }
 0x3d6   :  { %v9945_v21 = vld [vmem:[#allocation8 + $0x734] sm:$0xf0]  ;;  %v8166_v16 = vld [vmem:[#allocation8 + $0x630] sm:$0xf0] }
 0x3d7   :  { %v8301_v28 = vor.u32 %v9945_v21, %v8300_v20  ;;  %v8172_v20 = vld [vmem:[#allocation8 + $0x618] sm:$0xf] }
 0x3d8   :  { %v9913_v21 = vld [vmem:[#allocation8 + $0x634] sm:$0xf0] }
 0x3db   :  { %5576 = vmatpush.bf16.xpose.msra.mxu0 %v8149_v36  ;;  %v9936_v36 = vld [vmem:[#allocation8 + $0x6ec] sm:$0xf0] }
 0x3dc   :  { %5589 = vmatpush.bf16.xpose.msra.mxu1 %v8153_v43  ;;  %v9937_v43 = vld [vmem:[#allocation8 + $0x6f4] sm:$0xf0]  ;;  %v8261_v53 = vor.u32 %v9936_v36, %v8260_v35  ;;  %v10031_v35 = vld [vmem:[#allocation8 + $0x9e4] sm:$0xf0]  ;;  %v8169_v36 = vor.u32 %v9908_v15, %v8166_v16  ;;  %v8532_v16 = vld [vmem:[#allocation8 + $0x900] sm:$0xf] }
 0x3dd   :  { %5602 = vmatpush.bf16.xpose.msra.mxu2 %v8157_v47  ;;  %5615 = vmatpush.bf16.xpose.msra.mxu3 %v8161_v27  ;;  %v9933_v47 = vld [vmem:[#allocation8 + $0x6dc] sm:$0xf] }
 0x3df   :  { %v10805_v29 = vpop.f32.mrf.mxu0 }
 0x3e0   :  { %v10807_v12 = vpop.f32.mrf.mxu1 }
 0x3e2   :  { %5577 = vmatmul.bf16.vlgmr.msra.gmra.mxu0 %v10722_v42 }
 0x3e3   :  { %5621 = vmatpush.bf16.xpose.msrb.mxu0 %v8389_v19  ;;  %5590 = vmatmul.bf16.vlgmr.msra.gmra.mxu1 %v10725_v49  ;;  %v8265_v19 = vor.u32 %v9932_v38, %v8262_v39  ;;  %v8173_v38 = vor.u32 %v9913_v21, %v8172_v20  ;;  %v10027_v39 = vld [vmem:[#allocation8 + $0x9cc] sm:$0xf]  ;;  %v10002_v20 = vld [vmem:[#allocation8 + $0x904] sm:$0xf] }
 0x3e4   :  { %5634 = vmatpush.bf16.xpose.msrb.mxu1 %v8393_v55  ;;  %5603 = vmatmul.bf16.vlgmr.msra.gmra.mxu2 %v10729_v45  ;;  %v8269_v55 = vor.u32 %v9937_v43, %v8268_v41  ;;  %v8638_v41 = vld [vmem:[#allocation8 + $0x9e8] sm:$0xf0]  ;;  %v8177_v43 = vor.u32 %v9909_v23, %v8174_v24  ;;  %v8534_v21 = vld [vmem:[#allocation8 + $0x920] sm:$0xf0]  ;;  %v8540_v23 = vld [vmem:[#allocation8 + $0x908] sm:$0xf] }
 0x3e5   :  { %5647 = vmatpush.bf16.xpose.msrb.mxu2 %v8397_v50  ;;  %5660 = vmatpush.bf16.xpose.msrb.mxu3 %v8401_v56  ;;  %v8273_v56 = vor.u32 %v9933_v47, %v8270_v51  ;;  %v10007_v24 = vld [vmem:[#allocation8 + $0x924] sm:$0xf0] }
 0x3e6   :  { %5616 = vmatmul.bf16.vlgmr.msra.gmra.mxu3 %v10733_v52 }
 0x3e7   :  { %v10809_v26 = vpop.f32.mrf.mxu2  ;;  %v5476_v33 = vpop.f32.mrf.mxu0 }
 0x3e8   :  { %v5489_v34 = vpop.f32.mrf.mxu1  ;;  %v8630_v33 = vld [vmem:[#allocation8 + $0x9e0] sm:$0xf0] }
 0x3e9   :  { %v10811_v31 = vpop.f32.mrf.mxu3  ;;  %v8636_v34 = vld [vmem:[#allocation8 + $0x9c8] sm:$0xf] }
 0x3eb   :  { %5622 = vmatpush.bf16.xpose.msrb.mxu0 %v8357_v60  ;;  %v8229_v60 = vor.u32 %v9928_v2, %v8228_v57  ;;  %v10018_v57 = vld [vmem:[#allocation8 + $0x984] sm:$0xf] }
 0x3ec   :  { %5635 = vmatpush.bf16.xpose.msrb.mxu1 %v8361_v61  ;;  %v8233_v61 = vor.u32 %v9924_v44, %v8230_v58  ;;  %v8598_v2 = vld [vmem:[#allocation8 + $0x9a0] sm:$0xf0]  ;;  %v8604_v44 = vld [vmem:[#allocation8 + $0x988] sm:$0xf] }
 0x3ed   :  { %5648 = vmatpush.bf16.xpose.msrb.mxu2 %v8365_v17  ;;  %5661 = vmatpush.bf16.xpose.msrb.mxu3 %v8369_v4  ;;  %v8237_v17 = vor.u32 %v9929_v59, %v8236_v13  ;;  %v8241_v4 = vor.u32 %v9925_v46, %v8238_v37  ;;  %v10023_v58 = vld [vmem:[#allocation8 + $0x9a4] sm:$0xf0]  ;;  %v10019_v13 = vld [vmem:[#allocation8 + $0x98c] sm:$0xf] }
 0x3ee   :  { %v8606_v59 = vld [vmem:[#allocation8 + $0x9a8] sm:$0xf0] }
 0x3ef   :  { %v5502_v27 = vpop.f32.mrf.mxu2 }
 0x3f0   :  { %v8641_v27 = vor.u32 %v10027_v39, %v8638_v41 }
 0x3f1   :  { %v5515_v50 = vpop.f32.mrf.mxu3 }
 0x3f2   :  { %v8596_v50 = vld [vmem:[#allocation8 + $0x980] sm:$0xf] }
 0x3f3   :  { %5623 = vmatpush.bf16.xpose.msrb.mxu0 %v8325_v8  ;;  %v8197_v8 = vor.u32 %v9920_v63, %v8196_v62  ;;  %v8564_v62 = vld [vmem:[#allocation8 + $0x940] sm:$0xf] }
 0x3f4   :  { %5636 = vmatpush.bf16.xpose.msrb.mxu1 %v8329_v9  ;;  %v8201_v9 = vor.u32 %v9916_v0, %v8198_v11  ;;  %v10014_v63 = vld [vmem:[#allocation8 + $0x95c] sm:$0xf0]  ;;  %v8566_v11 = vld [vmem:[#allocation8 + $0x960] sm:$0xf0] }
 0x3f5   :  { %5649 = vmatpush.bf16.xpose.msrb.mxu2 %v8333_v5  ;;  %5662 = vmatpush.bf16.xpose.msrb.mxu3 %v8337_v10  ;;  %v8205_v5 = vor.u32 %v9921_v18, %v8204_v1  ;;  %v8209_v10 = vor.u32 %v9917_v3, %v8206_v6  ;;  %v8572_v1 = vld [vmem:[#allocation8 + $0x948] sm:$0xf]  ;;  %v10011_v3 = vld [vmem:[#allocation8 + $0x94c] sm:$0xf] }
 0x3f6   :  { %v10015_v18 = vld [vmem:[#allocation8 + $0x964] sm:$0xf0]  ;;  %v8574_v6 = vld [vmem:[#allocation8 + $0x968] sm:$0xf0] }
 0x3fb   :  { %5624 = vmatpush.bf16.xpose.msrb.mxu0 %v8293_v25  ;;  %v8628_v25 = vld [vmem:[#allocation8 + $0x9c0] sm:$0xf] }
 0x3fc   :  { %5637 = vmatpush.bf16.xpose.msrb.mxu1 %v8297_v30  ;;  %v10030_v30 = vld [vmem:[#allocation8 + $0x9dc] sm:$0xf0] }
 0x3fd   :  { %5650 = vmatpush.bf16.xpose.msrb.mxu2 %v8301_v28  ;;  %5663 = vmatpush.bf16.xpose.msrb.mxu3 %v8305_v32  ;;  %v10026_v28 = vld [vmem:[#allocation8 + $0x9c4] sm:$0xf]  ;;  %v8165_v32 = vor.u32 %v9912_v22, %v8164_v14  ;;  %v8629_v47 = vor.u32 %v10030_v30, %v8628_v25  ;;  %v10003_v25 = vld [vmem:[#allocation8 + $0x90c] sm:$0xf] }
 0x3fe   :  { %v8633_v51 = vor.u32 %v10026_v28, %v8630_v33  ;;  %v8542_v30 = vld [vmem:[#allocation8 + $0x928] sm:$0xf0] }
 0x403   :  { %5625 = vmatpush.bf16.xpose.msrb.mxu0 %v8261_v53  ;;  %v8637_v53 = vor.u32 %v10031_v35, %v8636_v34  ;;  %v8541_v34 = vor.u32 %v10007_v24, %v8540_v23 }
 0x404   :  { %5638 = vmatpush.bf16.xpose.msrb.mxu1 %v8265_v19  ;;  %v10813_v19 = vld [vmem:[#allocation10] sm:$0xff] }
 0x405   :  { %5651 = vmatpush.bf16.xpose.msrb.mxu2 %v8269_v55  ;;  %5664 = vmatpush.bf16.xpose.msrb.mxu3 %v8273_v56  ;;  %v2683_v55 = vperm.slane %v10813_v19, 2  ;;  %v10022_v56 = vld [vmem:[#allocation8 + $0x99c] sm:$0xf0] }
 0x406   :  { %v8597_v37 = vor.u32 %v10022_v56, %v8596_v50  ;;  %v8508_v50 = vld [vmem:[#allocation8 + $0x8c8] sm:$0xf] }
 0x407   :  { %v5475_v46 = vadd.f32 %v10805_v29, %v2683_v55  ;;  %v10010_v29 = vld [vmem:[#allocation8 + $0x944] sm:$0xf]  ;;  %v9999_v56 = vld [vmem:[#allocation8 + $0x8e4] sm:$0xf0] }
 0x40b   :  { %5626 = vmatpush.bf16.xpose.msrb.mxu0 %v8229_v60  ;;  %v8601_v60 = vor.u32 %v10018_v57, %v8598_v2  ;;  %v9995_v57 = vld [vmem:[#allocation8 + $0x8cc] sm:$0xf] }
 0x40c   :  { %5639 = vmatpush.bf16.xpose.msrb.mxu1 %v8233_v61  ;;  %v8605_v61 = vor.u32 %v10023_v58, %v8604_v44  ;;  %v8510_v2 = vld [vmem:[#allocation8 + $0x8e8] sm:$0xf0] }
 0x40d   :  { %5652 = vmatpush.bf16.xpose.msrb.mxu2 %v8237_v17  ;;  %5665 = vmatpush.bf16.xpose.msrb.mxu3 %v8241_v4  ;;  %v8609_v17 = vor.u32 %v10019_v13, %v8606_v59  ;;  %v5488_v4 = vadd.f32 %v10807_v12, %v5475_v46  ;;  %v8577_v12 = vor.u32 %v10011_v3, %v8574_v6 }
 0x40e   :  { %v8509_v46 = vor.u32 %v9999_v56, %v8508_v50  ;;  %v10029_v50 = vld [vmem:[#allocation8 + $0x9dc] sm:$0xf] }
 0x40f   :  { %v5501_v0 = vadd.f32 %v10809_v26, %v5488_v4  ;;  %v10006_v26 = vld [vmem:[#allocation8 + $0x91c] sm:$0xf0]  ;;  %v9986_v4 = vld [vmem:[#allocation8 + $0x884] sm:$0xf]  ;;  %v8654_v56 = vld [vmem:[#allocation8 + $0x9f8] sm:$0xf0] }
 0x413   :  { %5627 = vmatpush.bf16.xpose.msrb.mxu0 %v8197_v8  ;;  %v8565_v8 = vor.u32 %v10014_v63, %v8564_v62  ;;  %v8470_v62 = vld [vmem:[#allocation8 + $0x8a0] sm:$0xf0]  ;;  %v8476_v63 = vld [vmem:[#allocation8 + $0x888] sm:$0xf] }
 0x414   :  { %5640 = vmatpush.bf16.xpose.msrb.mxu1 %v8201_v9  ;;  %v8569_v9 = vor.u32 %v10010_v29, %v8566_v11  ;;  %v9991_v29 = vld [vmem:[#allocation8 + $0x8a4] sm:$0xf0]  ;;  %v8478_v11 = vld [vmem:[#allocation8 + $0x8a8] sm:$0xf0]  ;;  %v8473_v6 = vor.u32 %v9986_v4, %v8470_v62  ;;  %v10021_v4 = vld [vmem:[#allocation8 + $0x99c] sm:$0xf] }
 0x415   :  { %5653 = vmatpush.bf16.xpose.msrb.mxu2 %v8205_v5  ;;  %5666 = vmatpush.bf16.xpose.msrb.mxu3 %v8209_v10  ;;  %v8573_v5 = vor.u32 %v10015_v18, %v8572_v1  ;;  %v5514_v10 = vadd.f32 %v10811_v31, %v5501_v0  ;;  %v8537_v31 = vor.u32 %v10002_v20, %v8534_v21  ;;  %v9987_v0 = vld [vmem:[#allocation8 + $0x88c] sm:$0xf]  ;;  %v8622_v62 = vld [vmem:[#allocation8 + $0x9b8] sm:$0xf0] }
 0x41b   :  { %5628 = vmatpush.bf16.xpose.msrb.mxu0 %v8165_v32  ;;  %v8533_v32 = vor.u32 %v10006_v26, %v8532_v16  ;;  %v9979_v16 = vld [vmem:[#allocation8 + $0x84c] sm:$0xf] }
 0x41c   :  { %5641 = vmatpush.bf16.xpose.msrb.mxu1 %v8169_v36  ;;  %v8446_v26 = vld [vmem:[#allocation8 + $0x868] sm:$0xf0] }
 0x41d   :  { %5654 = vmatpush.bf16.xpose.msrb.mxu2 %v8173_v38  ;;  %5667 = vmatpush.bf16.xpose.msrb.mxu3 %v8177_v43  ;;  %v8545_v38 = vor.u32 %v10003_v25, %v8542_v30  ;;  %v8449_v25 = vor.u32 %v9979_v16, %v8446_v26  ;;  %v8404_v30 = vld [vmem:[#allocation8 + $0x800] sm:$0xf] }
 0x41f   :  { %v5526_v14 = vpop.f32.mrf.mxu0 }
 0x420   :  { %v5539_v22 = vpop.f32.mrf.mxu1  ;;  %v5527_v15 = vadd.f32 %v5526_v14, %v5514_v10  ;;  %v9982_v10 = vld [vmem:[#allocation8 + $0x85c] sm:$0xf0]  ;;  %v8438_v14 = vld [vmem:[#allocation8 + $0x860] sm:$0xf0] }
 0x422   :  { %5629 = vmatmul.bf16.vlgmr.msrb.gmra.mxu0 %v10744_v48  ;;  %v5540_v28 = vadd.f32 %v5539_v22, %v5527_v15  ;;  %v8444_v22 = vld [vmem:[#allocation8 + $0x848] sm:$0xf] }
 0x423   :  { %5673 = vmatpush.bf16.xpose.msra.mxu0 %v8629_v47  ;;  %5642 = vmatmul.bf16.vlgmr.msrb.gmra.mxu1 %v10748_v54  ;;  %v8500_v47 = vld [vmem:[#allocation8 + $0x8c0] sm:$0xf]  ;;  %v9983_v15 = vld [vmem:[#allocation8 + $0x864] sm:$0xf0] }
 0x424   :  { %5686 = vmatpush.bf16.xpose.msra.mxu1 %v8633_v51  ;;  %5655 = vmatmul.bf16.vlgmr.msrb.gmra.mxu2 %v10740_v40  ;;  %v9998_v51 = vld [vmem:[#allocation8 + $0x8dc] sm:$0xf0]  ;;  %v8445_v24 = vor.u32 %v9983_v15, %v8444_v22 }
 0x425   :  { %5699 = vmatpush.bf16.xpose.msra.mxu2 %v8637_v53  ;;  %5712 = vmatpush.bf16.xpose.msra.mxu3 %v8641_v27  ;;  %v9994_v53 = vld [vmem:[#allocation8 + $0x8c4] sm:$0xf]  ;;  %v8501_v58 = vor.u32 %v9998_v51, %v8500_v47  ;;  %v8646_v47 = vld [vmem:[#allocation8 + $0x9f0] sm:$0xf0]  ;;  %v8652_v51 = vld [vmem:[#allocation8 + $0x9d8] sm:$0xf] }
 0x426   :  { %5668 = vmatmul.bf16.vlgmr.msrb.gmra.mxu3 %v10754_v7  ;;  %v8502_v27 = vld [vmem:[#allocation8 + $0x8e0] sm:$0xf0] }
 0x427   :  { %v5552_v33 = vpop.f32.mrf.mxu2  ;;  %v5528_v39 = vpop.f32.mrf.mxu0  ;;  %v8505_v59 = vor.u32 %v9994_v53, %v8502_v27  ;;  %v10033_v53 = vld [vmem:[#allocation8 + $0x9f4] sm:$0xf0] }
 0x428   :  { %v5553_v35 = vadd.f32 %v5552_v33, %v5540_v28  ;;  %v5541_v41 = vpop.f32.mrf.mxu1  ;;  %v9974_v28 = vld [vmem:[#allocation8 + $0x81c] sm:$0xf0]  ;;  %v8406_v33 = vld [vmem:[#allocation8 + $0x820] sm:$0xf0]  ;;  %v10032_v39 = vld [vmem:[#allocation8 + $0x9ec] sm:$0xf0] }
 0x429   :  { %v5565_v36 = vpop.f32.mrf.mxu3  ;;  %v10028_v41 = vld [vmem:[#allocation8 + $0x9d4] sm:$0xf] }
 0x42a   :  { %v5566_v43 = vadd.f32 %v5565_v36, %v5553_v35  ;;  %v9971_v35 = vld [vmem:[#allocation8 + $0x80c] sm:$0xf] }
 0x42b   :  { %5674 = vmatpush.bf16.xpose.msra.mxu0 %v8597_v37  ;;  %v8414_v36 = vld [vmem:[#allocation8 + $0x828] sm:$0xf0] }
 0x42c   :  { %5687 = vmatpush.bf16.xpose.msra.mxu1 %v8601_v60  ;;  %v6091_v55 = vsub.f32 0.0, %v5566_v43  ;;  %v8513_v60 = vor.u32 %v9995_v57, %v8510_v2  ;;  %v8405_v43 = vor.u32 %v9974_v28, %v8404_v30  ;;  %v8417_v57 = vor.u32 %v9971_v35, %v8414_v36  ;;  %v10009_v30 = vld [vmem:[#allocation8 + $0x934] sm:$0xf0]  ;;  %v10005_v28 = vld [vmem:[#allocation8 + $0x91c] sm:$0xf] }
 0x42d   :  { %5700 = vmatpush.bf16.xpose.msra.mxu2 %v8605_v61  ;;  %5713 = vmatpush.bf16.xpose.msra.mxu3 %v8609_v17  ;;  %v8468_v61 = vld [vmem:[#allocation8 + $0x880] sm:$0xf] }
 0x42e   :  { %v6101_v44 = vmul.f32 1.442695, %v6091_v55  ;;  %v9990_v17 = vld [vmem:[#allocation8 + $0x89c] sm:$0xf0] }
 0x42f   :  { %v5554_v13 = vpop.f32.mrf.mxu2  ;;  %v8469_v18 = vor.u32 %v9990_v17, %v8468_v61  ;;  %v8620_v61 = vld [vmem:[#allocation8 + $0x998] sm:$0xf] }
 0x430   :  { %10289 = vpow2.f32 %v6101_v44  ;;  %v8649_v44 = vor.u32 %v10028_v41, %v8646_v47  ;;  %v8657_v13 = vor.u32 %v10029_v50, %v8654_v56  ;;  %v10025_v17 = vld [vmem:[#allocation8 + $0x9b4] sm:$0xf0]  ;;  %v10000_v47 = vld [vmem:[#allocation8 + $0x8ec] sm:$0xf0]  ;;  %v9997_v50 = vld [vmem:[#allocation8 + $0x8dc] sm:$0xf] }
 0x431   :  { %v5567_v37 = vpop.f32.mrf.mxu3  ;;  %v8526_v56 = vld [vmem:[#allocation8 + $0x8f8] sm:$0xf0] }
 0x432   :  { %v10020_v37 = vld [vmem:[#allocation8 + $0x994] sm:$0xf] }
 0x433   :  { %5675 = vmatpush.bf16.xpose.msra.mxu0 %v8565_v8  ;;  %v8477_v8 = vor.u32 %v9991_v29, %v8476_v63 }
 0x434   :  { %5688 = vmatpush.bf16.xpose.msra.mxu1 %v8569_v9  ;;  %v8481_v9 = vor.u32 %v9987_v0, %v8478_v11  ;;  %v8621_v0 = vor.u32 %v10025_v17, %v8620_v61  ;;  %v8625_v11 = vor.u32 %v10021_v4, %v8622_v62  ;;  %v8486_v61 = vld [vmem:[#allocation8 + $0x8b0] sm:$0xf0]  ;;  %v8492_v17 = vld [vmem:[#allocation8 + $0x898] sm:$0xf]  ;;  %v9989_v62 = vld [vmem:[#allocation8 + $0x89c] sm:$0xf] }
 0x435   :  { %5701 = vmatpush.bf16.xpose.msra.mxu2 %v8573_v5  ;;  %5714 = vmatpush.bf16.xpose.msra.mxu3 %v8577_v12  ;;  %v8436_v5 = vld [vmem:[#allocation8 + $0x840] sm:$0xf]  ;;  %v9978_v12 = vld [vmem:[#allocation8 + $0x844] sm:$0xf]  ;;  %v9993_v4 = vld [vmem:[#allocation8 + $0x8b4] sm:$0xf0] }
 0x436   :  { %v10290_v1 = vpop.eup %10289  ;;  %v8437_v20 = vor.u32 %v9982_v10, %v8436_v5  ;;  %v8441_v23 = vor.u32 %v9978_v12, %v8438_v14  ;;  %v10013_v5 = vld [vmem:[#allocation8 + $0x95c] sm:$0xf] }
 0x437   :  { %v6115_v3 = vadd.f32 1.0, %v10290_v1  ;;  %v8580_v1 = vld [vmem:[#allocation8 + $0x950] sm:$0xf]  ;;  %v8590_v10 = vld [vmem:[#allocation8 + $0x978] sm:$0xf0] }
 0x438   :  { %v8593_v15 = vor.u32 %v10013_v5, %v8590_v10  ;;  %v9985_v5 = vld [vmem:[#allocation8 + $0x874] sm:$0xf0]  ;;  %v9981_v10 = vld [vmem:[#allocation8 + $0x85c] sm:$0xf] }
 0x439   :  { %10291 = vrcp.f32 %v6115_v3  ;;  %v10012_v3 = vld [vmem:[#allocation8 + $0x954] sm:$0xf] }
 0x43b   :  { %5676 = vmatpush.bf16.xpose.msra.mxu0 %v8533_v32  ;;  %v9970_v32 = vld [vmem:[#allocation8 + $0x804] sm:$0xf] }
 0x43c   :  { %5689 = vmatpush.bf16.xpose.msra.mxu1 %v8537_v31  ;;  %v8412_v31 = vld [vmem:[#allocation8 + $0x808] sm:$0xf]  ;;  %v8409_v27 = vor.u32 %v9970_v32, %v8406_v33  ;;  %v8558_v32 = vld [vmem:[#allocation8 + $0x938] sm:$0xf0] }
 0x43d   :  { %5702 = vmatpush.bf16.xpose.msra.mxu2 %v8541_v34  ;;  %5715 = vmatpush.bf16.xpose.msra.mxu3 %v8545_v38  ;;  %v9975_v34 = vld [vmem:[#allocation8 + $0x824] sm:$0xf0]  ;;  %v8644_v38 = vld [vmem:[#allocation8 + $0x9d0] sm:$0xf] }
 0x43e   :  { %v8413_v55 = vor.u32 %v9975_v34, %v8412_v31  ;;  %v8645_v2 = vor.u32 %v10032_v39, %v8644_v38  ;;  %v8561_v38 = vor.u32 %v10005_v28, %v8558_v32  ;;  %v9977_v28 = vld [vmem:[#allocation8 + $0x834] sm:$0xf0]  ;;  %v9973_v32 = vld [vmem:[#allocation8 + $0x81c] sm:$0xf] }
 0x43f   :  { %v10292_v21 = vpop.eup %10291 }
 0x440   :  { %6131 = vst [vmem:[#allocation15 + $0x10] sm:$0xff] %v10292_v21  ;;  %v10008_v21 = vld [vmem:[#allocation8 + $0x92c] sm:$0xf0] }
 0x443   :  { %5677 = vmatpush.bf16.xpose.msra.mxu0 %v8501_v58  ;;  %v8653_v58 = vor.u32 %v10033_v53, %v8652_v51  ;;  %v9996_v51 = vld [vmem:[#allocation8 + $0x8d4] sm:$0xf] }
 0x444   :  { %5690 = vmatpush.bf16.xpose.msra.mxu1 %v8505_v59  ;;  %v8612_v59 = vld [vmem:[#allocation8 + $0x990] sm:$0xf]  ;;  %v8518_v53 = vld [vmem:[#allocation8 + $0x8f0] sm:$0xf0] }
 0x445   :  { %5703 = vmatpush.bf16.xpose.msra.mxu2 %v8509_v46  ;;  %5716 = vmatpush.bf16.xpose.msra.mxu3 %v8513_v60  ;;  %v10024_v46 = vld [vmem:[#allocation8 + $0x9ac] sm:$0xf0]  ;;  %v8614_v60 = vld [vmem:[#allocation8 + $0x9b0] sm:$0xf0] }
 0x446   :  { %v8613_v63 = vor.u32 %v10024_v46, %v8612_v59  ;;  %v8617_v29 = vor.u32 %v10020_v37, %v8614_v60  ;;  %v8529_v59 = vor.u32 %v9997_v50, %v8526_v56  ;;  %v8484_v46 = vld [vmem:[#allocation8 + $0x890] sm:$0xf]  ;;  %v9988_v60 = vld [vmem:[#allocation8 + $0x894] sm:$0xf] }
 0x447   :  { %v9992_v37 = vld [vmem:[#allocation8 + $0x8ac] sm:$0xf0] }
 0x44b   :  { %5678 = vmatpush.bf16.xpose.msra.mxu0 %v8469_v18  ;;  %v10016_v18 = vld [vmem:[#allocation8 + $0x96c] sm:$0xf0] }
 0x44c   :  { %5691 = vmatpush.bf16.xpose.msra.mxu1 %v8473_v6  ;;  %v8582_v6 = vld [vmem:[#allocation8 + $0x970] sm:$0xf0]  ;;  %v8581_v12 = vor.u32 %v10016_v18, %v8580_v1  ;;  %v8452_v18 = vld [vmem:[#allocation8 + $0x850] sm:$0xf] }
 0x44d   :  { %5704 = vmatpush.bf16.xpose.msra.mxu2 %v8477_v8  ;;  %5717 = vmatpush.bf16.xpose.msra.mxu3 %v8481_v9  ;;  %v8588_v8 = vld [vmem:[#allocation8 + $0x958] sm:$0xf]  ;;  %v8585_v14 = vor.u32 %v10012_v3, %v8582_v6  ;;  %v9984_v3 = vld [vmem:[#allocation8 + $0x86c] sm:$0xf0]  ;;  %v9980_v6 = vld [vmem:[#allocation8 + $0x854] sm:$0xf] }
 0x44e   :  { %v10017_v9 = vld [vmem:[#allocation8 + $0x974] sm:$0xf0] }
 0x44f   :  { %v8589_v22 = vor.u32 %v10017_v9, %v8588_v8  ;;  %v8454_v8 = vld [vmem:[#allocation8 + $0x870] sm:$0xf0]  ;;  %v8460_v9 = vld [vmem:[#allocation8 + $0x858] sm:$0xf] }
 0x453   :  { %5679 = vmatpush.bf16.xpose.msra.mxu0 %v8437_v20  ;;  %v8548_v20 = vld [vmem:[#allocation8 + $0x910] sm:$0xf] }
 0x454   :  { %5692 = vmatpush.bf16.xpose.msra.mxu1 %v8441_v23  ;;  %v10004_v23 = vld [vmem:[#allocation8 + $0x914] sm:$0xf]  ;;  %v8549_v33 = vor.u32 %v10008_v21, %v8548_v20  ;;  %v8420_v21 = vld [vmem:[#allocation8 + $0x810] sm:$0xf] }
 0x455   :  { %5705 = vmatpush.bf16.xpose.msra.mxu2 %v8445_v24  ;;  %5718 = vmatpush.bf16.xpose.msra.mxu3 %v8449_v25  ;;  %v8550_v24 = vld [vmem:[#allocation8 + $0x930] sm:$0xf0]  ;;  %v8556_v25 = vld [vmem:[#allocation8 + $0x918] sm:$0xf] }
 0x456   :  { %v8553_v34 = vor.u32 %v10004_v23, %v8550_v24  ;;  %v8557_v35 = vor.u32 %v10009_v30, %v8556_v25  ;;  %v9976_v23 = vld [vmem:[#allocation8 + $0x82c] sm:$0xf0]  ;;  %v9972_v24 = vld [vmem:[#allocation8 + $0x814] sm:$0xf]  ;;  %v8428_v30 = vld [vmem:[#allocation8 + $0x818] sm:$0xf] }
 0x457   :  { %v8422_v25 = vld [vmem:[#allocation8 + $0x830] sm:$0xf0] }
 0x45b   :  { %5680 = vmatpush.bf16.xpose.msra.mxu0 %v8405_v43  ;;  %v8516_v43 = vld [vmem:[#allocation8 + $0x8d0] sm:$0xf] }
 0x45c   :  { %5693 = vmatpush.bf16.xpose.msra.mxu1 %v8409_v27  ;;  %v8524_v27 = vld [vmem:[#allocation8 + $0x8d8] sm:$0xf] }
 0x45d   :  { %5706 = vmatpush.bf16.xpose.msra.mxu2 %v8413_v55  ;;  %5719 = vmatpush.bf16.xpose.msra.mxu3 %v8417_v57  ;;  %v10001_v55 = vld [vmem:[#allocation8 + $0x8f4] sm:$0xf0]  ;;  %v8517_v57 = vor.u32 %v10000_v47, %v8516_v43  ;;  %v8892_v43 = vld [vmem:[#allocation8 + $0xbc8] sm:$0xf] }
 0x45e   :  { %v10095_v47 = vld [vmem:[#allocation8 + $0xbe4] sm:$0xf0] }
 0x45f   :  { %v10828_v16 = vpop.f32.mrf.mxu0 }
 0x460   :  { %v10830_v26 = vpop.f32.mrf.mxu1 }
 0x462   :  { %5681 = vmatmul.bf16.vlgmr.msra.gmra.mxu0 %v10722_v42 }
 0x463   :  { %5725 = vmatpush.bf16.xpose.msrb.mxu0 %v8645_v2  ;;  %5694 = vmatmul.bf16.vlgmr.msra.gmra.mxu1 %v10725_v49 }
 0x464   :  { %5738 = vmatpush.bf16.xpose.msrb.mxu1 %v8649_v44  ;;  %5707 = vmatmul.bf16.vlgmr.msra.gmra.mxu2 %v10729_v45  ;;  %v8521_v44 = vor.u32 %v9996_v51, %v8518_v53  ;;  %v8425_v51 = vor.u32 %v9972_v24, %v8422_v25  ;;  %v8429_v53 = vor.u32 %v9977_v28, %v8428_v30  ;;  %v8788_v24 = vld [vmem:[#allocation8 + $0xb00] sm:$0xf]  ;;  %v10066_v25 = vld [vmem:[#allocation8 + $0xb04] sm:$0xf]  ;;  %v8796_v28 = vld [vmem:[#allocation8 + $0xb08] sm:$0xf] }
 0x465   :  { %5751 = vmatpush.bf16.xpose.msrb.mxu2 %v8653_v58  ;;  %5764 = vmatpush.bf16.xpose.msrb.mxu3 %v8657_v13  ;;  %v8525_v58 = vor.u32 %v10001_v55, %v8524_v27  ;;  %v10091_v27 = vld [vmem:[#allocation8 + $0xbcc] sm:$0xf]  ;;  %v8790_v30 = vld [vmem:[#allocation8 + $0xb20] sm:$0xf0] }
 0x466   :  { %5720 = vmatmul.bf16.vlgmr.msra.gmra.mxu3 %v10733_v52  ;;  %v8894_v55 = vld [vmem:[#allocation8 + $0xbe8] sm:$0xf0] }
 0x467   :  { %v10832_v31 = vpop.f32.mrf.mxu2  ;;  %v5580_v39 = vpop.f32.mrf.mxu0 }
 0x468   :  { %v5593_v41 = vpop.f32.mrf.mxu1  ;;  %v8421_v39 = vor.u32 %v9976_v23, %v8420_v21 }
 0x469   :  { %v10834_v36 = vpop.f32.mrf.mxu3  ;;  %v8886_v41 = vld [vmem:[#allocation8 + $0xbe0] sm:$0xf0] }
 0x46b   :  { %5726 = vmatpush.bf16.xpose.msrb.mxu0 %v8613_v63  ;;  %v8494_v63 = vld [vmem:[#allocation8 + $0x8b8] sm:$0xf0] }
 0x46c   :  { %5739 = vmatpush.bf16.xpose.msrb.mxu1 %v8617_v29  ;;  %v8485_v29 = vor.u32 %v9992_v37, %v8484_v46  ;;  %v8497_v1 = vor.u32 %v9989_v62, %v8494_v63  ;;  %v10082_v46 = vld [vmem:[#allocation8 + $0xb84] sm:$0xf] }
 0x46d   :  { %5752 = vmatpush.bf16.xpose.msrb.mxu2 %v8621_v0  ;;  %5765 = vmatpush.bf16.xpose.msrb.mxu3 %v8625_v11  ;;  %v8489_v0 = vor.u32 %v9988_v60, %v8486_v61  ;;  %v8493_v11 = vor.u32 %v9993_v4, %v8492_v17  ;;  %v8854_v37 = vld [vmem:[#allocation8 + $0xba0] sm:$0xf0]  ;;  %v8860_v60 = vld [vmem:[#allocation8 + $0xb88] sm:$0xf]  ;;  %v10083_v17 = vld [vmem:[#allocation8 + $0xb8c] sm:$0xf] }
 0x46e   :  { %v10087_v61 = vld [vmem:[#allocation8 + $0xba4] sm:$0xf0]  ;;  %v8862_v4 = vld [vmem:[#allocation8 + $0xba8] sm:$0xf0] }
 0x46f   :  { %v5606_v2 = vpop.f32.mrf.mxu2 }
 0x470   :  { %v8893_v2 = vor.u32 %v10095_v47, %v8892_v43 }
 0x471   :  { %v5619_v13 = vpop.f32.mrf.mxu3 }
 0x472   :  { %v8852_v13 = vld [vmem:[#allocation8 + $0xb80] sm:$0xf] }
 0x473   :  { %5727 = vmatpush.bf16.xpose.msrb.mxu0 %v8581_v12  ;;  %v8462_v12 = vld [vmem:[#allocation8 + $0x878] sm:$0xf0] }
 0x474   :  { %5740 = vmatpush.bf16.xpose.msrb.mxu1 %v8585_v14  ;;  %v8453_v14 = vor.u32 %v9984_v3, %v8452_v18  ;;  %v8465_v20 = vor.u32 %v9981_v10, %v8462_v12  ;;  %v10078_v18 = vld [vmem:[#allocation8 + $0xb5c] sm:$0xf0]  ;;  %v8830_v10 = vld [vmem:[#allocation8 + $0xb68] sm:$0xf0] }
 0x475   :  { %5753 = vmatpush.bf16.xpose.msrb.mxu2 %v8589_v22  ;;  %5766 = vmatpush.bf16.xpose.msrb.mxu3 %v8593_v15  ;;  %v8457_v22 = vor.u32 %v9980_v6, %v8454_v8  ;;  %v8461_v15 = vor.u32 %v9985_v5, %v8460_v9  ;;  %v8822_v6 = vld [vmem:[#allocation8 + $0xb60] sm:$0xf0]  ;;  %v8828_v8 = vld [vmem:[#allocation8 + $0xb48] sm:$0xf]  ;;  %v10075_v5 = vld [vmem:[#allocation8 + $0xb4c] sm:$0xf] }
 0x476   :  { %v10079_v9 = vld [vmem:[#allocation8 + $0xb64] sm:$0xf0] }
 0x47b   :  { %5728 = vmatpush.bf16.xpose.msrb.mxu0 %v8549_v33  ;;  %v8430_v33 = vld [vmem:[#allocation8 + $0x838] sm:$0xf0] }
 0x47c   :  { %5741 = vmatpush.bf16.xpose.msrb.mxu1 %v8553_v34  ;;  %v8884_v34 = vld [vmem:[#allocation8 + $0xbc0] sm:$0xf]  ;;  %v8433_v50 = vor.u32 %v9973_v32, %v8430_v33  ;;  %v10071_v32 = vld [vmem:[#allocation8 + $0xb24] sm:$0xf0]  ;;  %v10067_v33 = vld [vmem:[#allocation8 + $0xb0c] sm:$0xf] }
 0x47d   :  { %5754 = vmatpush.bf16.xpose.msrb.mxu2 %v8557_v35  ;;  %5767 = vmatpush.bf16.xpose.msrb.mxu3 %v8561_v38  ;;  %v10094_v35 = vld [vmem:[#allocation8 + $0xbdc] sm:$0xf0]  ;;  %v10090_v38 = vld [vmem:[#allocation8 + $0xbc4] sm:$0xf] }
 0x47e   :  { %v8885_v56 = vor.u32 %v10094_v35, %v8884_v34  ;;  %v8798_v34 = vld [vmem:[#allocation8 + $0xb28] sm:$0xf0] }
 0x483   :  { %5729 = vmatpush.bf16.xpose.msrb.mxu0 %v8517_v57  ;;  %v8889_v57 = vor.u32 %v10090_v38, %v8886_v41  ;;  %v8797_v41 = vor.u32 %v10071_v32, %v8796_v28 }
 0x484   :  { %5742 = vmatpush.bf16.xpose.msrb.mxu1 %v8521_v44  ;;  %v8897_v44 = vor.u32 %v10091_v27, %v8894_v55 }
 0x485   :  { %5755 = vmatpush.bf16.xpose.msrb.mxu2 %v8525_v58  ;;  %5768 = vmatpush.bf16.xpose.msrb.mxu3 %v8529_v59  ;;  %v2684_v58 = vperm.slane %v10813_v19, 3  ;;  %v10086_v59 = vld [vmem:[#allocation8 + $0xb9c] sm:$0xf0]  ;;  %v8861_v19 = vor.u32 %v10087_v61, %v8860_v60 }
 0x486   :  { %v8853_v63 = vor.u32 %v10086_v59, %v8852_v13  ;;  %v10063_v13 = vld [vmem:[#allocation8 + $0xae4] sm:$0xf0]  ;;  %v10059_v59 = vld [vmem:[#allocation8 + $0xacc] sm:$0xf] }
 0x487   :  { %v5579_v62 = vadd.f32 %v10828_v16, %v2684_v58  ;;  %v10074_v16 = vld [vmem:[#allocation8 + $0xb44] sm:$0xf]  ;;  %v8764_v58 = vld [vmem:[#allocation8 + $0xac8] sm:$0xf] }
 0x48b   :  { %5730 = vmatpush.bf16.xpose.msrb.mxu0 %v8485_v29  ;;  %v8857_v29 = vor.u32 %v10082_v46, %v8854_v37  ;;  %v8766_v46 = vld [vmem:[#allocation8 + $0xae8] sm:$0xf0] }
 0x48c   :  { %5743 = vmatpush.bf16.xpose.msrb.mxu1 %v8489_v0  ;;  %v8865_v0 = vor.u32 %v10083_v17, %v8862_v4  ;;  %v8765_v4 = vor.u32 %v10063_v13, %v8764_v58  ;;  %v8910_v58 = vld [vmem:[#allocation8 + $0xbf8] sm:$0xf0] }
 0x48d   :  { %5756 = vmatpush.bf16.xpose.msrb.mxu2 %v8493_v11  ;;  %5769 = vmatpush.bf16.xpose.msrb.mxu3 %v8497_v1  ;;  %v5592_v11 = vadd.f32 %v10830_v26, %v5579_v62  ;;  %v8820_v1 = vld [vmem:[#allocation8 + $0xb40] sm:$0xf]  ;;  %v8833_v26 = vor.u32 %v10075_v5, %v8830_v10 }
 0x48e   :  { %v8821_v12 = vor.u32 %v10078_v18, %v8820_v1  ;;  %v8732_v1 = vld [vmem:[#allocation8 + $0xa88] sm:$0xf] }
 0x48f   :  { %v5605_v3 = vadd.f32 %v10832_v31, %v5592_v11  ;;  %v10070_v31 = vld [vmem:[#allocation8 + $0xb1c] sm:$0xf0]  ;;  %v8726_v11 = vld [vmem:[#allocation8 + $0xaa0] sm:$0xf0]  ;;  %v10055_v18 = vld [vmem:[#allocation8 + $0xaa4] sm:$0xf0] }
 0x490   :  { %v8789_v38 = vor.u32 %v10070_v31, %v8788_v24  ;;  %v8733_v10 = vor.u32 %v10055_v18, %v8732_v1  ;;  %v8702_v24 = vld [vmem:[#allocation8 + $0xa68] sm:$0xf0] }
 0x493   :  { %5731 = vmatpush.bf16.xpose.msrb.mxu0 %v8453_v14  ;;  %v8825_v14 = vor.u32 %v10074_v16, %v8822_v6  ;;  %v10051_v16 = vld [vmem:[#allocation8 + $0xa8c] sm:$0xf] }
 0x494   :  { %5744 = vmatpush.bf16.xpose.msrb.mxu1 %v8457_v22  ;;  %v8829_v22 = vor.u32 %v10079_v9, %v8828_v8 }
 0x495   :  { %5757 = vmatpush.bf16.xpose.msrb.mxu2 %v8461_v15  ;;  %5770 = vmatpush.bf16.xpose.msrb.mxu3 %v8465_v20  ;;  %v5618_v15 = vadd.f32 %v10834_v36, %v5605_v3  ;;  %v8793_v36 = vor.u32 %v10066_v25, %v8790_v30  ;;  %v8734_v3 = vld [vmem:[#allocation8 + $0xaa8] sm:$0xf0] }
 0x49b   :  { %5732 = vmatpush.bf16.xpose.msrb.mxu0 %v8421_v39 }
 0x49c   :  { %5745 = vmatpush.bf16.xpose.msrb.mxu1 %v8425_v51  ;;  %v8801_v51 = vor.u32 %v10067_v33, %v8798_v34  ;;  %v8660_v33 = vld [vmem:[#allocation8 + $0xa00] sm:$0xf] }
 0x49d   :  { %5758 = vmatpush.bf16.xpose.msrb.mxu2 %v8429_v53  ;;  %5771 = vmatpush.bf16.xpose.msrb.mxu3 %v8433_v50  ;;  %v8756_v50 = vld [vmem:[#allocation8 + $0xac0] sm:$0xf] }
 0x49e   :  { %v10038_v34 = vld [vmem:[#allocation8 + $0xa1c] sm:$0xf0] }
 0x49f   :  { %v5630_v20 = vpop.f32.mrf.mxu0 }
 0x4a0   :  { %v5643_v21 = vpop.f32.mrf.mxu1  ;;  %v5631_v23 = vadd.f32 %v5630_v20, %v5618_v15  ;;  %v10042_v15 = vld [vmem:[#allocation8 + $0xa44] sm:$0xf]  ;;  %v8700_v20 = vld [vmem:[#allocation8 + $0xa48] sm:$0xf] }
 0x4a2   :  { %5733 = vmatmul.bf16.vlgmr.msrb.gmra.mxu0 %v10744_v48  ;;  %v5644_v35 = vadd.f32 %v5643_v21, %v5631_v23  ;;  %v10047_v21 = vld [vmem:[#allocation8 + $0xa64] sm:$0xf0]  ;;  %v10043_v23 = vld [vmem:[#allocation8 + $0xa4c] sm:$0xf] }
 0x4a3   :  { %5777 = vmatpush.bf16.xpose.msra.mxu0 %v8885_v56  ;;  %5746 = vmatmul.bf16.vlgmr.msrb.gmra.mxu1 %v10748_v54  ;;  %v10062_v56 = vld [vmem:[#allocation8 + $0xadc] sm:$0xf0]  ;;  %v8701_v28 = vor.u32 %v10047_v21, %v8700_v20  ;;  %v8705_v32 = vor.u32 %v10043_v23, %v8702_v24  ;;  %v8804_v24 = vld [vmem:[#allocation8 + $0xb10] sm:$0xf] }
 0x4a4   :  { %5790 = vmatpush.bf16.xpose.msra.mxu1 %v8889_v57  ;;  %5759 = vmatmul.bf16.vlgmr.msrb.gmra.mxu2 %v10740_v40  ;;  %v10058_v57 = vld [vmem:[#allocation8 + $0xac4] sm:$0xf]  ;;  %v8757_v60 = vor.u32 %v10062_v56, %v8756_v50  ;;  %v8908_v50 = vld [vmem:[#allocation8 + $0xbd8] sm:$0xf] }
 0x4a5   :  { %5803 = vmatpush.bf16.xpose.msra.mxu2 %v8893_v2  ;;  %5816 = vmatpush.bf16.xpose.msra.mxu3 %v8897_v44  ;;  %v8758_v2 = vld [vmem:[#allocation8 + $0xae0] sm:$0xf0]  ;;  %v10097_v56 = vld [vmem:[#allocation8 + $0xbf4] sm:$0xf0] }
 0x4a6   :  { %5772 = vmatmul.bf16.vlgmr.msrb.gmra.mxu3 %v10754_v7  ;;  %v8761_v17 = vor.u32 %v10058_v57, %v8758_v2 }
 0x4a7   :  { %v5656_v39 = vpop.f32.mrf.mxu2  ;;  %v5632_v53 = vpop.f32.mrf.mxu0 }
 0x4a8   :  { %v5657_v43 = vadd.f32 %v5656_v39, %v5644_v35  ;;  %v5645_v27 = vpop.f32.mrf.mxu1  ;;  %v10034_v35 = vld [vmem:[#allocation8 + $0xa04] sm:$0xf]  ;;  %v8668_v39 = vld [vmem:[#allocation8 + $0xa08] sm:$0xf]  ;;  %v10092_v53 = vld [vmem:[#allocation8 + $0xbd4] sm:$0xf] }
 0x4a9   :  { %v5669_v47 = vpop.f32.mrf.mxu3  ;;  %v8661_v27 = vor.u32 %v10038_v34, %v8660_v33  ;;  %v10069_v33 = vld [vmem:[#allocation8 + $0xb1c] sm:$0xf] }
 0x4aa   :  { %v5670_v55 = vadd.f32 %v5669_v47, %v5657_v43  ;;  %v8670_v43 = vld [vmem:[#allocation8 + $0xa28] sm:$0xf0]  ;;  %v8900_v47 = vld [vmem:[#allocation8 + $0xbd0] sm:$0xf]  ;;  %v8814_v34 = vld [vmem:[#allocation8 + $0xb38] sm:$0xf0] }
 0x4ab   :  { %5778 = vmatpush.bf16.xpose.msra.mxu0 %v8853_v63  ;;  %v8769_v63 = vor.u32 %v10059_v59, %v8766_v46 }
 0x4ac   :  { %5791 = vmatpush.bf16.xpose.msra.mxu1 %v8857_v29  ;;  %v6092_v44 = vsub.f32 0.0, %v5670_v55  ;;  %v8724_v29 = vld [vmem:[#allocation8 + $0xa80] sm:$0xf]  ;;  %v8902_v55 = vld [vmem:[#allocation8 + $0xbf0] sm:$0xf0] }
 0x4ad   :  { %5804 = vmatpush.bf16.xpose.msra.mxu2 %v8861_v19  ;;  %5817 = vmatpush.bf16.xpose.msra.mxu3 %v8865_v0  ;;  %v10054_v19 = vld [vmem:[#allocation8 + $0xa9c] sm:$0xf0]  ;;  %v10050_v0 = vld [vmem:[#allocation8 + $0xa84] sm:$0xf]  ;;  %v8905_v46 = vor.u32 %v10092_v53, %v8902_v55  ;;  %v8772_v53 = vld [vmem:[#allocation8 + $0xad0] sm:$0xf] }
 0x4ae   :  { %v6103_v37 = vmul.f32 1.442695, %v6092_v44  ;;  %v8725_v8 = vor.u32 %v10054_v19, %v8724_v29  ;;  %v8729_v5 = vor.u32 %v10050_v0, %v8726_v11  ;;  %v10093_v44 = vld [vmem:[#allocation8 + $0xbdc] sm:$0xf]  ;;  %v10089_v29 = vld [vmem:[#allocation8 + $0xbb4] sm:$0xf0] }
 0x4af   :  { %v5658_v61 = vpop.f32.mrf.mxu2  ;;  %v10085_v19 = vld [vmem:[#allocation8 + $0xb9c] sm:$0xf]  ;;  %v10060_v55 = vld [vmem:[#allocation8 + $0xad4] sm:$0xf] }
 0x4b0   :  { %10293 = vpow2.f32 %v6103_v37  ;;  %v8909_v37 = vor.u32 %v10097_v56, %v8908_v50  ;;  %v8868_v61 = vld [vmem:[#allocation8 + $0xb90] sm:$0xf]  ;;  %v8878_v0 = vld [vmem:[#allocation8 + $0xbb8] sm:$0xf0]  ;;  %v8774_v50 = vld [vmem:[#allocation8 + $0xaf0] sm:$0xf0] }
 0x4b1   :  { %v5671_v62 = vpop.f32.mrf.mxu3  ;;  %v8780_v56 = vld [vmem:[#allocation8 + $0xad8] sm:$0xf] }
 0x4b2   :  { %v8870_v62 = vld [vmem:[#allocation8 + $0xbb0] sm:$0xf0] }
 0x4b3   :  { %5779 = vmatpush.bf16.xpose.msra.mxu0 %v8821_v12  ;;  %v8737_v12 = vor.u32 %v10051_v16, %v8734_v3  ;;  %v8881_v16 = vor.u32 %v10085_v19, %v8878_v0  ;;  %v8836_v3 = vld [vmem:[#allocation8 + $0xb50] sm:$0xf]  ;;  %v10053_v19 = vld [vmem:[#allocation8 + $0xa9c] sm:$0xf] }
 0x4b4   :  { %5792 = vmatpush.bf16.xpose.msra.mxu1 %v8825_v14  ;;  %v8692_v14 = vld [vmem:[#allocation8 + $0xa40] sm:$0xf]  ;;  %v8750_v0 = vld [vmem:[#allocation8 + $0xab8] sm:$0xf0] }
 0x4b5   :  { %5805 = vmatpush.bf16.xpose.msra.mxu2 %v8829_v22  ;;  %5818 = vmatpush.bf16.xpose.msra.mxu3 %v8833_v26  ;;  %v10046_v22 = vld [vmem:[#allocation8 + $0xa5c] sm:$0xf0]  ;;  %v8694_v26 = vld [vmem:[#allocation8 + $0xa60] sm:$0xf0] }
 0x4b6   :  { %v10294_v6 = vpop.eup %10293  ;;  %v8693_v31 = vor.u32 %v10046_v22, %v8692_v14  ;;  %v8697_v30 = vor.u32 %v10042_v15, %v8694_v26  ;;  %v8846_v14 = vld [vmem:[#allocation8 + $0xb78] sm:$0xf0] }
 0x4b7   :  { %v6116_v9 = vadd.f32 1.0, %v10294_v6  ;;  %v10080_v6 = vld [vmem:[#allocation8 + $0xb6c] sm:$0xf0] }
 0x4b8   :  { %v8837_v22 = vor.u32 %v10080_v6, %v8836_v3  ;;  %v8708_v3 = vld [vmem:[#allocation8 + $0xa50] sm:$0xf] }
 0x4b9   :  { %10295 = vrcp.f32 %v6116_v9  ;;  %v8838_v9 = vld [vmem:[#allocation8 + $0xb70] sm:$0xf0]  ;;  %v10048_v6 = vld [vmem:[#allocation8 + $0xa6c] sm:$0xf0] }
 0x4bb   :  { %5780 = vmatpush.bf16.xpose.msra.mxu0 %v8789_v38  ;;  %v8662_v38 = vld [vmem:[#allocation8 + $0xa20] sm:$0xf0] }
 0x4bc   :  { %5793 = vmatpush.bf16.xpose.msra.mxu1 %v8793_v36  ;;  %v10039_v36 = vld [vmem:[#allocation8 + $0xa24] sm:$0xf0]  ;;  %v8665_v57 = vor.u32 %v10034_v35, %v8662_v38 }
 0x4bd   :  { %5806 = vmatpush.bf16.xpose.msra.mxu2 %v8797_v41  ;;  %5819 = vmatpush.bf16.xpose.msra.mxu3 %v8801_v51  ;;  %v10035_v41 = vld [vmem:[#allocation8 + $0xa0c] sm:$0xf]  ;;  %v10096_v51 = vld [vmem:[#allocation8 + $0xbec] sm:$0xf0]  ;;  %v8669_v2 = vor.u32 %v10039_v36, %v8668_v39 }
 0x4be   :  { %v8673_v13 = vor.u32 %v10035_v41, %v8670_v43  ;;  %v8901_v59 = vor.u32 %v10096_v51, %v8900_v47  ;;  %v8817_v43 = vor.u32 %v10069_v33, %v8814_v34  ;;  %v10037_v33 = vld [vmem:[#allocation8 + $0xa1c] sm:$0xf] }
 0x4bf   :  { %v10296_v25 = vpop.eup %10295  ;;  %v8686_v34 = vld [vmem:[#allocation8 + $0xa38] sm:$0xf0] }
 0x4c0   :  { %6132 = vst [vmem:[#allocation15 + $0x18] sm:$0xff] %v10296_v25  ;;  %v10068_v25 = vld [vmem:[#allocation8 + $0xb14] sm:$0xf] }
 0x4c3   :  { %5781 = vmatpush.bf16.xpose.msra.mxu0 %v8757_v60  ;;  %v8913_v60 = vor.u32 %v10093_v44, %v8910_v58  ;;  %v8782_v44 = vld [vmem:[#allocation8 + $0xaf8] sm:$0xf0] }
 0x4c4   :  { %5794 = vmatpush.bf16.xpose.msra.mxu1 %v8761_v17  ;;  %v10088_v17 = vld [vmem:[#allocation8 + $0xbac] sm:$0xf0] }
 0x4c5   :  { %5807 = vmatpush.bf16.xpose.msra.mxu2 %v8765_v4  ;;  %5820 = vmatpush.bf16.xpose.msra.mxu3 %v8769_v63  ;;  %v10084_v4 = vld [vmem:[#allocation8 + $0xb94] sm:$0xf]  ;;  %v8876_v63 = vld [vmem:[#allocation8 + $0xb98] sm:$0xf]  ;;  %v8869_v11 = vor.u32 %v10088_v17, %v8868_v61  ;;  %v8740_v61 = vld [vmem:[#allocation8 + $0xa90] sm:$0xf] }
 0x4c6   :  { %v8873_v1 = vor.u32 %v10084_v4, %v8870_v62  ;;  %v8877_v18 = vor.u32 %v10089_v29, %v8876_v63  ;;  %v10056_v17 = vld [vmem:[#allocation8 + $0xaac] sm:$0xf0]  ;;  %v10052_v4 = vld [vmem:[#allocation8 + $0xa94] sm:$0xf]  ;;  %v8748_v63 = vld [vmem:[#allocation8 + $0xa98] sm:$0xf] }
 0x4c7   :  { %v8742_v62 = vld [vmem:[#allocation8 + $0xab0] sm:$0xf0]  ;;  %v10057_v29 = vld [vmem:[#allocation8 + $0xab4] sm:$0xf0] }
 0x4cb   :  { %5782 = vmatpush.bf16.xpose.msra.mxu0 %v8725_v8  ;;  %v10076_v8 = vld [vmem:[#allocation8 + $0xb54] sm:$0xf] }
 0x4cc   :  { %5795 = vmatpush.bf16.xpose.msra.mxu1 %v8729_v5  ;;  %v8844_v5 = vld [vmem:[#allocation8 + $0xb58] sm:$0xf]  ;;  %v8841_v15 = vor.u32 %v10076_v8, %v8838_v9  ;;  %v10044_v8 = vld [vmem:[#allocation8 + $0xa54] sm:$0xf] }
 0x4cd   :  { %5808 = vmatpush.bf16.xpose.msra.mxu2 %v8733_v10  ;;  %5821 = vmatpush.bf16.xpose.msra.mxu3 %v8737_v12  ;;  %v10081_v10 = vld [vmem:[#allocation8 + $0xb74] sm:$0xf0]  ;;  %v10077_v12 = vld [vmem:[#allocation8 + $0xb5c] sm:$0xf]  ;;  %v8710_v9 = vld [vmem:[#allocation8 + $0xa70] sm:$0xf0] }
 0x4ce   :  { %v8845_v26 = vor.u32 %v10081_v10, %v8844_v5  ;;  %v8849_v20 = vor.u32 %v10077_v12, %v8846_v14  ;;  %v8716_v5 = vld [vmem:[#allocation8 + $0xa58] sm:$0xf]  ;;  %v10045_v12 = vld [vmem:[#allocation8 + $0xa5c] sm:$0xf] }
 0x4cf   :  { %v10049_v10 = vld [vmem:[#allocation8 + $0xa74] sm:$0xf0]  ;;  %v8718_v14 = vld [vmem:[#allocation8 + $0xa78] sm:$0xf0] }
 0x4d3   :  { %5783 = vmatpush.bf16.xpose.msra.mxu0 %v8693_v31  ;;  %v10072_v31 = vld [vmem:[#allocation8 + $0xb2c] sm:$0xf0] }
 0x4d4   :  { %5796 = vmatpush.bf16.xpose.msra.mxu1 %v8697_v30  ;;  %v8806_v30 = vld [vmem:[#allocation8 + $0xb30] sm:$0xf0]  ;;  %v8805_v35 = vor.u32 %v10072_v31, %v8804_v24  ;;  %v8676_v24 = vld [vmem:[#allocation8 + $0xa10] sm:$0xf] }
 0x4d5   :  { %5809 = vmatpush.bf16.xpose.msra.mxu2 %v8701_v28  ;;  %5822 = vmatpush.bf16.xpose.msra.mxu3 %v8705_v32  ;;  %v8812_v28 = vld [vmem:[#allocation8 + $0xb18] sm:$0xf]  ;;  %v8809_v39 = vor.u32 %v10068_v25, %v8806_v30  ;;  %v10040_v31 = vld [vmem:[#allocation8 + $0xa2c] sm:$0xf0]  ;;  %v10036_v25 = vld [vmem:[#allocation8 + $0xa14] sm:$0xf] }
 0x4d6   :  { %v10073_v32 = vld [vmem:[#allocation8 + $0xb34] sm:$0xf0]  ;;  %v8678_v30 = vld [vmem:[#allocation8 + $0xa30] sm:$0xf0] }
 0x4d7   :  { %v8813_v36 = vor.u32 %v10073_v32, %v8812_v28  ;;  %v8684_v28 = vld [vmem:[#allocation8 + $0xa18] sm:$0xf] }
 0x4d8   :  { %v10041_v32 = vld [vmem:[#allocation8 + $0xa34] sm:$0xf0] }
 0x4db   :  { %5784 = vmatpush.bf16.xpose.msra.mxu0 %v8661_v27  ;;  %v10064_v27 = vld [vmem:[#allocation8 + $0xaec] sm:$0xf0] }
 0x4dc   :  { %5797 = vmatpush.bf16.xpose.msra.mxu1 %v8665_v57  ;;  %v10065_v57 = vld [vmem:[#allocation8 + $0xaf4] sm:$0xf0]  ;;  %v8773_v58 = vor.u32 %v10064_v27, %v8772_v53  ;;  %v10159_v53 = vld [vmem:[#allocation8 + $0xde4] sm:$0xf0]  ;;  %v8681_v27 = vor.u32 %v10036_v25, %v8678_v30  ;;  %v9044_v30 = vld [vmem:[#allocation8 + $0xd00] sm:$0xf] }
 0x4dd   :  { %5810 = vmatpush.bf16.xpose.msra.mxu2 %v8669_v2  ;;  %5823 = vmatpush.bf16.xpose.msra.mxu3 %v8673_v13  ;;  %v10061_v2 = vld [vmem:[#allocation8 + $0xadc] sm:$0xf] }
 0x4df   :  { %v10849_v21 = vpop.f32.mrf.mxu0 }
 0x4e0   :  { %v10851_v23 = vpop.f32.mrf.mxu1 }
 0x4e2   :  { %5785 = vmatmul.bf16.vlgmr.msra.gmra.mxu0 %v10722_v42 }
 0x4e3   :  { %5829 = vmatpush.bf16.xpose.msrb.mxu0 %v8901_v59  ;;  %5798 = vmatmul.bf16.vlgmr.msra.gmra.mxu1 %v10725_v49  ;;  %v8777_v59 = vor.u32 %v10060_v55, %v8774_v50  ;;  %v8685_v55 = vor.u32 %v10041_v32, %v8684_v28  ;;  %v10155_v50 = vld [vmem:[#allocation8 + $0xdcc] sm:$0xf]  ;;  %v10130_v28 = vld [vmem:[#allocation8 + $0xd04] sm:$0xf] }
 0x4e4   :  { %5842 = vmatpush.bf16.xpose.msrb.mxu1 %v8905_v46  ;;  %5811 = vmatmul.bf16.vlgmr.msra.gmra.mxu2 %v10729_v45  ;;  %v8781_v46 = vor.u32 %v10065_v57, %v8780_v56  ;;  %v9150_v56 = vld [vmem:[#allocation8 + $0xde8] sm:$0xf0]  ;;  %v8689_v57 = vor.u32 %v10037_v33, %v8686_v34  ;;  %v9046_v32 = vld [vmem:[#allocation8 + $0xd20] sm:$0xf0]  ;;  %v9052_v33 = vld [vmem:[#allocation8 + $0xd08] sm:$0xf] }
 0x4e5   :  { %5855 = vmatpush.bf16.xpose.msrb.mxu2 %v8909_v37  ;;  %5868 = vmatpush.bf16.xpose.msrb.mxu3 %v8913_v60  ;;  %v8785_v60 = vor.u32 %v10061_v2, %v8782_v44  ;;  %v10135_v34 = vld [vmem:[#allocation8 + $0xd24] sm:$0xf0] }
 0x4e6   :  { %5824 = vmatmul.bf16.vlgmr.msra.gmra.mxu3 %v10733_v52 }
 0x4e7   :  { %v10853_v38 = vpop.f32.mrf.mxu2  ;;  %v5684_v47 = vpop.f32.mrf.mxu0 }
 0x4e8   :  { %v5697_v51 = vpop.f32.mrf.mxu1  ;;  %v9142_v47 = vld [vmem:[#allocation8 + $0xde0] sm:$0xf0] }
 0x4e9   :  { %v10855_v41 = vpop.f32.mrf.mxu3  ;;  %v9148_v51 = vld [vmem:[#allocation8 + $0xdc8] sm:$0xf] }
 0x4eb   :  { %5830 = vmatpush.bf16.xpose.msrb.mxu0 %v8869_v11  ;;  %v8741_v11 = vor.u32 %v10056_v17, %v8740_v61  ;;  %v10146_v61 = vld [vmem:[#allocation8 + $0xd84] sm:$0xf] }
 0x4ec   :  { %5843 = vmatpush.bf16.xpose.msrb.mxu1 %v8873_v1  ;;  %v8745_v1 = vor.u32 %v10052_v4, %v8742_v62  ;;  %v9110_v17 = vld [vmem:[#allocation8 + $0xda0] sm:$0xf0]  ;;  %v9116_v4 = vld [vmem:[#allocation8 + $0xd88] sm:$0xf] }
 0x4ed   :  { %5856 = vmatpush.bf16.xpose.msrb.mxu2 %v8877_v18  ;;  %5869 = vmatpush.bf16.xpose.msrb.mxu3 %v8881_v16  ;;  %v8749_v18 = vor.u32 %v10057_v29, %v8748_v63  ;;  %v8753_v16 = vor.u32 %v10053_v19, %v8750_v0  ;;  %v10151_v62 = vld [vmem:[#allocation8 + $0xda4] sm:$0xf0]  ;;  %v10147_v63 = vld [vmem:[#allocation8 + $0xd8c] sm:$0xf] }
 0x4ee   :  { %v9118_v29 = vld [vmem:[#allocation8 + $0xda8] sm:$0xf0] }
 0x4ef   :  { %v5710_v13 = vpop.f32.mrf.mxu2 }
 0x4f0   :  { %v9153_v13 = vor.u32 %v10155_v50, %v9150_v56 }
 0x4f1   :  { %v5723_v37 = vpop.f32.mrf.mxu3 }
 0x4f2   :  { %v9108_v37 = vld [vmem:[#allocation8 + $0xd80] sm:$0xf] }
 0x4f3   :  { %5831 = vmatpush.bf16.xpose.msrb.mxu0 %v8837_v22  ;;  %v8709_v22 = vor.u32 %v10048_v6, %v8708_v3  ;;  %v9076_v3 = vld [vmem:[#allocation8 + $0xd40] sm:$0xf] }
 0x4f4   :  { %5844 = vmatpush.bf16.xpose.msrb.mxu1 %v8841_v15  ;;  %v8713_v15 = vor.u32 %v10044_v8, %v8710_v9  ;;  %v10142_v6 = vld [vmem:[#allocation8 + $0xd5c] sm:$0xf0]  ;;  %v9078_v9 = vld [vmem:[#allocation8 + $0xd60] sm:$0xf0] }
 0x4f5   :  { %5857 = vmatpush.bf16.xpose.msrb.mxu2 %v8845_v26  ;;  %5870 = vmatpush.bf16.xpose.msrb.mxu3 %v8849_v20  ;;  %v8717_v26 = vor.u32 %v10049_v10, %v8716_v5  ;;  %v8721_v20 = vor.u32 %v10045_v12, %v8718_v14  ;;  %v9084_v5 = vld [vmem:[#allocation8 + $0xd48] sm:$0xf]  ;;  %v10139_v12 = vld [vmem:[#allocation8 + $0xd4c] sm:$0xf] }
 0x4f6   :  { %v10143_v10 = vld [vmem:[#allocation8 + $0xd64] sm:$0xf0]  ;;  %v9086_v14 = vld [vmem:[#allocation8 + $0xd68] sm:$0xf0] }
 0x4fb   :  { %5832 = vmatpush.bf16.xpose.msrb.mxu0 %v8805_v35  ;;  %v9140_v35 = vld [vmem:[#allocation8 + $0xdc0] sm:$0xf] }
 0x4fc   :  { %5845 = vmatpush.bf16.xpose.msrb.mxu1 %v8809_v39  ;;  %v10158_v39 = vld [vmem:[#allocation8 + $0xddc] sm:$0xf0] }
 0x4fd   :  { %5858 = vmatpush.bf16.xpose.msrb.mxu2 %v8813_v36  ;;  %5871 = vmatpush.bf16.xpose.msrb.mxu3 %v8817_v43  ;;  %v10154_v36 = vld [vmem:[#allocation8 + $0xdc4] sm:$0xf]  ;;  %v8677_v43 = vor.u32 %v10040_v31, %v8676_v24  ;;  %v9141_v2 = vor.u32 %v10158_v39, %v9140_v35  ;;  %v10131_v35 = vld [vmem:[#allocation8 + $0xd0c] sm:$0xf] }
 0x4fe   :  { %v9145_v44 = vor.u32 %v10154_v36, %v9142_v47  ;;  %v9054_v39 = vld [vmem:[#allocation8 + $0xd28] sm:$0xf0] }
 0x503   :  { %5833 = vmatpush.bf16.xpose.msrb.mxu0 %v8773_v58  ;;  %v9149_v58 = vor.u32 %v10159_v53, %v9148_v51  ;;  %v9053_v51 = vor.u32 %v10135_v34, %v9052_v33 }
 0x504   :  { %5846 = vmatpush.bf16.xpose.msrb.mxu1 %v8777_v59  ;;  %v10857_v59 = vld [vmem:[#allocation10] sm:$0xff] }
 0x505   :  { %5859 = vmatpush.bf16.xpose.msrb.mxu2 %v8781_v46  ;;  %5872 = vmatpush.bf16.xpose.msrb.mxu3 %v8785_v60  ;;  %v2685_v46 = vperm.slane %v10857_v59, 4  ;;  %v10150_v60 = vld [vmem:[#allocation8 + $0xd9c] sm:$0xf0] }
 0x506   :  { %v9109_v0 = vor.u32 %v10150_v60, %v9108_v37  ;;  %v9020_v37 = vld [vmem:[#allocation8 + $0xcc8] sm:$0xf] }
 0x507   :  { %v5683_v19 = vadd.f32 %v10849_v21, %v2685_v46  ;;  %v10138_v21 = vld [vmem:[#allocation8 + $0xd44] sm:$0xf]  ;;  %v10127_v60 = vld [vmem:[#allocation8 + $0xce4] sm:$0xf0] }
 0x50b   :  { %5834 = vmatpush.bf16.xpose.msrb.mxu0 %v8741_v11  ;;  %v9113_v11 = vor.u32 %v10146_v61, %v9110_v17  ;;  %v10123_v61 = vld [vmem:[#allocation8 + $0xccc] sm:$0xf] }
 0x50c   :  { %5847 = vmatpush.bf16.xpose.msrb.mxu1 %v8745_v1  ;;  %v9117_v1 = vor.u32 %v10151_v62, %v9116_v4  ;;  %v9022_v17 = vld [vmem:[#allocation8 + $0xce8] sm:$0xf0] }
 0x50d   :  { %5860 = vmatpush.bf16.xpose.msrb.mxu2 %v8749_v18  ;;  %5873 = vmatpush.bf16.xpose.msrb.mxu3 %v8753_v16  ;;  %v9121_v18 = vor.u32 %v10147_v63, %v9118_v29  ;;  %v5696_v16 = vadd.f32 %v10851_v23, %v5683_v19  ;;  %v9089_v23 = vor.u32 %v10139_v12, %v9086_v14 }
 0x50e   :  { %v9021_v19 = vor.u32 %v10127_v60, %v9020_v37  ;;  %v10157_v37 = vld [vmem:[#allocation8 + $0xddc] sm:$0xf] }
 0x50f   :  { %v5709_v8 = vadd.f32 %v10853_v38, %v5696_v16  ;;  %v10134_v38 = vld [vmem:[#allocation8 + $0xd1c] sm:$0xf0]  ;;  %v10114_v16 = vld [vmem:[#allocation8 + $0xc84] sm:$0xf]  ;;  %v9166_v60 = vld [vmem:[#allocation8 + $0xdf8] sm:$0xf0] }
 0x513   :  { %5835 = vmatpush.bf16.xpose.msrb.mxu0 %v8709_v22  ;;  %v9077_v22 = vor.u32 %v10142_v6, %v9076_v3  ;;  %v8982_v3 = vld [vmem:[#allocation8 + $0xca0] sm:$0xf0]  ;;  %v8988_v6 = vld [vmem:[#allocation8 + $0xc88] sm:$0xf] }
 0x514   :  { %5848 = vmatpush.bf16.xpose.msrb.mxu1 %v8713_v15  ;;  %v9081_v15 = vor.u32 %v10138_v21, %v9078_v9  ;;  %v10119_v21 = vld [vmem:[#allocation8 + $0xca4] sm:$0xf0]  ;;  %v8990_v9 = vld [vmem:[#allocation8 + $0xca8] sm:$0xf0]  ;;  %v8985_v14 = vor.u32 %v10114_v16, %v8982_v3  ;;  %v10149_v16 = vld [vmem:[#allocation8 + $0xd9c] sm:$0xf] }
 0x515   :  { %5861 = vmatpush.bf16.xpose.msrb.mxu2 %v8717_v26  ;;  %5874 = vmatpush.bf16.xpose.msrb.mxu3 %v8721_v20  ;;  %v9085_v26 = vor.u32 %v10143_v10, %v9084_v5  ;;  %v5722_v20 = vadd.f32 %v10855_v41, %v5709_v8  ;;  %v9049_v41 = vor.u32 %v10130_v28, %v9046_v32  ;;  %v10115_v8 = vld [vmem:[#allocation8 + $0xc8c] sm:$0xf]  ;;  %v9134_v3 = vld [vmem:[#allocation8 + $0xdb8] sm:$0xf0] }
 0x51b   :  { %5836 = vmatpush.bf16.xpose.msrb.mxu0 %v8677_v43  ;;  %v9045_v43 = vor.u32 %v10134_v38, %v9044_v30  ;;  %v10107_v30 = vld [vmem:[#allocation8 + $0xc4c] sm:$0xf] }
 0x51c   :  { %5849 = vmatpush.bf16.xpose.msrb.mxu1 %v8681_v27  ;;  %v8958_v38 = vld [vmem:[#allocation8 + $0xc68] sm:$0xf0] }
 0x51d   :  { %5862 = vmatpush.bf16.xpose.msrb.mxu2 %v8685_v55  ;;  %5875 = vmatpush.bf16.xpose.msrb.mxu3 %v8689_v57  ;;  %v9057_v55 = vor.u32 %v10131_v35, %v9054_v39  ;;  %v8961_v35 = vor.u32 %v10107_v30, %v8958_v38  ;;  %v8916_v39 = vld [vmem:[#allocation8 + $0xc00] sm:$0xf] }
 0x51f   :  { %v5734_v24 = vpop.f32.mrf.mxu0 }
 0x520   :  { %v5747_v31 = vpop.f32.mrf.mxu1  ;;  %v5735_v25 = vadd.f32 %v5734_v24, %v5722_v20  ;;  %v10110_v20 = vld [vmem:[#allocation8 + $0xc5c] sm:$0xf0]  ;;  %v8950_v24 = vld [vmem:[#allocation8 + $0xc60] sm:$0xf0] }
 0x522   :  { %5837 = vmatmul.bf16.vlgmr.msrb.gmra.mxu0 %v10744_v48  ;;  %v5748_v36 = vadd.f32 %v5747_v31, %v5735_v25  ;;  %v8956_v31 = vld [vmem:[#allocation8 + $0xc48] sm:$0xf] }
 0x523   :  { %5881 = vmatpush.bf16.xpose.msra.mxu0 %v9141_v2  ;;  %5850 = vmatmul.bf16.vlgmr.msrb.gmra.mxu1 %v10748_v54  ;;  %v9012_v2 = vld [vmem:[#allocation8 + $0xcc0] sm:$0xf]  ;;  %v10111_v25 = vld [vmem:[#allocation8 + $0xc64] sm:$0xf0] }
 0x524   :  { %5894 = vmatpush.bf16.xpose.msra.mxu1 %v9145_v44  ;;  %5863 = vmatmul.bf16.vlgmr.msrb.gmra.mxu2 %v10740_v40  ;;  %v10126_v44 = vld [vmem:[#allocation8 + $0xcdc] sm:$0xf0]  ;;  %v8957_v34 = vor.u32 %v10111_v25, %v8956_v31 }
 0x525   :  { %5907 = vmatpush.bf16.xpose.msra.mxu2 %v9149_v58  ;;  %5920 = vmatpush.bf16.xpose.msra.mxu3 %v9153_v13  ;;  %v10122_v58 = vld [vmem:[#allocation8 + $0xcc4] sm:$0xf]  ;;  %v9013_v62 = vor.u32 %v10126_v44, %v9012_v2  ;;  %v9158_v2 = vld [vmem:[#allocation8 + $0xdf0] sm:$0xf0]  ;;  %v9164_v44 = vld [vmem:[#allocation8 + $0xdd8] sm:$0xf] }
 0x526   :  { %5876 = vmatmul.bf16.vlgmr.msrb.gmra.mxu3 %v10754_v7  ;;  %v9014_v13 = vld [vmem:[#allocation8 + $0xce0] sm:$0xf0] }
 0x527   :  { %v5760_v47 = vpop.f32.mrf.mxu2  ;;  %v5736_v50 = vpop.f32.mrf.mxu0  ;;  %v9017_v29 = vor.u32 %v10122_v58, %v9014_v13  ;;  %v10161_v58 = vld [vmem:[#allocation8 + $0xdf4] sm:$0xf0] }
 0x528   :  { %v5761_v53 = vadd.f32 %v5760_v47, %v5748_v36  ;;  %v5749_v56 = vpop.f32.mrf.mxu1  ;;  %v10102_v36 = vld [vmem:[#allocation8 + $0xc1c] sm:$0xf0]  ;;  %v8918_v47 = vld [vmem:[#allocation8 + $0xc20] sm:$0xf0]  ;;  %v10160_v50 = vld [vmem:[#allocation8 + $0xdec] sm:$0xf0] }
 0x529   :  { %v5773_v27 = vpop.f32.mrf.mxu3  ;;  %v10156_v56 = vld [vmem:[#allocation8 + $0xdd4] sm:$0xf] }
 0x52a   :  { %v5774_v57 = vadd.f32 %v5773_v27, %v5761_v53  ;;  %v10099_v53 = vld [vmem:[#allocation8 + $0xc0c] sm:$0xf] }
 0x52b   :  { %5882 = vmatpush.bf16.xpose.msra.mxu0 %v9109_v0  ;;  %v8926_v27 = vld [vmem:[#allocation8 + $0xc28] sm:$0xf0] }
 0x52c   :  { %5895 = vmatpush.bf16.xpose.msra.mxu1 %v9113_v11  ;;  %v6093_v46 = vsub.f32 0.0, %v5774_v57  ;;  %v9025_v11 = vor.u32 %v10123_v61, %v9022_v17  ;;  %v8917_v57 = vor.u32 %v10102_v36, %v8916_v39  ;;  %v8929_v61 = vor.u32 %v10099_v53, %v8926_v27  ;;  %v10137_v39 = vld [vmem:[#allocation8 + $0xd34] sm:$0xf0]  ;;  %v10133_v36 = vld [vmem:[#allocation8 + $0xd1c] sm:$0xf] }
 0x52d   :  { %5908 = vmatpush.bf16.xpose.msra.mxu2 %v9117_v1  ;;  %5921 = vmatpush.bf16.xpose.msra.mxu3 %v9121_v18  ;;  %v8980_v1 = vld [vmem:[#allocation8 + $0xc80] sm:$0xf] }
 0x52e   :  { %v6105_v4 = vmul.f32 1.442695, %v6093_v46  ;;  %v10118_v18 = vld [vmem:[#allocation8 + $0xc9c] sm:$0xf0] }
 0x52f   :  { %v5762_v63 = vpop.f32.mrf.mxu2  ;;  %v8981_v10 = vor.u32 %v10118_v18, %v8980_v1  ;;  %v9132_v1 = vld [vmem:[#allocation8 + $0xd98] sm:$0xf] }
 0x530   :  { %10297 = vpow2.f32 %v6105_v4  ;;  %v9161_v4 = vor.u32 %v10156_v56, %v9158_v2  ;;  %v9169_v63 = vor.u32 %v10157_v37, %v9166_v60  ;;  %v10153_v18 = vld [vmem:[#allocation8 + $0xdb4] sm:$0xf0]  ;;  %v10128_v2 = vld [vmem:[#allocation8 + $0xcec] sm:$0xf0]  ;;  %v10125_v37 = vld [vmem:[#allocation8 + $0xcdc] sm:$0xf] }
 0x531   :  { %v5775_v0 = vpop.f32.mrf.mxu3  ;;  %v9038_v60 = vld [vmem:[#allocation8 + $0xcf8] sm:$0xf0] }
 0x532   :  { %v10148_v0 = vld [vmem:[#allocation8 + $0xd94] sm:$0xf] }
 0x533   :  { %5883 = vmatpush.bf16.xpose.msra.mxu0 %v9077_v22  ;;  %v8989_v22 = vor.u32 %v10119_v21, %v8988_v6 }
 0x534   :  { %5896 = vmatpush.bf16.xpose.msra.mxu1 %v9081_v15  ;;  %v8993_v15 = vor.u32 %v10115_v8, %v8990_v9  ;;  %v9133_v8 = vor.u32 %v10153_v18, %v9132_v1  ;;  %v9137_v9 = vor.u32 %v10149_v16, %v9134_v3  ;;  %v8998_v1 = vld [vmem:[#allocation8 + $0xcb0] sm:$0xf0]  ;;  %v9004_v18 = vld [vmem:[#allocation8 + $0xc98] sm:$0xf]  ;;  %v10117_v3 = vld [vmem:[#allocation8 + $0xc9c] sm:$0xf] }
 0x535   :  { %5909 = vmatpush.bf16.xpose.msra.mxu2 %v9085_v26  ;;  %5922 = vmatpush.bf16.xpose.msra.mxu3 %v9089_v23  ;;  %v8948_v26 = vld [vmem:[#allocation8 + $0xc40] sm:$0xf]  ;;  %v10106_v23 = vld [vmem:[#allocation8 + $0xc44] sm:$0xf]  ;;  %v10121_v16 = vld [vmem:[#allocation8 + $0xcb4] sm:$0xf0] }
 0x536   :  { %v10298_v5 = vpop.eup %10297  ;;  %v8949_v28 = vor.u32 %v10110_v20, %v8948_v26  ;;  %v8953_v33 = vor.u32 %v10106_v23, %v8950_v24  ;;  %v10141_v26 = vld [vmem:[#allocation8 + $0xd5c] sm:$0xf] }
 0x537   :  { %v6117_v12 = vadd.f32 1.0, %v10298_v5  ;;  %v9092_v5 = vld [vmem:[#allocation8 + $0xd50] sm:$0xf]  ;;  %v9102_v20 = vld [vmem:[#allocation8 + $0xd78] sm:$0xf0] }
 0x538   :  { %v9105_v25 = vor.u32 %v10141_v26, %v9102_v20  ;;  %v10113_v26 = vld [vmem:[#allocation8 + $0xc74] sm:$0xf0]  ;;  %v10109_v20 = vld [vmem:[#allocation8 + $0xc5c] sm:$0xf] }
 0x539   :  { %10299 = vrcp.f32 %v6117_v12  ;;  %v10140_v12 = vld [vmem:[#allocation8 + $0xd54] sm:$0xf] }
 0x53b   :  { %5884 = vmatpush.bf16.xpose.msra.mxu0 %v9045_v43  ;;  %v10098_v43 = vld [vmem:[#allocation8 + $0xc04] sm:$0xf] }
 0x53c   :  { %5897 = vmatpush.bf16.xpose.msra.mxu1 %v9049_v41  ;;  %v8924_v41 = vld [vmem:[#allocation8 + $0xc08] sm:$0xf]  ;;  %v8921_v13 = vor.u32 %v10098_v43, %v8918_v47  ;;  %v9070_v43 = vld [vmem:[#allocation8 + $0xd38] sm:$0xf0] }
 0x53d   :  { %5910 = vmatpush.bf16.xpose.msra.mxu2 %v9053_v51  ;;  %5923 = vmatpush.bf16.xpose.msra.mxu3 %v9057_v55  ;;  %v10103_v51 = vld [vmem:[#allocation8 + $0xc24] sm:$0xf0]  ;;  %v9156_v55 = vld [vmem:[#allocation8 + $0xdd0] sm:$0xf] }
 0x53e   :  { %v8925_v46 = vor.u32 %v10103_v51, %v8924_v41  ;;  %v9157_v17 = vor.u32 %v10160_v50, %v9156_v55  ;;  %v9073_v55 = vor.u32 %v10133_v36, %v9070_v43  ;;  %v10105_v36 = vld [vmem:[#allocation8 + $0xc34] sm:$0xf0]  ;;  %v10101_v43 = vld [vmem:[#allocation8 + $0xc1c] sm:$0xf] }
 0x53f   :  { %v10300_v32 = vpop.eup %10299 }
 0x540   :  { %6133 = vst [vmem:[#allocation15 + $0x20] sm:$0xff] %v10300_v32  ;;  %v10136_v32 = vld [vmem:[#allocation8 + $0xd2c] sm:$0xf0] }
 0x543   :  { %5885 = vmatpush.bf16.xpose.msra.mxu0 %v9013_v62  ;;  %v9165_v62 = vor.u32 %v10161_v58, %v9164_v44  ;;  %v10124_v44 = vld [vmem:[#allocation8 + $0xcd4] sm:$0xf] }
 0x544   :  { %5898 = vmatpush.bf16.xpose.msra.mxu1 %v9017_v29  ;;  %v9124_v29 = vld [vmem:[#allocation8 + $0xd90] sm:$0xf]  ;;  %v9030_v58 = vld [vmem:[#allocation8 + $0xcf0] sm:$0xf0] }
 0x545   :  { %5911 = vmatpush.bf16.xpose.msra.mxu2 %v9021_v19  ;;  %5924 = vmatpush.bf16.xpose.msra.mxu3 %v9025_v11  ;;  %v10152_v19 = vld [vmem:[#allocation8 + $0xdac] sm:$0xf0]  ;;  %v9126_v11 = vld [vmem:[#allocation8 + $0xdb0] sm:$0xf0] }
 0x546   :  { %v9125_v6 = vor.u32 %v10152_v19, %v9124_v29  ;;  %v9129_v21 = vor.u32 %v10148_v0, %v9126_v11  ;;  %v9041_v29 = vor.u32 %v10125_v37, %v9038_v60  ;;  %v8996_v19 = vld [vmem:[#allocation8 + $0xc90] sm:$0xf]  ;;  %v10116_v11 = vld [vmem:[#allocation8 + $0xc94] sm:$0xf] }
 0x547   :  { %v10120_v0 = vld [vmem:[#allocation8 + $0xcac] sm:$0xf0] }
 0x54b   :  { %5886 = vmatpush.bf16.xpose.msra.mxu0 %v8981_v10  ;;  %v10144_v10 = vld [vmem:[#allocation8 + $0xd6c] sm:$0xf0] }
 0x54c   :  { %5899 = vmatpush.bf16.xpose.msra.mxu1 %v8985_v14  ;;  %v9094_v14 = vld [vmem:[#allocation8 + $0xd70] sm:$0xf0]  ;;  %v9093_v23 = vor.u32 %v10144_v10, %v9092_v5  ;;  %v8964_v10 = vld [vmem:[#allocation8 + $0xc50] sm:$0xf] }
 0x54d   :  { %5912 = vmatpush.bf16.xpose.msra.mxu2 %v8989_v22  ;;  %5925 = vmatpush.bf16.xpose.msra.mxu3 %v8993_v15  ;;  %v9100_v22 = vld [vmem:[#allocation8 + $0xd58] sm:$0xf]  ;;  %v9097_v24 = vor.u32 %v10140_v12, %v9094_v14  ;;  %v10112_v12 = vld [vmem:[#allocation8 + $0xc6c] sm:$0xf0]  ;;  %v10108_v14 = vld [vmem:[#allocation8 + $0xc54] sm:$0xf] }
 0x54e   :  { %v10145_v15 = vld [vmem:[#allocation8 + $0xd74] sm:$0xf0] }
 0x54f   :  { %v9101_v31 = vor.u32 %v10145_v15, %v9100_v22  ;;  %v8966_v22 = vld [vmem:[#allocation8 + $0xc70] sm:$0xf0]  ;;  %v8972_v15 = vld [vmem:[#allocation8 + $0xc58] sm:$0xf] }
 0x553   :  { %5887 = vmatpush.bf16.xpose.msra.mxu0 %v8949_v28  ;;  %v9060_v28 = vld [vmem:[#allocation8 + $0xd10] sm:$0xf] }
 0x554   :  { %5900 = vmatpush.bf16.xpose.msra.mxu1 %v8953_v33  ;;  %v10132_v33 = vld [vmem:[#allocation8 + $0xd14] sm:$0xf]  ;;  %v9061_v47 = vor.u32 %v10136_v32, %v9060_v28  ;;  %v8932_v32 = vld [vmem:[#allocation8 + $0xc10] sm:$0xf] }
 0x555   :  { %5913 = vmatpush.bf16.xpose.msra.mxu2 %v8957_v34  ;;  %5926 = vmatpush.bf16.xpose.msra.mxu3 %v8961_v35  ;;  %v9062_v34 = vld [vmem:[#allocation8 + $0xd30] sm:$0xf0]  ;;  %v9068_v35 = vld [vmem:[#allocation8 + $0xd18] sm:$0xf] }
 0x556   :  { %v9065_v51 = vor.u32 %v10132_v33, %v9062_v34  ;;  %v9069_v53 = vor.u32 %v10137_v39, %v9068_v35  ;;  %v10104_v33 = vld [vmem:[#allocation8 + $0xc2c] sm:$0xf0]  ;;  %v10100_v34 = vld [vmem:[#allocation8 + $0xc14] sm:$0xf]  ;;  %v8940_v39 = vld [vmem:[#allocation8 + $0xc18] sm:$0xf] }
 0x557   :  { %v8934_v35 = vld [vmem:[#allocation8 + $0xc30] sm:$0xf0] }
 0x55b   :  { %5888 = vmatpush.bf16.xpose.msra.mxu0 %v8917_v57  ;;  %v9028_v57 = vld [vmem:[#allocation8 + $0xcd0] sm:$0xf] }
 0x55c   :  { %5901 = vmatpush.bf16.xpose.msra.mxu1 %v8921_v13  ;;  %v9036_v13 = vld [vmem:[#allocation8 + $0xcd8] sm:$0xf] }
 0x55d   :  { %5914 = vmatpush.bf16.xpose.msra.mxu2 %v8925_v46  ;;  %5927 = vmatpush.bf16.xpose.msra.mxu3 %v8929_v61  ;;  %v10129_v46 = vld [vmem:[#allocation8 + $0xcf4] sm:$0xf0]  ;;  %v9029_v61 = vor.u32 %v10128_v2, %v9028_v57  ;;  %v9404_v57 = vld [vmem:[#allocation8 + $0xfc8] sm:$0xf] }
 0x55e   :  { %v10223_v2 = vld [vmem:[#allocation8 + $0xfe4] sm:$0xf0] }
 0x55f   :  { %v10872_v30 = vpop.f32.mrf.mxu0 }
 0x560   :  { %v10874_v38 = vpop.f32.mrf.mxu1 }
 0x562   :  { %5889 = vmatmul.bf16.vlgmr.msra.gmra.mxu0 %v10722_v42 }
 0x563   :  { %5933 = vmatpush.bf16.xpose.msrb.mxu0 %v9157_v17  ;;  %5902 = vmatmul.bf16.vlgmr.msra.gmra.mxu1 %v10725_v49 }
 0x564   :  { %5946 = vmatpush.bf16.xpose.msrb.mxu1 %v9161_v4  ;;  %5915 = vmatmul.bf16.vlgmr.msra.gmra.mxu2 %v10729_v45  ;;  %v9033_v4 = vor.u32 %v10124_v44, %v9030_v58  ;;  %v8937_v44 = vor.u32 %v10100_v34, %v8934_v35  ;;  %v8941_v58 = vor.u32 %v10105_v36, %v8940_v39  ;;  %v9300_v34 = vld [vmem:[#allocation8 + $0xf00] sm:$0xf]  ;;  %v10194_v35 = vld [vmem:[#allocation8 + $0xf04] sm:$0xf]  ;;  %v9308_v36 = vld [vmem:[#allocation8 + $0xf08] sm:$0xf] }
 0x565   :  { %5959 = vmatpush.bf16.xpose.msrb.mxu2 %v9165_v62  ;;  %5972 = vmatpush.bf16.xpose.msrb.mxu3 %v9169_v63  ;;  %v9037_v62 = vor.u32 %v10129_v46, %v9036_v13  ;;  %v10219_v13 = vld [vmem:[#allocation8 + $0xfcc] sm:$0xf]  ;;  %v9302_v39 = vld [vmem:[#allocation8 + $0xf20] sm:$0xf0] }
 0x566   :  { %5928 = vmatmul.bf16.vlgmr.msra.gmra.mxu3 %v10733_v52  ;;  %v9406_v46 = vld [vmem:[#allocation8 + $0xfe8] sm:$0xf0] }
 0x567   :  { %v10876_v41 = vpop.f32.mrf.mxu2  ;;  %v5788_v50 = vpop.f32.mrf.mxu0 }
 0x568   :  { %v5801_v56 = vpop.f32.mrf.mxu1  ;;  %v8933_v50 = vor.u32 %v10104_v33, %v8932_v32 }
 0x569   :  { %v10878_v27 = vpop.f32.mrf.mxu3  ;;  %v9398_v56 = vld [vmem:[#allocation8 + $0xfe0] sm:$0xf0] }
 0x56b   :  { %5934 = vmatpush.bf16.xpose.msrb.mxu0 %v9125_v6  ;;  %v9006_v6 = vld [vmem:[#allocation8 + $0xcb8] sm:$0xf0] }
 0x56c   :  { %5947 = vmatpush.bf16.xpose.msrb.mxu1 %v9129_v21  ;;  %v8997_v21 = vor.u32 %v10120_v0, %v8996_v19  ;;  %v9009_v5 = vor.u32 %v10117_v3, %v9006_v6  ;;  %v10210_v19 = vld [vmem:[#allocation8 + $0xf84] sm:$0xf] }
 0x56d   :  { %5960 = vmatpush.bf16.xpose.msrb.mxu2 %v9133_v8  ;;  %5973 = vmatpush.bf16.xpose.msrb.mxu3 %v9137_v9  ;;  %v9001_v8 = vor.u32 %v10116_v11, %v8998_v1  ;;  %v9005_v9 = vor.u32 %v10121_v16, %v9004_v18  ;;  %v9366_v0 = vld [vmem:[#allocation8 + $0xfa0] sm:$0xf0]  ;;  %v9372_v11 = vld [vmem:[#allocation8 + $0xf88] sm:$0xf]  ;;  %v10211_v18 = vld [vmem:[#allocation8 + $0xf8c] sm:$0xf] }
 0x56e   :  { %v10215_v1 = vld [vmem:[#allocation8 + $0xfa4] sm:$0xf0]  ;;  %v9374_v16 = vld [vmem:[#allocation8 + $0xfa8] sm:$0xf0] }
 0x56f   :  { %v5814_v17 = vpop.f32.mrf.mxu2 }
 0x570   :  { %v9405_v17 = vor.u32 %v10223_v2, %v9404_v57 }
 0x571   :  { %v5827_v63 = vpop.f32.mrf.mxu3 }
 0x572   :  { %v9364_v63 = vld [vmem:[#allocation8 + $0xf80] sm:$0xf] }
 0x573   :  { %5935 = vmatpush.bf16.xpose.msrb.mxu0 %v9093_v23  ;;  %v8974_v23 = vld [vmem:[#allocation8 + $0xc78] sm:$0xf0] }
 0x574   :  { %5948 = vmatpush.bf16.xpose.msrb.mxu1 %v9097_v24  ;;  %v8965_v24 = vor.u32 %v10112_v12, %v8964_v10  ;;  %v8977_v28 = vor.u32 %v10109_v20, %v8974_v23  ;;  %v10206_v10 = vld [vmem:[#allocation8 + $0xf5c] sm:$0xf0]  ;;  %v9342_v20 = vld [vmem:[#allocation8 + $0xf68] sm:$0xf0] }
 0x575   :  { %5961 = vmatpush.bf16.xpose.msrb.mxu2 %v9101_v31  ;;  %5974 = vmatpush.bf16.xpose.msrb.mxu3 %v9105_v25  ;;  %v8969_v31 = vor.u32 %v10108_v14, %v8966_v22  ;;  %v8973_v25 = vor.u32 %v10113_v26, %v8972_v15  ;;  %v9334_v14 = vld [vmem:[#allocation8 + $0xf60] sm:$0xf0]  ;;  %v9340_v22 = vld [vmem:[#allocation8 + $0xf48] sm:$0xf]  ;;  %v10203_v26 = vld [vmem:[#allocation8 + $0xf4c] sm:$0xf] }
 0x576   :  { %v10207_v15 = vld [vmem:[#allocation8 + $0xf64] sm:$0xf0] }
 0x57b   :  { %5936 = vmatpush.bf16.xpose.msrb.mxu0 %v9061_v47  ;;  %v8942_v47 = vld [vmem:[#allocation8 + $0xc38] sm:$0xf0] }
 0x57c   :  { %5949 = vmatpush.bf16.xpose.msrb.mxu1 %v9065_v51  ;;  %v9396_v51 = vld [vmem:[#allocation8 + $0xfc0] sm:$0xf]  ;;  %v8945_v37 = vor.u32 %v10101_v43, %v8942_v47  ;;  %v10199_v43 = vld [vmem:[#allocation8 + $0xf24] sm:$0xf0]  ;;  %v10195_v47 = vld [vmem:[#allocation8 + $0xf0c] sm:$0xf] }
 0x57d   :  { %5962 = vmatpush.bf16.xpose.msrb.mxu2 %v9069_v53  ;;  %5975 = vmatpush.bf16.xpose.msrb.mxu3 %v9073_v55  ;;  %v10222_v53 = vld [vmem:[#allocation8 + $0xfdc] sm:$0xf0]  ;;  %v10218_v55 = vld [vmem:[#allocation8 + $0xfc4] sm:$0xf] }
 0x57e   :  { %v9397_v60 = vor.u32 %v10222_v53, %v9396_v51  ;;  %v9310_v51 = vld [vmem:[#allocation8 + $0xf28] sm:$0xf0] }
 0x583   :  { %5937 = vmatpush.bf16.xpose.msrb.mxu0 %v9029_v61  ;;  %v9401_v61 = vor.u32 %v10218_v55, %v9398_v56  ;;  %v9309_v56 = vor.u32 %v10199_v43, %v9308_v36 }
 0x584   :  { %5950 = vmatpush.bf16.xpose.msrb.mxu1 %v9033_v4  ;;  %v9409_v4 = vor.u32 %v10219_v13, %v9406_v46 }
 0x585   :  { %5963 = vmatpush.bf16.xpose.msrb.mxu2 %v9037_v62  ;;  %5976 = vmatpush.bf16.xpose.msrb.mxu3 %v9041_v29  ;;  %v2686_v62 = vperm.slane %v10857_v59, 5  ;;  %v10214_v29 = vld [vmem:[#allocation8 + $0xf9c] sm:$0xf0]  ;;  %v9373_v59 = vor.u32 %v10215_v1, %v9372_v11 }
 0x586   :  { %v9365_v6 = vor.u32 %v10214_v29, %v9364_v63  ;;  %v10191_v63 = vld [vmem:[#allocation8 + $0xee4] sm:$0xf0]  ;;  %v10187_v29 = vld [vmem:[#allocation8 + $0xecc] sm:$0xf] }
 0x587   :  { %v5787_v3 = vadd.f32 %v10872_v30, %v2686_v62  ;;  %v10202_v30 = vld [vmem:[#allocation8 + $0xf44] sm:$0xf]  ;;  %v9276_v62 = vld [vmem:[#allocation8 + $0xec8] sm:$0xf] }
 0x58b   :  { %5938 = vmatpush.bf16.xpose.msrb.mxu0 %v8997_v21  ;;  %v9369_v21 = vor.u32 %v10210_v19, %v9366_v0  ;;  %v9278_v19 = vld [vmem:[#allocation8 + $0xee8] sm:$0xf0] }
 0x58c   :  { %5951 = vmatpush.bf16.xpose.msrb.mxu1 %v9001_v8  ;;  %v9377_v8 = vor.u32 %v10211_v18, %v9374_v16  ;;  %v9277_v16 = vor.u32 %v10191_v63, %v9276_v62  ;;  %v9422_v62 = vld [vmem:[#allocation8 + $0xff8] sm:$0xf0] }
 0x58d   :  { %5964 = vmatpush.bf16.xpose.msrb.mxu2 %v9005_v9  ;;  %5977 = vmatpush.bf16.xpose.msrb.mxu3 %v9009_v5  ;;  %v5800_v9 = vadd.f32 %v10874_v38, %v5787_v3  ;;  %v9332_v5 = vld [vmem:[#allocation8 + $0xf40] sm:$0xf]  ;;  %v9345_v38 = vor.u32 %v10203_v26, %v9342_v20 }
 0x58e   :  { %v9333_v23 = vor.u32 %v10206_v10, %v9332_v5  ;;  %v9244_v5 = vld [vmem:[#allocation8 + $0xe88] sm:$0xf] }
 0x58f   :  { %v5813_v12 = vadd.f32 %v10876_v41, %v5800_v9  ;;  %v10198_v41 = vld [vmem:[#allocation8 + $0xf1c] sm:$0xf0]  ;;  %v9238_v9 = vld [vmem:[#allocation8 + $0xea0] sm:$0xf0]  ;;  %v10183_v10 = vld [vmem:[#allocation8 + $0xea4] sm:$0xf0] }
 0x590   :  { %v9301_v55 = vor.u32 %v10198_v41, %v9300_v34  ;;  %v9245_v20 = vor.u32 %v10183_v10, %v9244_v5  ;;  %v9214_v34 = vld [vmem:[#allocation8 + $0xe68] sm:$0xf0] }
 0x593   :  { %5939 = vmatpush.bf16.xpose.msrb.mxu0 %v8965_v24  ;;  %v9337_v24 = vor.u32 %v10202_v30, %v9334_v14  ;;  %v10179_v30 = vld [vmem:[#allocation8 + $0xe8c] sm:$0xf] }
 0x594   :  { %5952 = vmatpush.bf16.xpose.msrb.mxu1 %v8969_v31  ;;  %v9341_v31 = vor.u32 %v10207_v15, %v9340_v22 }
 0x595   :  { %5965 = vmatpush.bf16.xpose.msrb.mxu2 %v8973_v25  ;;  %5978 = vmatpush.bf16.xpose.msrb.mxu3 %v8977_v28  ;;  %v5826_v25 = vadd.f32 %v10878_v27, %v5813_v12  ;;  %v9305_v27 = vor.u32 %v10194_v35, %v9302_v39  ;;  %v9246_v12 = vld [vmem:[#allocation8 + $0xea8] sm:$0xf0] }
 0x59b   :  { %5940 = vmatpush.bf16.xpose.msrb.mxu0 %v8933_v50 }
 0x59c   :  { %5953 = vmatpush.bf16.xpose.msrb.mxu1 %v8937_v44  ;;  %v9313_v44 = vor.u32 %v10195_v47, %v9310_v51  ;;  %v9172_v47 = vld [vmem:[#allocation8 + $0xe00] sm:$0xf] }
 0x59d   :  { %5966 = vmatpush.bf16.xpose.msrb.mxu2 %v8941_v58  ;;  %5979 = vmatpush.bf16.xpose.msrb.mxu3 %v8945_v37  ;;  %v9268_v37 = vld [vmem:[#allocation8 + $0xec0] sm:$0xf] }
 0x59e   :  { %v10166_v51 = vld [vmem:[#allocation8 + $0xe1c] sm:$0xf0] }
 0x59f   :  { %v5838_v28 = vpop.f32.mrf.mxu0 }
 0x5a0   :  { %v5851_v32 = vpop.f32.mrf.mxu1  ;;  %v5839_v33 = vadd.f32 %v5838_v28, %v5826_v25  ;;  %v10170_v25 = vld [vmem:[#allocation8 + $0xe44] sm:$0xf]  ;;  %v9212_v28 = vld [vmem:[#allocation8 + $0xe48] sm:$0xf] }
 0x5a2   :  { %5941 = vmatmul.bf16.vlgmr.msrb.gmra.mxu0 %v10744_v48  ;;  %v5852_v53 = vadd.f32 %v5851_v32, %v5839_v33  ;;  %v10175_v32 = vld [vmem:[#allocation8 + $0xe64] sm:$0xf0]  ;;  %v10171_v33 = vld [vmem:[#allocation8 + $0xe4c] sm:$0xf] }
 0x5a3   :  { %5985 = vmatpush.bf16.xpose.msra.mxu0 %v9397_v60  ;;  %5954 = vmatmul.bf16.vlgmr.msrb.gmra.mxu1 %v10748_v54  ;;  %v10190_v60 = vld [vmem:[#allocation8 + $0xedc] sm:$0xf0]  ;;  %v9213_v36 = vor.u32 %v10175_v32, %v9212_v28  ;;  %v9217_v43 = vor.u32 %v10171_v33, %v9214_v34  ;;  %v10200_v28 = vld [vmem:[#allocation8 + $0xf2c] sm:$0xf0]  ;;  %v10196_v32 = vld [vmem:[#allocation8 + $0xf14] sm:$0xf] }
 0x5a4   :  { %5998 = vmatpush.bf16.xpose.msra.mxu1 %v9401_v61  ;;  %5967 = vmatmul.bf16.vlgmr.msrb.gmra.mxu2 %v10740_v40  ;;  %v10186_v61 = vld [vmem:[#allocation8 + $0xec4] sm:$0xf]  ;;  %v9269_v11 = vor.u32 %v10190_v60, %v9268_v37  ;;  %v9420_v37 = vld [vmem:[#allocation8 + $0xfd8] sm:$0xf]  ;;  %v9318_v33 = vld [vmem:[#allocation8 + $0xf30] sm:$0xf0] }
 0x5a5   :  { %6011 = vmatpush.bf16.xpose.msra.mxu2 %v9405_v17  ;;  %6024 = vmatpush.bf16.xpose.msra.mxu3 %v9409_v4  ;;  %v9270_v17 = vld [vmem:[#allocation8 + $0xee0] sm:$0xf0]  ;;  %v10225_v60 = vld [vmem:[#allocation8 + $0xff4] sm:$0xf0] }
 0x5a6   :  { %5980 = vmatmul.bf16.vlgmr.msrb.gmra.mxu3 %v10754_v7  ;;  %v9273_v18 = vor.u32 %v10186_v61, %v9270_v17  ;;  %v9324_v34 = vld [vmem:[#allocation8 + $0xf18] sm:$0xf] }
 0x5a7   :  { %v5864_v50 = vpop.f32.mrf.mxu2  ;;  %v5840_v58 = vpop.f32.mrf.mxu0 }
 0x5a8   :  { %v5865_v57 = vadd.f32 %v5864_v50, %v5852_v53  ;;  %v5853_v13 = vpop.f32.mrf.mxu1  ;;  %v10162_v53 = vld [vmem:[#allocation8 + $0xe04] sm:$0xf]  ;;  %v9180_v50 = vld [vmem:[#allocation8 + $0xe08] sm:$0xf]  ;;  %v10220_v58 = vld [vmem:[#allocation8 + $0xfd4] sm:$0xf] }
 0x5a9   :  { %v5877_v2 = vpop.f32.mrf.mxu3  ;;  %v9173_v13 = vor.u32 %v10166_v51, %v9172_v47  ;;  %v9321_v51 = vor.u32 %v10196_v32, %v9318_v33  ;;  %v10169_v32 = vld [vmem:[#allocation8 + $0xe34] sm:$0xf0]  ;;  %v10165_v33 = vld [vmem:[#allocation8 + $0xe1c] sm:$0xf] }
 0x5aa   :  { %v5878_v46 = vadd.f32 %v5877_v2, %v5865_v57  ;;  %v9182_v57 = vld [vmem:[#allocation8 + $0xe28] sm:$0xf0]  ;;  %v9412_v2 = vld [vmem:[#allocation8 + $0xfd0] sm:$0xf] }
 0x5ab   :  { %5986 = vmatpush.bf16.xpose.msra.mxu0 %v9365_v6  ;;  %v9281_v6 = vor.u32 %v10187_v29, %v9278_v19 }
 0x5ac   :  { %5999 = vmatpush.bf16.xpose.msra.mxu1 %v9369_v21  ;;  %v6094_v4 = vsub.f32 0.0, %v5878_v46  ;;  %v9236_v21 = vld [vmem:[#allocation8 + $0xe80] sm:$0xf]  ;;  %v9414_v46 = vld [vmem:[#allocation8 + $0xff0] sm:$0xf0] }
 0x5ad   :  { %6012 = vmatpush.bf16.xpose.msra.mxu2 %v9373_v59  ;;  %6025 = vmatpush.bf16.xpose.msra.mxu3 %v9377_v8  ;;  %v10182_v59 = vld [vmem:[#allocation8 + $0xe9c] sm:$0xf0]  ;;  %v10178_v8 = vld [vmem:[#allocation8 + $0xe84] sm:$0xf]  ;;  %v9417_v19 = vor.u32 %v10220_v58, %v9414_v46  ;;  %v9286_v58 = vld [vmem:[#allocation8 + $0xef0] sm:$0xf0] }
 0x5ae   :  { %v6107_v0 = vmul.f32 1.442695, %v6094_v4  ;;  %v9237_v22 = vor.u32 %v10182_v59, %v9236_v21  ;;  %v9241_v26 = vor.u32 %v10178_v8, %v9238_v9  ;;  %v10221_v4 = vld [vmem:[#allocation8 + $0xfdc] sm:$0xf]  ;;  %v10217_v21 = vld [vmem:[#allocation8 + $0xfb4] sm:$0xf0] }
 0x5af   :  { %v5866_v1 = vpop.f32.mrf.mxu2  ;;  %v10213_v59 = vld [vmem:[#allocation8 + $0xf9c] sm:$0xf]  ;;  %v10193_v46 = vld [vmem:[#allocation8 + $0xef4] sm:$0xf0] }
 0x5b0   :  { %10301 = vpow2.f32 %v6107_v0  ;;  %v9421_v0 = vor.u32 %v10225_v60, %v9420_v37  ;;  %v9380_v1 = vld [vmem:[#allocation8 + $0xf90] sm:$0xf]  ;;  %v9390_v8 = vld [vmem:[#allocation8 + $0xfb8] sm:$0xf0] }
 0x5b1   :  { %v5879_v3 = vpop.f32.mrf.mxu3  ;;  %v10189_v37 = vld [vmem:[#allocation8 + $0xedc] sm:$0xf] }
 0x5b2   :  { %v9382_v3 = vld [vmem:[#allocation8 + $0xfb0] sm:$0xf0]  ;;  %v9294_v60 = vld [vmem:[#allocation8 + $0xef8] sm:$0xf0] }
 0x5b3   :  { %5987 = vmatpush.bf16.xpose.msra.mxu0 %v9333_v23  ;;  %v9249_v23 = vor.u32 %v10179_v30, %v9246_v12  ;;  %v9393_v30 = vor.u32 %v10213_v59, %v9390_v8  ;;  %v9348_v12 = vld [vmem:[#allocation8 + $0xf50] sm:$0xf] }
 0x5b4   :  { %6000 = vmatpush.bf16.xpose.msra.mxu1 %v9337_v24  ;;  %v9204_v24 = vld [vmem:[#allocation8 + $0xe40] sm:$0xf] }
 0x5b5   :  { %6013 = vmatpush.bf16.xpose.msra.mxu2 %v9341_v31  ;;  %6026 = vmatpush.bf16.xpose.msra.mxu3 %v9345_v38  ;;  %v10174_v31 = vld [vmem:[#allocation8 + $0xe5c] sm:$0xf0]  ;;  %v9206_v38 = vld [vmem:[#allocation8 + $0xe60] sm:$0xf0] }
 0x5b6   :  { %v10302_v14 = vpop.eup %10301  ;;  %v9205_v41 = vor.u32 %v10174_v31, %v9204_v24  ;;  %v9209_v39 = vor.u32 %v10170_v25, %v9206_v38 }
 0x5b7   :  { %v6118_v15 = vadd.f32 1.0, %v10302_v14  ;;  %v10208_v14 = vld [vmem:[#allocation8 + $0xf6c] sm:$0xf0] }
 0x5b8   :  { %v9349_v24 = vor.u32 %v10208_v14, %v9348_v12  ;;  %v9222_v12 = vld [vmem:[#allocation8 + $0xe70] sm:$0xf0]  ;;  %v9228_v14 = vld [vmem:[#allocation8 + $0xe58] sm:$0xf] }
 0x5b9   :  { %10303 = vrcp.f32 %v6118_v15  ;;  %v9350_v15 = vld [vmem:[#allocation8 + $0xf70] sm:$0xf0] }
 0x5bb   :  { %5988 = vmatpush.bf16.xpose.msra.mxu0 %v9301_v55  ;;  %v9174_v55 = vld [vmem:[#allocation8 + $0xe20] sm:$0xf0] }
 0x5bc   :  { %6001 = vmatpush.bf16.xpose.msra.mxu1 %v9305_v27  ;;  %v10167_v27 = vld [vmem:[#allocation8 + $0xe24] sm:$0xf0]  ;;  %v9177_v61 = vor.u32 %v10162_v53, %v9174_v55 }
 0x5bd   :  { %6014 = vmatpush.bf16.xpose.msra.mxu2 %v9309_v56  ;;  %6027 = vmatpush.bf16.xpose.msra.mxu3 %v9313_v44  ;;  %v10163_v56 = vld [vmem:[#allocation8 + $0xe0c] sm:$0xf]  ;;  %v10224_v44 = vld [vmem:[#allocation8 + $0xfec] sm:$0xf0]  ;;  %v9181_v17 = vor.u32 %v10167_v27, %v9180_v50 }
 0x5be   :  { %v9185_v63 = vor.u32 %v10163_v56, %v9182_v57  ;;  %v9413_v29 = vor.u32 %v10224_v44, %v9412_v2  ;;  %v9284_v57 = vld [vmem:[#allocation8 + $0xed0] sm:$0xf]  ;;  %v10188_v44 = vld [vmem:[#allocation8 + $0xed4] sm:$0xf] }
 0x5bf   :  { %v10889_v35 = vpop.eup %10303  ;;  %v10192_v2 = vld [vmem:[#allocation8 + $0xeec] sm:$0xf0] }
 0x5c0   :  { %6134 = vst [vmem:[#allocation15 + $0x28] sm:$0xff] %v10889_v35 }
 0x5c3   :  { %5989 = vmatpush.bf16.xpose.msra.mxu0 %v9269_v11  ;;  %v9425_v11 = vor.u32 %v10221_v4, %v9422_v62  ;;  %v9289_v4 = vor.u32 %v10188_v44, %v9286_v58 }
 0x5c4   :  { %6002 = vmatpush.bf16.xpose.msra.mxu1 %v9273_v18  ;;  %v10216_v18 = vld [vmem:[#allocation8 + $0xfac] sm:$0xf0] }
 0x5c5   :  { %6015 = vmatpush.bf16.xpose.msra.mxu2 %v9277_v16  ;;  %6028 = vmatpush.bf16.xpose.msra.mxu3 %v9281_v6  ;;  %v10212_v16 = vld [vmem:[#allocation8 + $0xf94] sm:$0xf]  ;;  %v9388_v6 = vld [vmem:[#allocation8 + $0xf98] sm:$0xf]  ;;  %v9381_v9 = vor.u32 %v10216_v18, %v9380_v1 }
 0x5c6   :  { %v9385_v5 = vor.u32 %v10212_v16, %v9382_v3  ;;  %v9389_v10 = vor.u32 %v10217_v21, %v9388_v6  ;;  %v9254_v1 = vld [vmem:[#allocation8 + $0xeb0] sm:$0xf0]  ;;  %v9260_v18 = vld [vmem:[#allocation8 + $0xe98] sm:$0xf]  ;;  %v10181_v3 = vld [vmem:[#allocation8 + $0xe9c] sm:$0xf] }
 0x5c7   :  { %v10185_v16 = vld [vmem:[#allocation8 + $0xeb4] sm:$0xf0]  ;;  %v9262_v6 = vld [vmem:[#allocation8 + $0xeb8] sm:$0xf0] }
 0x5c8   :  { %v9261_v8 = vor.u32 %v10185_v16, %v9260_v18  ;;  %v10233_v18 = vld [vmem:[#allocation11 + $0x34] sm:$0x10] }
 0x5cb   :  { %5990 = vmatpush.bf16.xpose.msra.mxu0 %v9237_v22  ;;  %v10204_v22 = vld [vmem:[#allocation8 + $0xf54] sm:$0xf] }
 0x5cc   :  { %6003 = vmatpush.bf16.xpose.msra.mxu1 %v9241_v26  ;;  %v9356_v26 = vld [vmem:[#allocation8 + $0xf58] sm:$0xf]  ;;  %v9353_v31 = vor.u32 %v10204_v22, %v9350_v15  ;;  %v10173_v15 = vld [vmem:[#allocation8 + $0xe5c] sm:$0xf] }
 0x5cd   :  { %6016 = vmatpush.bf16.xpose.msra.mxu2 %v9245_v20  ;;  %6029 = vmatpush.bf16.xpose.msra.mxu3 %v9249_v23  ;;  %v10209_v20 = vld [vmem:[#allocation8 + $0xf74] sm:$0xf0]  ;;  %v9358_v23 = vld [vmem:[#allocation8 + $0xf78] sm:$0xf0] }
 0x5ce   :  { %v10177_v22 = vld [vmem:[#allocation8 + $0xe74] sm:$0xf0] }
 0x5d3   :  { %5991 = vmatpush.bf16.xpose.msra.mxu0 %v9205_v41  ;;  %v10201_v41 = vld [vmem:[#allocation8 + $0xf34] sm:$0xf0] }
 0x5d4   :  { %6004 = vmatpush.bf16.xpose.msra.mxu1 %v9209_v39  ;;  %v10197_v39 = vld [vmem:[#allocation8 + $0xf1c] sm:$0xf]  ;;  %v9325_v53 = vor.u32 %v10201_v41, %v9324_v34  ;;  %v9428_v41 = vld [vmem:[#allocation11] sm:$0xf] }
 0x5d5   :  { %6017 = vmatpush.bf16.xpose.msra.mxu2 %v9213_v36  ;;  %6030 = vmatpush.bf16.xpose.msra.mxu3 %v9217_v43  ;;  %v9326_v36 = vld [vmem:[#allocation8 + $0xf38] sm:$0xf0] }
 0x5d6   :  { %v9329_v50 = vor.u32 %v10197_v39, %v9326_v36  ;;  %v9198_v34 = vld [vmem:[#allocation8 + $0xe38] sm:$0xf0]  ;;  %v10230_v39 = vld [vmem:[#allocation11 + $0x1c] sm:$0x10]  ;;  %v10226_v36 = vld [vmem:[#allocation11 + $0x4] sm:$0xf] }
 0x5d7   :  { %v9201_v44 = vor.u32 %v10165_v33, %v9198_v34  ;;  %v9429_v58 = vor.u32 %v10230_v39, %v9428_v41 }
 0x5db   :  { %5992 = vmatpush.bf16.xpose.msra.mxu0 %v9173_v13  ;;  %v9292_v13 = vld [vmem:[#allocation8 + $0xed8] sm:$0xf] }
 0x5dc   :  { %6005 = vmatpush.bf16.xpose.msra.mxu1 %v9177_v61  ;;  %v9285_v61 = vor.u32 %v10192_v2, %v9284_v57  ;;  %v9293_v62 = vor.u32 %v10193_v46, %v9292_v13  ;;  %v10227_v57 = vld [vmem:[#allocation11 + $0xc] sm:$0xf] }
 0x5dd   :  { %6018 = vmatpush.bf16.xpose.msra.mxu2 %v9181_v17  ;;  %6031 = vmatpush.bf16.xpose.msra.mxu3 %v9185_v63  ;;  %v9438_v2 = vld [vmem:[#allocation11 + $0x28] sm:$0x10] }
 0x5e0   :  { %v10898_v38 = vpop.f32.mrf.mxu1 }
 0x5e2   :  { %5993 = vmatmul.bf16.vlgmr.msra.gmra.mxu0 %v10722_v42  ;;  %v10205_v42 = vld [vmem:[#allocation8 + $0xf5c] sm:$0xf] }
 0x5e3   :  { %6037 = vmatpush.bf16.xpose.msrb.mxu0 %v9413_v29  ;;  %6006 = vmatmul.bf16.vlgmr.msra.gmra.mxu1 %v10725_v49  ;;  %v9357_v49 = vor.u32 %v10209_v20, %v9356_v26  ;;  %v9361_v25 = vor.u32 %v10205_v42, %v9358_v23  ;;  %v9297_v29 = vor.u32 %v10189_v37, %v9294_v60  ;;  %v9230_v26 = vld [vmem:[#allocation8 + $0xe78] sm:$0xf0]  ;;  %v10904_v60 = vld [vmem:[#allocation10] sm:$0xff] }
 0x5e4   :  { %6050 = vmatpush.bf16.xpose.msrb.mxu1 %v9417_v19  ;;  %6019 = vmatmul.bf16.vlgmr.msra.gmra.mxu2 %v10729_v45  ;;  %v10896_v45 = vpop.f32.mrf.mxu0  ;;  %v9252_v19 = vld [vmem:[#allocation8 + $0xe90] sm:$0xf]  ;;  %v9229_v23 = vor.u32 %v10177_v22, %v9228_v14  ;;  %v9441_v37 = vor.u32 %v10227_v57, %v9438_v2 }
 0x5e5   :  { %6063 = vmatpush.bf16.xpose.msrb.mxu2 %v9421_v0  ;;  %6076 = vmatpush.bf16.xpose.msrb.mxu3 %v9425_v11  ;;  %v10184_v0 = vld [vmem:[#allocation8 + $0xeac] sm:$0xf0]  ;;  %v10180_v11 = vld [vmem:[#allocation8 + $0xe94] sm:$0xf] }
 0x5e6   :  { %6032 = vmatmul.bf16.vlgmr.msra.gmra.mxu3 %v10733_v52  ;;  %v9316_v52 = vld [vmem:[#allocation8 + $0xf10] sm:$0xf]  ;;  %v9253_v21 = vor.u32 %v10184_v0, %v9252_v19  ;;  %v9257_v59 = vor.u32 %v10180_v11, %v9254_v1  ;;  %v9452_v1 = vld [vmem:[#allocation11 + $0x18] sm:$0xf] }
 0x5e7   :  { %v9317_v43 = vor.u32 %v10200_v28, %v9316_v52  ;;  %v10900_v47 = vpop.f32.mrf.mxu2  ;;  %v9190_v52 = vld [vmem:[#allocation8 + $0xe30] sm:$0xf0]  ;;  %v9196_v28 = vld [vmem:[#allocation8 + $0xe18] sm:$0xf] }
 0x5e8   :  { %v5905_v56 = vpop.f32.mrf.mxu1 }
 0x5e9   :  { %v10902_v55 = vpop.f32.mrf.mxu3  ;;  %v9197_v56 = vor.u32 %v10169_v32, %v9196_v28 }
 0x5eb   :  { %6038 = vmatpush.bf16.xpose.msrb.mxu0 %v9381_v9  ;;  %v9265_v9 = vor.u32 %v10181_v3, %v9262_v6  ;;  %v9453_v3 = vor.u32 %v10233_v18, %v9452_v1 }
 0x5ec   :  { %6051 = vmatpush.bf16.xpose.msrb.mxu1 %v9385_v5  ;;  %v5892_v27 = vpop.f32.mrf.mxu0  ;;  %v9220_v5 = vld [vmem:[#allocation8 + $0xe50] sm:$0xf] }
 0x5ed   :  { %6064 = vmatpush.bf16.xpose.msrb.mxu2 %v9389_v10  ;;  %6077 = vmatpush.bf16.xpose.msrb.mxu3 %v9393_v30  ;;  %v10176_v10 = vld [vmem:[#allocation8 + $0xe6c] sm:$0xf0]  ;;  %v10172_v30 = vld [vmem:[#allocation8 + $0xe54] sm:$0xf] }
 0x5ee   :  { %v9221_v20 = vor.u32 %v10176_v10, %v9220_v5  ;;  %v9225_v42 = vor.u32 %v10172_v30, %v9222_v12 }
 0x5ef   :  { %v5918_v17 = vpop.f32.mrf.mxu2 }
 0x5f0   :  { %v9444_v17 = vld [vmem:[#allocation11 + $0x10] sm:$0xf] }
 0x5f1   :  { %v5931_v63 = vpop.f32.mrf.mxu3 }
 0x5f2   :  { %v9446_v63 = vld [vmem:[#allocation11 + $0x30] sm:$0x10] }
 0x5f3   :  { %6039 = vmatpush.bf16.xpose.msrb.mxu0 %v9349_v24  ;;  %v9233_v24 = vor.u32 %v10173_v15, %v9230_v26 }
 0x5f4   :  { %6052 = vmatpush.bf16.xpose.msrb.mxu1 %v9353_v31  ;;  %v9188_v31 = vld [vmem:[#allocation8 + $0xe10] sm:$0xf] }
 0x5f5   :  { %6065 = vmatpush.bf16.xpose.msrb.mxu2 %v9357_v49  ;;  %6078 = vmatpush.bf16.xpose.msrb.mxu3 %v9361_v25  ;;  %v10168_v49 = vld [vmem:[#allocation8 + $0xe2c] sm:$0xf0]  ;;  %v10164_v25 = vld [vmem:[#allocation8 + $0xe14] sm:$0xf] }
 0x5f6   :  { %v9193_v27 = vor.u32 %v10164_v25, %v9190_v52 }
 0x5fb   :  { %6040 = vmatpush.bf16.xpose.msrb.mxu0 %v9317_v43  ;;  %v9189_v43 = vor.u32 %v10168_v49, %v9188_v31  ;;  %v6142_v49 = vpack.c.bf16 %v10889_v35, %v10889_v35  ;;  %v10229_v35 = vld [vmem:[#allocation11 + $0x1c] sm:$0xf] }
 0x5fc   :  { %6053 = vmatpush.bf16.xpose.msrb.mxu1 %v9321_v51  ;;  %v9430_v51 = vld [vmem:[#allocation11 + $0x20] sm:$0x10] }
 0x5fd   :  { %6066 = vmatpush.bf16.xpose.msrb.mxu2 %v9325_v53  ;;  %6079 = vmatpush.bf16.xpose.msrb.mxu3 %v9329_v50  ;;  %v9436_v53 = vld [vmem:[#allocation11 + $0x8] sm:$0xf]  ;;  %v9433_v13 = vor.u32 %v10226_v36, %v9430_v51 }
 0x5fe   :  { %v10231_v50 = vld [vmem:[#allocation11 + $0x24] sm:$0x10] }
 0x5ff   :  { %v9437_v46 = vor.u32 %v10231_v50, %v9436_v53  ;;  %v2688_v53 = vperm.slane %v10904_v60, 7 }
 0x603   :  { %6041 = vmatpush.bf16.xpose.msrb.mxu0 %v9285_v61  ;;  %v2687_v61 = vperm.slane %v10904_v60, 6  ;;  %v10248_v60 = vld [vmem:[#allocation13] ss:$0 sm:$0xff] }
 0x604   :  { %6054 = vmatpush.bf16.xpose.msrb.mxu1 %v9289_v4  ;;  %v10232_v4 = vld [vmem:[#allocation11 + $0x2c] sm:$0x10] }
 0x605   :  { %6067 = vmatpush.bf16.xpose.msrb.mxu2 %v9293_v62  ;;  %6080 = vmatpush.bf16.xpose.msrb.mxu3 %v9297_v29  ;;  %v10228_v62 = vld [vmem:[#allocation11 + $0x14] sm:$0xf]  ;;  %v9445_v29 = vor.u32 %v10232_v4, %v9444_v17  ;;  %v5891_v19 = vadd.f32 %v10896_v45, %v2687_v61 }
 0x606   :  { %v9449_v0 = vor.u32 %v10228_v62, %v9446_v63 }
 0x607   :  { %v5904_v11 = vadd.f32 %v10898_v38, %v5891_v19  ;;  %v10322_v38 = vld [vmem:[#allocation15 + $0x18] sm:$0xff] }
 0x608   :  { %v6140_v10 = vpack.c.bf16 %v10322_v38, %v10322_v38 }
 0x609   :  { %v5917_v16 = vadd.f32 %v10900_v47, %v5904_v11 }
 0x60b   :  { %6042 = vmatpush.bf16.xpose.msrb.mxu0 %v9253_v21  ;;  %v5930_v45 = vadd.f32 %v10902_v55, %v5917_v16 }
 0x60c   :  { %6055 = vmatpush.bf16.xpose.msrb.mxu1 %v9257_v59 }
 0x60d   :  { %6068 = vmatpush.bf16.xpose.msrb.mxu2 %v9261_v8  ;;  %6081 = vmatpush.bf16.xpose.msrb.mxu3 %v9265_v9 }
 0x613   :  { %6043 = vmatpush.bf16.xpose.msrb.mxu0 %v9221_v20 }
 0x614   :  { %6056 = vmatpush.bf16.xpose.msrb.mxu1 %v9225_v42 }
 0x615   :  { %6069 = vmatpush.bf16.xpose.msrb.mxu2 %v9229_v23  ;;  %6082 = vmatpush.bf16.xpose.msrb.mxu3 %v9233_v24  ;;  %v10323_v23 = vld [vmem:[#allocation15 + $0x20] sm:$0xff] }
 0x616   :  { %v6141_v24 = vpack.c.bf16 %v10323_v23, %v10323_v23 }
 0x61b   :  { %6044 = vmatpush.bf16.xpose.msrb.mxu0 %v9189_v43 }
 0x61c   :  { %6057 = vmatpush.bf16.xpose.msrb.mxu1 %v9193_v27  ;;  %v9454_v27 = vld [vmem:[#allocation11 + $0x38] sm:$0x10] }
 0x61d   :  { %6070 = vmatpush.bf16.xpose.msrb.mxu2 %v9197_v56  ;;  %6083 = vmatpush.bf16.xpose.msrb.mxu3 %v9201_v44  ;;  %v9457_v57 = vor.u32 %v10229_v35, %v9454_v27 }
 0x61f   :  { %v5942_v6 = vpop.f32.mrf.mxu0 }
 0x620   :  { %v5943_v21 = vadd.f32 %v5942_v6, %v5930_v45 }
 0x622   :  { %6045 = vmatmul.bf16.vlgmr.msrb.gmra.mxu0 %v10744_v48  ;;  %v5955_v48 = vpop.f32.mrf.mxu1 }
 0x623   :  { %6204 = vmatpush.bf16.xpose.msra.mxu0 %v9429_v58  ;;  %6058 = vmatmul.bf16.vlgmr.msrb.gmra.mxu1 %v10748_v54  ;;  %v10319_v54 = vld [vmem:[#allocation15] sm:$0xff]  ;;  %v5956_v5 = vadd.f32 %v5955_v48, %v5943_v21 }
 0x624   :  { %6217 = vmatpush.bf16.xpose.msra.mxu1 %v9433_v13  ;;  %6071 = vmatmul.bf16.vlgmr.msrb.gmra.mxu2 %v10740_v40  ;;  %v6137_v59 = vpack.c.bf16 %v10319_v54, %v10319_v54  ;;  %v10320_v40 = vld [vmem:[#allocation15 + $0x8] sm:$0xff] }
 0x625   :  { %6230 = vmatpush.bf16.xpose.msra.mxu2 %v9437_v46  ;;  %6243 = vmatpush.bf16.xpose.msra.mxu3 %v9441_v37  ;;  %v6138_v8 = vpack.c.bf16 %v10320_v40, %v10320_v40 }
 0x626   :  { %6084 = vmatmul.bf16.vlgmr.msrb.gmra.mxu3 %v10754_v7  ;;  %v10321_v7 = vld [vmem:[#allocation15 + $0x10] sm:$0xff] }
 0x627   :  { %v6139_v9 = vpack.c.bf16 %v10321_v7, %v10321_v7  ;;  %v5968_v30 = vpop.f32.mrf.mxu2  ;;  %v5944_v14 = vpop.f32.mrf.mxu0 }
 0x628   :  { %v5969_v47 = vadd.f32 %v5968_v30, %v5956_v5 }
 0x629   :  { %v5981_v12 = vpop.f32.mrf.mxu3 }
 0x62a   :  { %v5957_v55 = vpop.f32.mrf.mxu1  ;;  %v5982_v22 = vadd.f32 %v5981_v12, %v5969_v47 }
 0x62b   :  { %6256 = vmatpush.bf16.xpose.msrb.mxu0 %v9445_v29 }
 0x62c   :  { %6269 = vmatpush.bf16.xpose.msrb.mxu1 %v9449_v0  ;;  %v6095_v15 = vsub.f32 0.0, %v5982_v22 }
 0x62d   :  { %6282 = vmatpush.bf16.xpose.msrb.mxu2 %v9453_v3  ;;  %6295 = vmatpush.bf16.xpose.msrb.mxu3 %v9457_v57 }
 0x62e   :  { %v6109_v26 = vmul.f32 1.442695, %v6095_v15 }
 0x62f   :  { %v5970_v20 = vpop.f32.mrf.mxu2 }
 0x630   :  { %10305 = vpow2.f32 %v6109_v26 }
 0x631   :  { %v5983_v42 = vpop.f32.mrf.mxu3 }
 0x632   :  { %6205 = vmatmul.bf16.vlgmr.msra.gmra.mxu0 %v6137_v59 }
 0x633   :  { %6218 = vmatmul.bf16.vlgmr.msra.gmra.mxu1 %v6138_v8 }
 0x634   :  { %6231 = vmatmul.bf16.vlgmr.msra.gmra.mxu2 %v6139_v9 }
 0x636   :  { %6244 = vmatmul.bf16.vlgmr.msra.gmra.mxu3 %v6140_v10  ;;  %v10306_v31 = vpop.eup %10305 }
 0x637   :  { %v6119_v25 = vadd.f32 1.0, %v10306_v31 }
 0x639   :  { %10307 = vrcp.f32 %v6119_v25 }
 0x63f   :  { %v10308_v52 = vpop.eup %10307 }
 0x640   :  { %6135 = vst [vmem:[#allocation15 + $0x30] sm:$0xff] %v10308_v52  ;;  %v6143_v28 = vpack.c.bf16 %v10308_v52, %v10308_v52 }
 0x642   :  { %6257 = vmatmul.bf16.vlgmr.msrb.gmra.mxu0 %v6141_v24 }
 0x643   :  { %6270 = vmatmul.bf16.vlgmr.msrb.gmra.mxu1 %v6142_v49 }
 0x644   :  { %6283 = vmatmul.bf16.vlgmr.msrb.gmra.mxu2 %v6143_v28 }
 0x65f   :  { %v5994_v32 = vpop.f32.mrf.mxu0 }
 0x660   :  { %v6007_v33 = vpop.f32.mrf.mxu1  ;;  %v5995_v50 = vadd.f32 %v5994_v32, %v2688_v53 }
 0x662   :  { %v6008_v56 = vadd.f32 %v6007_v33, %v5995_v50 }
 0x667   :  { %v6020_v34 = vpop.f32.mrf.mxu2  ;;  %v5996_v39 = vpop.f32.mrf.mxu0 }
 0x668   :  { %v6009_v36 = vpop.f32.mrf.mxu1  ;;  %v6021_v2 = vadd.f32 %v6020_v34, %v6008_v56 }
 0x669   :  { %v6033_v41 = vpop.f32.mrf.mxu3 }
 0x66a   :  { %v6034_v44 = vadd.f32 %v6033_v41, %v6021_v2 }
 0x66f   :  { %v6022_v43 = vpop.f32.mrf.mxu2 }
 0x671   :  { %v6035_v51 = vpop.f32.mrf.mxu3 }
 0x69f   :  { %v6046_v58 = vpop.f32.mrf.mxu0 }
 0x6a0   :  { %v6059_v13 = vpop.f32.mrf.mxu1  ;;  %v6047_v46 = vadd.f32 %v6046_v58, %v6034_v44 }
 0x6a2   :  { %v6060_v37 = vadd.f32 %v6059_v13, %v6047_v46 }
 0x6a7   :  { %v6072_v61 = vpop.f32.mrf.mxu2  ;;  %v6048_v62 = vpop.f32.mrf.mxu0 }
 0x6a8   :  { %v6073_v17 = vadd.f32 %v6072_v61, %v6060_v37  ;;  %v6061_v63 = vpop.f32.mrf.mxu1 }
 0x6a9   :  { %v6085_v4 = vpop.f32.mrf.mxu3 }
 0x6aa   :  { %v6086_v29 = vadd.f32 %v6085_v4, %v6073_v17 }
 0x6ac   :  { %v6096_v19 = vsub.f32 0.0, %v6086_v29 }
 0x6ae   :  { %v6111_v0 = vmul.f32 1.442695, %v6096_v19 }
 0x6af   :  { %v6074_v11 = vpop.f32.mrf.mxu2  ;;  %v6206_v18 = vpop.f32.mrf.mxu0 }
 0x6b0   :  { %10309 = vpow2.f32 %v6111_v0  ;;  %v6207_v16 = vadd.f32 %v10248_v60, %v6206_v18  ;;  %v6219_v3 = vpop.f32.mrf.mxu1 }
 0x6b1   :  { %v6087_v1 = vpop.f32.mrf.mxu3 }
 0x6b2   :  { %v6220_v45 = vadd.f32 %v6219_v3, %v6207_v16 }
 0x6b6   :  { %v10310_v6 = vpop.eup %10309 }
 0x6b7   :  { %v6120_v48 = vadd.f32 1.0, %v10310_v6  ;;  %v6232_v21 = vpop.f32.mrf.mxu2  ;;  %v6208_v40 = vpop.f32.mrf.mxu0 }
 0x6b8   :  { %v6233_v54 = vadd.f32 %v6232_v21, %v6220_v45  ;;  %v6221_v8 = vpop.f32.mrf.mxu1 }
 0x6b9   :  { %v6245_v59 = vpop.f32.mrf.mxu3  ;;  %10311 = vrcp.f32 %v6120_v48 }
 0x6ba   :  { %v6246_v7 = vadd.f32 %v6245_v59, %v6233_v54 }
 0x6bf   :  { %v10312_v9 = vpop.eup %10311  ;;  %v6234_v5 = vpop.f32.mrf.mxu2 }
 0x6c0   :  { %6136 = vst [vmem:[#allocation15 + $0x38] sm:$0xff] %v10312_v9  ;;  %v6144_v38 = vpack.c.bf16 %v10312_v9, %v10312_v9  ;;  %v6258_v30 = vpop.f32.mrf.mxu0  ;;  %v6271_v12 = vpop.f32.mrf.mxu1 }
 0x6c1   :  { %v6247_v10 = vpop.f32.mrf.mxu3  ;;  %v6259_v47 = vadd.f32 %v6258_v30, %v6246_v7  ;;  %6324 = dma.vmem_to_hbm [thread:$0]  %s6320_s23, 1024, %s6322_s22, [#allocation16]  }
 0x6c2   :  { %6296 = vmatmul.bf16.vlgmr.msrb.gmra.mxu3 %v6144_v38 }
 0x6c3   :  { %v6272_v14 = vadd.f32 %v6271_v12, %v6259_v47 }
 0x6c7   :  { %v6284_v15 = vpop.f32.mrf.mxu2 }
 0x6c8   :  { %v6260_v55 = vpop.f32.mrf.mxu0  ;;  %v6273_v22 = vpop.f32.mrf.mxu1  ;;  %v6285_v26 = vadd.f32 %v6284_v15, %v6272_v14 }
 0x6cf   :  { %v6286_v20 = vpop.f32.mrf.mxu2 }
 0x745   :  { %v6297_v42 = vpop.f32.mrf.mxu3 }
 0x746   :  { %v6298_v23 = vadd.f32 %v6297_v42, %v6285_v26 }
 0x748   :  { %6302 = vst.msk [vmem:[#allocation17] sm:$0xff] %vm6301_vm0, %v6298_v23 }
 0x749   :  { %6335 = dma.vmem_to_hbm [thread:$0]  %s6331_s8, 128, %s6333_s10, [#allocation16]  }
 0x74d   :  { %v6299_v24 = vpop.f32.mrf.mxu3 }
 0x74e   :  { %10572 = dma.done.wait [#allocation4], 1024  }
 0x74f   :  { %10573 = vsyncadd [#allocation4], 4294966272 }
 0x750   :  { %10574 = dma.done.wait [#allocation16], 1152  }
 0x751   :  { %10575 = vsyncadd [#allocation16], 4294966144 }
 0x752   :  { %6348 = vsyncpa [#allocation3], 1 }
 0x753   :  { %6349 = vsyncpa [#allocation6], 1 }
 0x754   :  { %6350 = vsyncpa [#allocation9], 1 }
 0x755   :  { %6351 = vsyncpa [#allocation12], 1 }
 0x756   :  { %6352 = vsyncpa [#allocation4], 1 }
 0x757   :  { %6353 = vsyncpa [#allocation16], 1 }

</bundles_post_ra>
